<compile_context>
chip_gen: v5e
topology: v5e:2x2
jax: 0.10.0
libtpu: 0.0.40
codegen_flags: <defaults>
</compile_context>

<pallas_src>
import functools
import math

import jax
import jax.numpy as jnp
from jax.experimental import pallas as pl
from jax.experimental.pallas import tpu as pltpu


# ------------------------------- tiling helpers -------------------------------

_TM_MAX = 256   # output-row tile
_TN_MAX = 256   # output-lane tile (matches 256-wide MXU on v6e/v7x; divides into 2x128 on v5e)
_TK_MAX = 512   # reduction tile


def _rup(x, m):
    return ((x + m - 1) // m) * m


def _pick_tile(padded, unit, tmax):
    """Largest multiple of `unit` that divides `padded` (a multiple of unit) and is <= tmax."""
    n = padded // unit
    best = 1
    for d in range(1, n + 1):
        if n % d == 0 and d * unit <= tmax:
            best = d
    return best * unit


def _k_tiles(K):
    Kp = _rup(K, 128)
    return _pick_tile(Kp, 128, _TK_MAX), Kp


def _n_tiles(cout):
    Np = _rup(cout, 128)
    return _pick_tile(Np, 128, _TN_MAX), Np


def _m_tiles(M):
    Mp = _rup(M, 8)
    if Mp <= _TM_MAX:
        return Mp, Mp
    return _TM_MAX, _rup(M, _TM_MAX)


# ------------------------------- Pallas kernels --------------------------------
# out = [relu](patches @ W_folded + bias_folded [+ residual])
# Tiled accumulating GEMM: K is the innermost ("arbitrary") grid axis; the f32
# accumulator lives in VMEM scratch and the epilogue runs only on the last K step.
# Bias / residual blocks keep the same (i, j) block index across the K loop, so the
# pipeline DMAs them once per output tile, not once per K step.

def _gemm_bn_kernel(p_ref, w_ref, b_ref, o_ref, acc_ref, *, relu):
    k = pl.program_id(2)

    @pl.when(k == 0)
    def _init():
        acc_ref[...] = jnp.zeros_like(acc_ref)

    acc_ref[...] += jnp.dot(p_ref[...], w_ref[...],
                            preferred_element_type=jnp.float32)

    @pl.when(k == pl.num_programs(2) - 1)
    def _finalize():
        out = acc_ref[...] + b_ref[...]
        if relu:
            out = jnp.maximum(out, 0.0)
        o_ref[...] = out.astype(o_ref.dtype)


def _gemm_bn_res_relu_kernel(p_ref, w_ref, b_ref, r_ref, o_ref, acc_ref):
    k = pl.program_id(2)

    @pl.when(k == 0)
    def _init():
        acc_ref[...] = jnp.zeros_like(acc_ref)

    acc_ref[...] += jnp.dot(p_ref[...], w_ref[...],
                            preferred_element_type=jnp.float32)

    @pl.when(k == pl.num_programs(2) - 1)
    def _finalize():
        out = acc_ref[...] + b_ref[...] + r_ref[...].astype(jnp.float32)
        o_ref[...] = jnp.maximum(out, 0.0).astype(o_ref.dtype)


# ------------------------------- glue (JAX) ------------------------------------

def _im2col(x, kh, kw, stride, pad):
    """x: (N,H,W,C) bf16 -> patches (N*Ho*Wo, kh*kw*C), K ordered (kh, kw, C).

    kh, kw, stride, pad MUST be Python ints (static slice bounds)."""
    N, H, W, C = x.shape
    xp = jnp.pad(x, ((0, 0), (pad, pad), (pad, pad), (0, 0)))
    Ho = (H + 2 * pad - kh) // stride + 1
    Wo = (W + 2 * pad - kw) // stride + 1
    cols = []
    for i in range(kh):
        for j in range(kw):
            cols.append(xp[:, i:i + stride * (Ho - 1) + 1:stride,
                              j:j + stride * (Wo - 1) + 1:stride, :])
    patches = jnp.stack(cols, axis=3)                 # (N,Ho,Wo,kh*kw,C)
    return patches.reshape(N * Ho * Wo, kh * kw * C), N, Ho, Wo


def conv_bn(x, wts, meta, *, stride, pad, relu=True, residual=None):
    """Fused Conv2d(no bias) + BatchNorm2d(eval) [+ residual] [+ ReLU].

    x        : (N,H,W,Cin) NHWC, bf16
    wts      : dict of device arrays {"w": (Kp,Np) bf16, "b": (1,Np) f32}
    meta     : dict of Python ints {kh, kw, cout, tk, Kp, tn, Np} (static tiling)
    residual : optional (N,Ho,Wo,Cout) bf16 tensor added before the final ReLU
    """
    kh, kw, cout = meta["kh"], meta["kw"], meta["cout"]
    tk, Kp, tn, Np = meta["tk"], meta["Kp"], meta["tn"], meta["Np"]

    patches, N, Ho, Wo = _im2col(x.astype(jnp.bfloat16), kh, kw, stride, pad)
    M, K = patches.shape
    tm, Mp = _m_tiles(M)

    p_p = jnp.pad(patches, ((0, Mp - M), (0, Kp - K)))        # bf16
    w_p = wts["w"]                                            # (Kp, Np) bf16, pre-packed
    b_p = wts["b"]                                            # (1, Np)  f32,  pre-packed

    grid = (Mp // tm, Np // tn, Kp // tk)
    out_shape = jax.ShapeDtypeStruct((Mp, Np), jnp.bfloat16)
    cp = pltpu.CompilerParams(
        dimension_semantics=("parallel", "parallel", "arbitrary"))

    in_specs = [
        pl.BlockSpec((tm, tk), lambda i, j, k: (i, k)),   # patches
        pl.BlockSpec((tk, tn), lambda i, j, k: (k, j)),   # folded weights
        pl.BlockSpec((1, tn), lambda i, j, k: (0, j)),    # folded bias
    ]
    out_specs = pl.BlockSpec((tm, tn), lambda i, j, k: (i, j))
    scratch = [pltpu.VMEM((tm, tn), jnp.float32)]

    if residual is None:
        kern = functools.partial(_gemm_bn_kernel, relu=relu)
        out_p = pl.pallas_call(
            kern,
            out_shape=out_shape,
            grid_spec=pltpu.PrefetchScalarGridSpec(
                num_scalar_prefetch=0, grid=grid,
                in_specs=in_specs, out_specs=out_specs,
                scratch_shapes=scratch),
            compiler_params=cp,
        )(p_p, w_p, b_p)
    else:
        r = residual.astype(jnp.bfloat16).reshape(M, cout)
        r_p = jnp.pad(r, ((0, Mp - M), (0, Np - cout)))
        in_specs = in_specs + [pl.BlockSpec((tm, tn), lambda i, j, k: (i, j))]
        out_p = pl.pallas_call(
            _gemm_bn_res_relu_kernel,
            out_shape=out_shape,
            grid_spec=pltpu.PrefetchScalarGridSpec(
                num_scalar_prefetch=0, grid=grid,
                in_specs=in_specs, out_specs=out_specs,
                scratch_shapes=scratch),
            compiler_params=cp,
        )(p_p, w_p, b_p, r_p)

    return out_p[:M, :cout].reshape(N, Ho, Wo, cout)


# ------------------------------ model structure --------------------------------

def basic_block(x, wts, meta, stride):
    identity = x
    if "down" in meta:  # 1x1 stride-s conv + BN on the skip path
        identity = conv_bn(x, wts["down"], meta["down"],
                           stride=stride, pad=0, relu=False)
    out = conv_bn(x, wts["conv1"], meta["conv1"], stride=stride, pad=1, relu=True)
    out = conv_bn(out, wts["conv2"], meta["conv2"], stride=1, pad=1, relu=True,
                  residual=identity)
    return out


def resnet34_trunk_forward(x_nchw, weights, meta):
    """weights: pytree of device arrays (jit arg); meta: nested dict of Python ints (static)."""
    x = jnp.transpose(x_nchw, (0, 2, 3, 1)).astype(jnp.bfloat16)   # NCHW -> NHWC, bf16
    # stem (conv1 + bn1 + relu); torchvision maxpool (children[3]) is not part of the module
    x = conv_bn(x, weights["stem"], meta["stem"], stride=2, pad=3, relu=True)
    for li, (nblocks, first_stride) in enumerate([(3, 1), (4, 2), (6, 2)]):
        wblocks = weights[f"layer{li + 1}"]
        mblocks = meta[f"layer{li + 1}"]
        for bi in range(nblocks):
            x = basic_block(x, wblocks[bi], mblocks[bi],
                            first_stride if bi == 0 else 1)
    return jnp.transpose(x, (0, 3, 1, 2)).astype(jnp.float32)      # NHWC -> NCHW


# ------------------------------ parameter init / packing ------------------------
# TODO(synk): pretrained=True checkpoint weights are replaced by deterministic
#             synthetic weights; BatchNorm uses eval-mode running statistics.

def _conv_w(key, cout, cin, kh, kw):
    fan_in = cin * kh * kw
    return jax.random.normal(key, (cout, cin, kh, kw), jnp.float32) / math.sqrt(fan_in)


def _bn_p(key, c):
    k1, k2, k3, k4 = jax.random.split(key, 4)
    return dict(
        gamma=jax.random.uniform(k1, (c,), jnp.float32, 0.5, 1.5),
        beta=0.1 * jax.random.normal(k2, (c,), jnp.float32),
        mean=0.1 * jax.random.normal(k3, (c,), jnp.float32),
        var=jax.random.uniform(k4, (c,), jnp.float32, 0.5, 1.5),
    )


def init_params(key):
    keys = iter(jax.random.split(key, 256))
    params = {
        "stem_w": _conv_w(next(keys), 64, 3, 7, 7),
        "stem_bn": _bn_p(next(keys), 64),
    }
    inplanes = 64
    for li, (planes, nblocks, first_stride) in enumerate(
            [(64, 3, 1), (128, 4, 2), (256, 6, 2)]):
        blocks = []
        for bi in range(nblocks):
            stride = first_stride if bi == 0 else 1
            b = dict(
                conv1_w=_conv_w(next(keys), planes, inplanes, 3, 3),
                bn1=_bn_p(next(keys), planes),
                conv2_w=_conv_w(next(keys), planes, planes, 3, 3),
                bn2=_bn_p(next(keys), planes),
            )
            if stride != 1 or inplanes != planes:
                b["down_w"] = _conv_w(next(keys), planes, inplanes, 1, 1)
                b["bn_d"] = _bn_p(next(keys), planes)
            blocks.append(b)
            inplanes = planes
        params[f"layer{li + 1}"] = blocks
    return params


def _pack_conv(w_pt, bn, eps=1e-5):
    """One-time weight-side preprocessing: fold BN, reorder to (K, Cout), pad to the
    tile grid, cast weights to bf16. Returns (arrays_dict, static_int_meta_dict)."""
    cout, cin, kh, kw = (int(d) for d in w_pt.shape)
    scale = bn["gamma"] / jnp.sqrt(bn["var"] + eps)
    bias = bn["beta"] - bn["mean"] * scale
    # K ordered (kh, kw, Cin) to match _im2col
    w = jnp.transpose(w_pt, (2, 3, 1, 0)).reshape(kh * kw * cin, cout) * scale[None, :]
    K = kh * kw * cin
    tk, Kp = _k_tiles(K)
    tn, Np = _n_tiles(cout)
    w_p = jnp.pad(w, ((0, Kp - K), (0, Np - cout))).astype(jnp.bfloat16)
    b_p = jnp.pad(bias, (0, Np - cout)).reshape(1, Np).astype(jnp.float32)
    wts = dict(w=w_p, b=b_p)
    meta = dict(kh=kh, kw=kw, cout=cout, tk=tk, Kp=Kp, tn=tn, Np=Np)
    return wts, meta


def pack_params(params):
    """Returns (weights, meta): weights = arrays only (safe to device_put / pass to jit),
    meta = Python ints only (must stay host-side / static)."""
    weights, meta = {}, {}
    weights["stem"], meta["stem"] = _pack_conv(params["stem_w"], params["stem_bn"])
    for li in range(3):
        wblocks, mblocks = [], []
        for b in params[f"layer{li + 1}"]:
            wb, mb = {}, {}
            wb["conv1"], mb["conv1"] = _pack_conv(b["conv1_w"], b["bn1"])
            wb["conv2"], mb["conv2"] = _pack_conv(b["conv2_w"], b["bn2"])
            if "down_w" in b:
                wb["down"], mb["down"] = _pack_conv(b["down_w"], b["bn_d"])
            wblocks.append(wb)
            mblocks.append(mb)
        weights[f"layer{li + 1}"] = wblocks
        meta[f"layer{li + 1}"] = mblocks
    return weights, meta


# ------------------------------------ main --------------------------------------

if __name__ == "__main__":
    key = jax.random.PRNGKey(0)
    pkey, xkey = jax.random.split(key)
    params = init_params(pkey)
    weights, meta = pack_params(params)      # weight preprocessing hoisted out of forward
    weights = jax.device_put(weights)        # arrays only; static int metadata stays host-side

    # small NCHW input (RGB image), consistent with ResNet34's 3-channel stem
    x = jax.random.normal(xkey, (2, 3, 16, 16), jnp.float32)

    fwd = jax.jit(functools.partial(resnet34_trunk_forward, meta=meta))
    out = fwd(x, weights)
    jax.block_until_ready(out)

    assert out.shape == (2, 256, 2, 2), out.shape
    assert out.dtype == jnp.float32
    print("KERNEL_OK")
</pallas_src>

<mosaic_0001>
module attributes {stable_mosaic.version = 11 : i64} {
  func.func @_gemm_bn_kernel(%arg0: i32, %arg1: i32, %arg2: i32, %arg3: memref<128x256xbf16, #tpu.memory_space<vmem>>, %arg4: memref<256x128xbf16, #tpu.memory_space<vmem>>, %arg5: memref<1x128xf32, #tpu.memory_space<vmem>>, %arg6: memref<128x128xbf16, #tpu.memory_space<vmem>>, %arg7: memref<128x128xf32, #tpu.memory_space<vmem>>) attributes {dimension_semantics = [#tpu.dimension_semantics<parallel>, #tpu.dimension_semantics<parallel>, #tpu.dimension_semantics<arbitrary>], iteration_bounds = array<i64: 1, 1, 1>, scalar_prefetch = 0 : i64, scratch_operands = 1 : i64, tpu.core_type = #tpu.core_type<tc>, window_params = [{transform_indices = @transform_0, window_bounds = array<i64: 128, 256>}, {transform_indices = @transform_1, window_bounds = array<i64: 256, 128>}, {transform_indices = @transform_2, window_bounds = array<i64: 1, 128>}, {transform_indices = @transform_3, window_bounds = array<i64: 128, 128>}]} {
    %c0_i32 = arith.constant 0 : i32
    %0 = arith.cmpi eq, %arg2, %c0_i32 : i32
    %1 = arith.extui %0 : i1 to i32
    %c0_i32_0 = arith.constant 0 : i32
    %2 = arith.cmpi ne, %1, %c0_i32_0 : i32
    scf.if %2 {
      %cst_10 = arith.constant 0.000000e+00 : f32
      %12 = vector.broadcast %cst_10 : f32 to vector<128x128xf32>
      %c0_11 = arith.constant 0 : index
      %c0_12 = arith.constant 0 : index
      %13 = vector.load %arg7[%c0_11, %c0_12] : memref<128x128xf32, #tpu.memory_space<vmem>>, vector<128x128xf32>
      tpu.vector_store %arg7[%c0_11, %c0_12], %12 {strides = array<i32>} : memref<128x128xf32, #tpu.memory_space<vmem>>, vector<128x128xf32>,
    } else {
    }
    %c0 = arith.constant 0 : index
    %c0_1 = arith.constant 0 : index
    %3 = vector.load %arg7[%c0, %c0_1] : memref<128x128xf32, #tpu.memory_space<vmem>>, vector<128x128xf32>
    %c0_2 = arith.constant 0 : index
    %c0_3 = arith.constant 0 : index
    %4 = vector.load %arg3[%c0_2, %c0_3] : memref<128x256xbf16, #tpu.memory_space<vmem>>, vector<128x256xbf16>
    %c0_4 = arith.constant 0 : index
    %c0_5 = arith.constant 0 : index
    %5 = vector.load %arg4[%c0_4, %c0_5] : memref<256x128xbf16, #tpu.memory_space<vmem>>, vector<256x128xbf16>
    %cst = arith.constant dense<0.000000e+00> : vector<128x128xf32>
    %6 = tpu.matmul %4, %5, %cst {dimension_numbers = #tpu.dot_dimension_numbers<[1], [0], [0], [1], [0, 0, 1, 1], [], []>} : vector<128x256xbf16>, vector<256x128xbf16>, vector<128x128xf32> -> vector<128x128xf32>
    %7 = arith.addf %3, %6 : vector<128x128xf32>
    %c0_6 = arith.constant 0 : index
    %c0_7 = arith.constant 0 : index
    %8 = vector.load %arg7[%c0_6, %c0_7] : memref<128x128xf32, #tpu.memory_space<vmem>>, vector<128x128xf32>
    tpu.vector_store %arg7[%c0_6, %c0_7], %7 {strides = array<i32>} : memref<128x128xf32, #tpu.memory_space<vmem>>, vector<128x128xf32>,
    %c0_i32_8 = arith.constant 0 : i32
    %9 = arith.cmpi eq, %arg2, %c0_i32_8 : i32
    %10 = arith.extui %9 : i1 to i32
    %c0_i32_9 = arith.constant 0 : i32
    %11 = arith.cmpi ne, %10, %c0_i32_9 : i32
    scf.if %11 {
      %c0_10 = arith.constant 0 : index
      %c0_11 = arith.constant 0 : index
      %12 = vector.load %arg7[%c0_10, %c0_11] : memref<128x128xf32, #tpu.memory_space<vmem>>, vector<128x128xf32>
      %c0_12 = arith.constant 0 : index
      %c0_13 = arith.constant 0 : index
      %13 = vector.load %arg5[%c0_12, %c0_13] : memref<1x128xf32, #tpu.memory_space<vmem>>, vector<1x128xf32>
      %14 = vector.broadcast %13 : vector<1x128xf32> to vector<128x128xf32>
      %15 = arith.addf %12, %14 : vector<128x128xf32>
      %cst_14 = arith.constant 0.000000e+00 : f32
      %16 = vector.broadcast %cst_14 : f32 to vector<128x128xf32>
      %17 = arith.maximumf %15, %16 : vector<128x128xf32>
      %18 = arith.truncf %17 : vector<128x128xf32> to vector<128x128xbf16>
      %c0_15 = arith.constant 0 : index
      %c0_16 = arith.constant 0 : index
      %19 = vector.load %arg6[%c0_15, %c0_16] : memref<128x128xbf16, #tpu.memory_space<vmem>>, vector<128x128xbf16>
      tpu.vector_store %arg6[%c0_15, %c0_16], %18 {strides = array<i32>} : memref<128x128xbf16, #tpu.memory_space<vmem>>, vector<128x128xbf16>,
    } else {
    }
    return
  }
  func.func @transform_0(%arg0: i32, %arg1: i32, %arg2: i32) -> (i32, i32) {
    %c0_i32 = arith.constant 0 : i32
    return %arg0, %arg2 : i32, i32
  }
  func.func @transform_1(%arg0: i32, %arg1: i32, %arg2: i32) -> (i32, i32) {
    %c0_i32 = arith.constant 0 : i32
    return %arg2, %arg1 : i32, i32
  }
  func.func @transform_2(%arg0: i32, %arg1: i32, %arg2: i32) -> (i32, i32) {
    %c0_i32 = arith.constant 0 : i32
    %c0_i32_0 = arith.constant 0 : i32
    return %c0_i32, %arg1 : i32, i32
  }
  func.func @transform_3(%arg0: i32, %arg1: i32, %arg2: i32) -> (i32, i32) {
    %c0_i32 = arith.constant 0 : i32
    return %arg0, %arg1 : i32, i32
  }
}

module attributes {stable_mosaic.version = 11 : i64} {
  func.func @_gemm_bn_kernel(%arg0: i32, %arg1: i32, %arg2: i32, %arg3: memref<128x128xbf16, #tpu.memory_space<vmem>>, %arg4: memref<128x128xbf16, #tpu.memory_space<vmem>>, %arg5: memref<1x128xf32, #tpu.memory_space<vmem>>, %arg6: memref<128x128xbf16, #tpu.memory_space<vmem>>, %arg7: memref<128x128xf32, #tpu.memory_space<vmem>>) attributes {dimension_semantics = [#tpu.dimension_semantics<parallel>, #tpu.dimension_semantics<parallel>, #tpu.dimension_semantics<arbitrary>], iteration_bounds = array<i64: 1, 1, 5>, scalar_prefetch = 0 : i64, scratch_operands = 1 : i64, tpu.core_type = #tpu.core_type<tc>, window_params = [{transform_indices = @transform_0, window_bounds = array<i64: 128, 128>}, {transform_indices = @transform_1, window_bounds = array<i64: 128, 128>}, {transform_indices = @transform_2, window_bounds = array<i64: 1, 128>}, {transform_indices = @transform_3, window_bounds = array<i64: 128, 128>}]} {
    %c0_i32 = arith.constant 0 : i32
    %0 = arith.cmpi eq, %arg2, %c0_i32 : i32
    %1 = arith.extui %0 : i1 to i32
    %c0_i32_0 = arith.constant 0 : i32
    %2 = arith.cmpi ne, %1, %c0_i32_0 : i32
    scf.if %2 {
      %cst_9 = arith.constant 0.000000e+00 : f32
      %12 = vector.broadcast %cst_9 : f32 to vector<128x128xf32>
      %c0_10 = arith.constant 0 : index
      %c0_11 = arith.constant 0 : index
      %13 = vector.load %arg7[%c0_10, %c0_11] : memref<128x128xf32, #tpu.memory_space<vmem>>, vector<128x128xf32>
      tpu.vector_store %arg7[%c0_10, %c0_11], %12 {strides = array<i32>} : memref<128x128xf32, #tpu.memory_space<vmem>>, vector<128x128xf32>,
    } else {
    }
    %c0 = arith.constant 0 : index
    %c0_1 = arith.constant 0 : index
    %3 = vector.load %arg7[%c0, %c0_1] : memref<128x128xf32, #tpu.memory_space<vmem>>, vector<128x128xf32>
    %c0_2 = arith.constant 0 : index
    %c0_3 = arith.constant 0 : index
    %4 = vector.load %arg3[%c0_2, %c0_3] : memref<128x128xbf16, #tpu.memory_space<vmem>>, vector<128x128xbf16>
    %c0_4 = arith.constant 0 : index
    %c0_5 = arith.constant 0 : index
    %5 = vector.load %arg4[%c0_4, %c0_5] : memref<128x128xbf16, #tpu.memory_space<vmem>>, vector<128x128xbf16>
    %cst = arith.constant dense<0.000000e+00> : vector<128x128xf32>
    %6 = tpu.matmul %4, %5, %cst {dimension_numbers = #tpu.dot_dimension_numbers<[1], [0], [0], [1], [0, 0, 1, 1], [], []>} : vector<128x128xbf16>, vector<128x128xbf16>, vector<128x128xf32> -> vector<128x128xf32>
    %7 = arith.addf %3, %6 : vector<128x128xf32>
    %c0_6 = arith.constant 0 : index
    %c0_7 = arith.constant 0 : index
    %8 = vector.load %arg7[%c0_6, %c0_7] : memref<128x128xf32, #tpu.memory_space<vmem>>, vector<128x128xf32>
    tpu.vector_store %arg7[%c0_6, %c0_7], %7 {strides = array<i32>} : memref<128x128xf32, #tpu.memory_space<vmem>>, vector<128x128xf32>,
    %c4_i32 = arith.constant 4 : i32
    %9 = arith.cmpi eq, %arg2, %c4_i32 : i32
    %10 = arith.extui %9 : i1 to i32
    %c0_i32_8 = arith.constant 0 : i32
    %11 = arith.cmpi ne, %10, %c0_i32_8 : i32
    scf.if %11 {
      %c0_9 = arith.constant 0 : index
      %c0_10 = arith.constant 0 : index
      %12 = vector.load %arg7[%c0_9, %c0_10] : memref<128x128xf32, #tpu.memory_space<vmem>>, vector<128x128xf32>
      %c0_11 = arith.constant 0 : index
      %c0_12 = arith.constant 0 : index
      %13 = vector.load %arg5[%c0_11, %c0_12] : memref<1x128xf32, #tpu.memory_space<vmem>>, vector<1x128xf32>
      %14 = vector.broadcast %13 : vector<1x128xf32> to vector<128x128xf32>
      %15 = arith.addf %12, %14 : vector<128x128xf32>
      %cst_13 = arith.constant 0.000000e+00 : f32
      %16 = vector.broadcast %cst_13 : f32 to vector<128x128xf32>
      %17 = arith.maximumf %15, %16 : vector<128x128xf32>
      %18 = arith.truncf %17 : vector<128x128xf32> to vector<128x128xbf16>
      %c0_14 = arith.constant 0 : index
      %c0_15 = arith.constant 0 : index
      %19 = vector.load %arg6[%c0_14, %c0_15] : memref<128x128xbf16, #tpu.memory_space<vmem>>, vector<128x128xbf16>
      tpu.vector_store %arg6[%c0_14, %c0_15], %18 {strides = array<i32>} : memref<128x128xbf16, #tpu.memory_space<vmem>>, vector<128x128xbf16>,
    } else {
    }
    return
  }
  func.func @transform_0(%arg0: i32, %arg1: i32, %arg2: i32) -> (i32, i32) {
    %c0_i32 = arith.constant 0 : i32
    return %arg0, %arg2 : i32, i32
  }
  func.func @transform_1(%arg0: i32, %arg1: i32, %arg2: i32) -> (i32, i32) {
    %c0_i32 = arith.constant 0 : i32
    return %arg2, %arg1 : i32, i32
  }
  func.func @transform_2(%arg0: i32, %arg1: i32, %arg2: i32) -> (i32, i32) {
    %c0_i32 = arith.constant 0 : i32
    %c0_i32_0 = arith.constant 0 : i32
    return %c0_i32, %arg1 : i32, i32
  }
  func.func @transform_3(%arg0: i32, %arg1: i32, %arg2: i32) -> (i32, i32) {
    %c0_i32 = arith.constant 0 : i32
    return %arg0, %arg1 : i32, i32
  }
}

module attributes {stable_mosaic.version = 11 : i64} {
  func.func @_gemm_bn_res_relu_kernel(%arg0: i32, %arg1: i32, %arg2: i32, %arg3: memref<128x128xbf16, #tpu.memory_space<vmem>>, %arg4: memref<128x128xbf16, #tpu.memory_space<vmem>>, %arg5: memref<1x128xf32, #tpu.memory_space<vmem>>, %arg6: memref<128x128xbf16, #tpu.memory_space<vmem>>, %arg7: memref<128x128xbf16, #tpu.memory_space<vmem>>, %arg8: memref<128x128xf32, #tpu.memory_space<vmem>>) attributes {dimension_semantics = [#tpu.dimension_semantics<parallel>, #tpu.dimension_semantics<parallel>, #tpu.dimension_semantics<arbitrary>], iteration_bounds = array<i64: 1, 1, 5>, scalar_prefetch = 0 : i64, scratch_operands = 1 : i64, tpu.core_type = #tpu.core_type<tc>, window_params = [{transform_indices = @transform_0, window_bounds = array<i64: 128, 128>}, {transform_indices = @transform_1, window_bounds = array<i64: 128, 128>}, {transform_indices = @transform_2, window_bounds = array<i64: 1, 128>}, {transform_indices = @transform_3, window_bounds = array<i64: 128, 128>}, {transform_indices = @transform_4, window_bounds = array<i64: 128, 128>}]} {
    %c0_i32 = arith.constant 0 : i32
    %0 = arith.cmpi eq, %arg2, %c0_i32 : i32
    %1 = arith.extui %0 : i1 to i32
    %c0_i32_0 = arith.constant 0 : i32
    %2 = arith.cmpi ne, %1, %c0_i32_0 : i32
    scf.if %2 {
      %cst_9 = arith.constant 0.000000e+00 : f32
      %12 = vector.broadcast %cst_9 : f32 to vector<128x128xf32>
      %c0_10 = arith.constant 0 : index
      %c0_11 = arith.constant 0 : index
      %13 = vector.load %arg8[%c0_10, %c0_11] : memref<128x128xf32, #tpu.memory_space<vmem>>, vector<128x128xf32>
      tpu.vector_store %arg8[%c0_10, %c0_11], %12 {strides = array<i32>} : memref<128x128xf32, #tpu.memory_space<vmem>>, vector<128x128xf32>,
    } else {
    }
    %c0 = arith.constant 0 : index
    %c0_1 = arith.constant 0 : index
    %3 = vector.load %arg8[%c0, %c0_1] : memref<128x128xf32, #tpu.memory_space<vmem>>, vector<128x128xf32>
    %c0_2 = arith.constant 0 : index
    %c0_3 = arith.constant 0 : index
    %4 = vector.load %arg3[%c0_2, %c0_3] : memref<128x128xbf16, #tpu.memory_space<vmem>>, vector<128x128xbf16>
    %c0_4 = arith.constant 0 : index
    %c0_5 = arith.constant 0 : index
    %5 = vector.load %arg4[%c0_4, %c0_5] : memref<128x128xbf16, #tpu.memory_space<vmem>>, vector<128x128xbf16>
    %cst = arith.constant dense<0.000000e+00> : vector<128x128xf32>
    %6 = tpu.matmul %4, %5, %cst {dimension_numbers = #tpu.dot_dimension_numbers<[1], [0], [0], [1], [0, 0, 1, 1], [], []>} : vector<128x128xbf16>, vector<128x128xbf16>, vector<128x128xf32> -> vector<128x128xf32>
    %7 = arith.addf %3, %6 : vector<128x128xf32>
    %c0_6 = arith.constant 0 : index
    %c0_7 = arith.constant 0 : index
    %8 = vector.load %arg8[%c0_6, %c0_7] : memref<128x128xf32, #tpu.memory_space<vmem>>, vector<128x128xf32>
    tpu.vector_store %arg8[%c0_6, %c0_7], %7 {strides = array<i32>} : memref<128x128xf32, #tpu.memory_space<vmem>>, vector<128x128xf32>,
    %c4_i32 = arith.constant 4 : i32
    %9 = arith.cmpi eq, %arg2, %c4_i32 : i32
    %10 = arith.extui %9 : i1 to i32
    %c0_i32_8 = arith.constant 0 : i32
    %11 = arith.cmpi ne, %10, %c0_i32_8 : i32
    scf.if %11 {
      %c0_9 = arith.constant 0 : index
      %c0_10 = arith.constant 0 : index
      %12 = vector.load %arg8[%c0_9, %c0_10] : memref<128x128xf32, #tpu.memory_space<vmem>>, vector<128x128xf32>
      %c0_11 = arith.constant 0 : index
      %c0_12 = arith.constant 0 : index
      %13 = vector.load %arg5[%c0_11, %c0_12] : memref<1x128xf32, #tpu.memory_space<vmem>>, vector<1x128xf32>
      %14 = vector.broadcast %13 : vector<1x128xf32> to vector<128x128xf32>
      %15 = arith.addf %12, %14 : vector<128x128xf32>
      %c0_13 = arith.constant 0 : index
      %c0_14 = arith.constant 0 : index
      %16 = vector.load %arg6[%c0_13, %c0_14] : memref<128x128xbf16, #tpu.memory_space<vmem>>, vector<128x128xbf16>
      %17 = arith.extf %16 : vector<128x128xbf16> to vector<128x128xf32>
      %18 = arith.addf %15, %17 : vector<128x128xf32>
      %cst_15 = arith.constant 0.000000e+00 : f32
      %19 = vector.broadcast %cst_15 : f32 to vector<128x128xf32>
      %20 = arith.maximumf %18, %19 : vector<128x128xf32>
      %21 = arith.truncf %20 : vector<128x128xf32> to vector<128x128xbf16>
      %c0_16 = arith.constant 0 : index
      %c0_17 = arith.constant 0 : index
      %22 = vector.load %arg7[%c0_16, %c0_17] : memref<128x128xbf16, #tpu.memory_space<vmem>>, vector<128x128xbf16>
      tpu.vector_store %arg7[%c0_16, %c0_17], %21 {strides = array<i32>} : memref<128x128xbf16, #tpu.memory_space<vmem>>, vector<128x128xbf16>,
    } else {
    }
    return
  }
  func.func @transform_0(%arg0: i32, %arg1: i32, %arg2: i32) -> (i32, i32) {
    %c0_i32 = arith.constant 0 : i32
    return %arg0, %arg2 : i32, i32
  }
  func.func @transform_1(%arg0: i32, %arg1: i32, %arg2: i32) -> (i32, i32) {
    %c0_i32 = arith.constant 0 : i32
    return %arg2, %arg1 : i32, i32
  }
  func.func @transform_2(%arg0: i32, %arg1: i32, %arg2: i32) -> (i32, i32) {
    %c0_i32 = arith.constant 0 : i32
    %c0_i32_0 = arith.constant 0 : i32
    return %c0_i32, %arg1 : i32, i32
  }
  func.func @transform_3(%arg0: i32, %arg1: i32, %arg2: i32) -> (i32, i32) {
    %c0_i32 = arith.constant 0 : i32
    return %arg0, %arg1 : i32, i32
  }
  func.func @transform_4(%arg0: i32, %arg1: i32, %arg2: i32) -> (i32, i32) {
    %c0_i32 = arith.constant 0 : i32
    return %arg0, %arg1 : i32, i32
  }
}

module attributes {stable_mosaic.version = 11 : i64} {
  func.func @_gemm_bn_kernel(%arg0: i32, %arg1: i32, %arg2: i32, %arg3: memref<32x128xbf16, #tpu.memory_space<vmem>>, %arg4: memref<128x128xbf16, #tpu.memory_space<vmem>>, %arg5: memref<1x128xf32, #tpu.memory_space<vmem>>, %arg6: memref<32x128xbf16, #tpu.memory_space<vmem>>, %arg7: memref<32x128xf32, #tpu.memory_space<vmem>>) attributes {dimension_semantics = [#tpu.dimension_semantics<parallel>, #tpu.dimension_semantics<parallel>, #tpu.dimension_semantics<arbitrary>], iteration_bounds = array<i64: 1, 1, 5>, scalar_prefetch = 0 : i64, scratch_operands = 1 : i64, tpu.core_type = #tpu.core_type<tc>, window_params = [{transform_indices = @transform_0, window_bounds = array<i64: 32, 128>}, {transform_indices = @transform_1, window_bounds = array<i64: 128, 128>}, {transform_indices = @transform_2, window_bounds = array<i64: 1, 128>}, {transform_indices = @transform_3, window_bounds = array<i64: 32, 128>}]} {
    %c0_i32 = arith.constant 0 : i32
    %0 = arith.cmpi eq, %arg2, %c0_i32 : i32
    %1 = arith.extui %0 : i1 to i32
    %c0_i32_0 = arith.constant 0 : i32
    %2 = arith.cmpi ne, %1, %c0_i32_0 : i32
    scf.if %2 {
      %cst_9 = arith.constant 0.000000e+00 : f32
      %12 = vector.broadcast %cst_9 : f32 to vector<32x128xf32>
      %c0_10 = arith.constant 0 : index
      %c0_11 = arith.constant 0 : index
      %13 = vector.load %arg7[%c0_10, %c0_11] : memref<32x128xf32, #tpu.memory_space<vmem>>, vector<32x128xf32>
      tpu.vector_store %arg7[%c0_10, %c0_11], %12 {strides = array<i32>} : memref<32x128xf32, #tpu.memory_space<vmem>>, vector<32x128xf32>,
    } else {
    }
    %c0 = arith.constant 0 : index
    %c0_1 = arith.constant 0 : index
    %3 = vector.load %arg7[%c0, %c0_1] : memref<32x128xf32, #tpu.memory_space<vmem>>, vector<32x128xf32>
    %c0_2 = arith.constant 0 : index
    %c0_3 = arith.constant 0 : index
    %4 = vector.load %arg3[%c0_2, %c0_3] : memref<32x128xbf16, #tpu.memory_space<vmem>>, vector<32x128xbf16>
    %c0_4 = arith.constant 0 : index
    %c0_5 = arith.constant 0 : index
    %5 = vector.load %arg4[%c0_4, %c0_5] : memref<128x128xbf16, #tpu.memory_space<vmem>>, vector<128x128xbf16>
    %cst = arith.constant dense<0.000000e+00> : vector<32x128xf32>
    %6 = tpu.matmul %4, %5, %cst {dimension_numbers = #tpu.dot_dimension_numbers<[1], [0], [0], [1], [0, 0, 1, 1], [], []>} : vector<32x128xbf16>, vector<128x128xbf16>, vector<32x128xf32> -> vector<32x128xf32>
    %7 = arith.addf %3, %6 : vector<32x128xf32>
    %c0_6 = arith.constant 0 : index
    %c0_7 = arith.constant 0 : index
    %8 = vector.load %arg7[%c0_6, %c0_7] : memref<32x128xf32, #tpu.memory_space<vmem>>, vector<32x128xf32>
    tpu.vector_store %arg7[%c0_6, %c0_7], %7 {strides = array<i32>} : memref<32x128xf32, #tpu.memory_space<vmem>>, vector<32x128xf32>,
    %c4_i32 = arith.constant 4 : i32
    %9 = arith.cmpi eq, %arg2, %c4_i32 : i32
    %10 = arith.extui %9 : i1 to i32
    %c0_i32_8 = arith.constant 0 : i32
    %11 = arith.cmpi ne, %10, %c0_i32_8 : i32
    scf.if %11 {
      %c0_9 = arith.constant 0 : index
      %c0_10 = arith.constant 0 : index
      %12 = vector.load %arg7[%c0_9, %c0_10] : memref<32x128xf32, #tpu.memory_space<vmem>>, vector<32x128xf32>
      %c0_11 = arith.constant 0 : index
      %c0_12 = arith.constant 0 : index
      %13 = vector.load %arg5[%c0_11, %c0_12] : memref<1x128xf32, #tpu.memory_space<vmem>>, vector<1x128xf32>
      %14 = vector.broadcast %13 : vector<1x128xf32> to vector<32x128xf32>
      %15 = arith.addf %12, %14 : vector<32x128xf32>
      %cst_13 = arith.constant 0.000000e+00 : f32
      %16 = vector.broadcast %cst_13 : f32 to vector<32x128xf32>
      %17 = arith.maximumf %15, %16 : vector<32x128xf32>
      %18 = arith.truncf %17 : vector<32x128xf32> to vector<32x128xbf16>
      %c0_14 = arith.constant 0 : index
      %c0_15 = arith.constant 0 : index
      %19 = vector.load %arg6[%c0_14, %c0_15] : memref<32x128xbf16, #tpu.memory_space<vmem>>, vector<32x128xbf16>
      tpu.vector_store %arg6[%c0_14, %c0_15], %18 {strides = array<i32>} : memref<32x128xbf16, #tpu.memory_space<vmem>>, vector<32x128xbf16>,
    } else {
    }
    return
  }
  func.func @transform_0(%arg0: i32, %arg1: i32, %arg2: i32) -> (i32, i32) {
    %c0_i32 = arith.constant 0 : i32
    return %arg0, %arg2 : i32, i32
  }
  func.func @transform_1(%arg0: i32, %arg1: i32, %arg2: i32) -> (i32, i32) {
    %c0_i32 = arith.constant 0 : i32
    return %arg2, %arg1 : i32, i32
  }
  func.func @transform_2(%arg0: i32, %arg1: i32, %arg2: i32) -> (i32, i32) {
    %c0_i32 = arith.constant 0 : i32
    %c0_i32_0 = arith.constant 0 : i32
    return %c0_i32, %arg1 : i32, i32
  }
  func.func @transform_3(%arg0: i32, %arg1: i32, %arg2: i32) -> (i32, i32) {
    %c0_i32 = arith.constant 0 : i32
    return %arg0, %arg1 : i32, i32
  }
}

module attributes {stable_mosaic.version = 11 : i64} {
  func.func @_gemm_bn_kernel(%arg0: i32, %arg1: i32, %arg2: i32, %arg3: memref<32x128xbf16, #tpu.memory_space<vmem>>, %arg4: memref<128x128xbf16, #tpu.memory_space<vmem>>, %arg5: memref<1x128xf32, #tpu.memory_space<vmem>>, %arg6: memref<32x128xbf16, #tpu.memory_space<vmem>>, %arg7: memref<32x128xf32, #tpu.memory_space<vmem>>) attributes {dimension_semantics = [#tpu.dimension_semantics<parallel>, #tpu.dimension_semantics<parallel>, #tpu.dimension_semantics<arbitrary>], iteration_bounds = array<i64: 1, 1, 1>, scalar_prefetch = 0 : i64, scratch_operands = 1 : i64, tpu.core_type = #tpu.core_type<tc>, window_params = [{transform_indices = @transform_0, window_bounds = array<i64: 32, 128>}, {transform_indices = @transform_1, window_bounds = array<i64: 128, 128>}, {transform_indices = @transform_2, window_bounds = array<i64: 1, 128>}, {transform_indices = @transform_3, window_bounds = array<i64: 32, 128>}]} {
    %c0_i32 = arith.constant 0 : i32
    %0 = arith.cmpi eq, %arg2, %c0_i32 : i32
    %1 = arith.extui %0 : i1 to i32
    %c0_i32_0 = arith.constant 0 : i32
    %2 = arith.cmpi ne, %1, %c0_i32_0 : i32
    scf.if %2 {
      %cst_10 = arith.constant 0.000000e+00 : f32
      %12 = vector.broadcast %cst_10 : f32 to vector<32x128xf32>
      %c0_11 = arith.constant 0 : index
      %c0_12 = arith.constant 0 : index
      %13 = vector.load %arg7[%c0_11, %c0_12] : memref<32x128xf32, #tpu.memory_space<vmem>>, vector<32x128xf32>
      tpu.vector_store %arg7[%c0_11, %c0_12], %12 {strides = array<i32>} : memref<32x128xf32, #tpu.memory_space<vmem>>, vector<32x128xf32>,
    } else {
    }
    %c0 = arith.constant 0 : index
    %c0_1 = arith.constant 0 : index
    %3 = vector.load %arg7[%c0, %c0_1] : memref<32x128xf32, #tpu.memory_space<vmem>>, vector<32x128xf32>
    %c0_2 = arith.constant 0 : index
    %c0_3 = arith.constant 0 : index
    %4 = vector.load %arg3[%c0_2, %c0_3] : memref<32x128xbf16, #tpu.memory_space<vmem>>, vector<32x128xbf16>
    %c0_4 = arith.constant 0 : index
    %c0_5 = arith.constant 0 : index
    %5 = vector.load %arg4[%c0_4, %c0_5] : memref<128x128xbf16, #tpu.memory_space<vmem>>, vector<128x128xbf16>
    %cst = arith.constant dense<0.000000e+00> : vector<32x128xf32>
    %6 = tpu.matmul %4, %5, %cst {dimension_numbers = #tpu.dot_dimension_numbers<[1], [0], [0], [1], [0, 0, 1, 1], [], []>} : vector<32x128xbf16>, vector<128x128xbf16>, vector<32x128xf32> -> vector<32x128xf32>
    %7 = arith.addf %3, %6 : vector<32x128xf32>
    %c0_6 = arith.constant 0 : index
    %c0_7 = arith.constant 0 : index
    %8 = vector.load %arg7[%c0_6, %c0_7] : memref<32x128xf32, #tpu.memory_space<vmem>>, vector<32x128xf32>
    tpu.vector_store %arg7[%c0_6, %c0_7], %7 {strides = array<i32>} : memref<32x128xf32, #tpu.memory_space<vmem>>, vector<32x128xf32>,
    %c0_i32_8 = arith.constant 0 : i32
    %9 = arith.cmpi eq, %arg2, %c0_i32_8 : i32
    %10 = arith.extui %9 : i1 to i32
    %c0_i32_9 = arith.constant 0 : i32
    %11 = arith.cmpi ne, %10, %c0_i32_9 : i32
    scf.if %11 {
      %c0_10 = arith.constant 0 : index
      %c0_11 = arith.constant 0 : index
      %12 = vector.load %arg7[%c0_10, %c0_11] : memref<32x128xf32, #tpu.memory_space<vmem>>, vector<32x128xf32>
      %c0_12 = arith.constant 0 : index
      %c0_13 = arith.constant 0 : index
      %13 = vector.load %arg5[%c0_12, %c0_13] : memref<1x128xf32, #tpu.memory_space<vmem>>, vector<1x128xf32>
      %14 = vector.broadcast %13 : vector<1x128xf32> to vector<32x128xf32>
      %15 = arith.addf %12, %14 : vector<32x128xf32>
      %16 = arith.truncf %15 : vector<32x128xf32> to vector<32x128xbf16>
      %c0_14 = arith.constant 0 : index
      %c0_15 = arith.constant 0 : index
      %17 = vector.load %arg6[%c0_14, %c0_15] : memref<32x128xbf16, #tpu.memory_space<vmem>>, vector<32x128xbf16>
      tpu.vector_store %arg6[%c0_14, %c0_15], %16 {strides = array<i32>} : memref<32x128xbf16, #tpu.memory_space<vmem>>, vector<32x128xbf16>,
    } else {
    }
    return
  }
  func.func @transform_0(%arg0: i32, %arg1: i32, %arg2: i32) -> (i32, i32) {
    %c0_i32 = arith.constant 0 : i32
    return %arg0, %arg2 : i32, i32
  }
  func.func @transform_1(%arg0: i32, %arg1: i32, %arg2: i32) -> (i32, i32) {
    %c0_i32 = arith.constant 0 : i32
    return %arg2, %arg1 : i32, i32
  }
  func.func @transform_2(%arg0: i32, %arg1: i32, %arg2: i32) -> (i32, i32) {
    %c0_i32 = arith.constant 0 : i32
    %c0_i32_0 = arith.constant 0 : i32
    return %c0_i32, %arg1 : i32, i32
  }
  func.func @transform_3(%arg0: i32, %arg1: i32, %arg2: i32) -> (i32, i32) {
    %c0_i32 = arith.constant 0 : i32
    return %arg0, %arg1 : i32, i32
  }
}

module attributes {stable_mosaic.version = 11 : i64} {
  func.func @_gemm_bn_res_relu_kernel(%arg0: i32, %arg1: i32, %arg2: i32, %arg3: memref<32x384xbf16, #tpu.memory_space<vmem>>, %arg4: memref<384x128xbf16, #tpu.memory_space<vmem>>, %arg5: memref<1x128xf32, #tpu.memory_space<vmem>>, %arg6: memref<32x128xbf16, #tpu.memory_space<vmem>>, %arg7: memref<32x128xbf16, #tpu.memory_space<vmem>>, %arg8: memref<32x128xf32, #tpu.memory_space<vmem>>) attributes {dimension_semantics = [#tpu.dimension_semantics<parallel>, #tpu.dimension_semantics<parallel>, #tpu.dimension_semantics<arbitrary>], iteration_bounds = array<i64: 1, 1, 3>, scalar_prefetch = 0 : i64, scratch_operands = 1 : i64, tpu.core_type = #tpu.core_type<tc>, window_params = [{transform_indices = @transform_0, window_bounds = array<i64: 32, 384>}, {transform_indices = @transform_1, window_bounds = array<i64: 384, 128>}, {transform_indices = @transform_2, window_bounds = array<i64: 1, 128>}, {transform_indices = @transform_3, window_bounds = array<i64: 32, 128>}, {transform_indices = @transform_4, window_bounds = array<i64: 32, 128>}]} {
    %c0_i32 = arith.constant 0 : i32
    %0 = arith.cmpi eq, %arg2, %c0_i32 : i32
    %1 = arith.extui %0 : i1 to i32
    %c0_i32_0 = arith.constant 0 : i32
    %2 = arith.cmpi ne, %1, %c0_i32_0 : i32
    scf.if %2 {
      %cst_9 = arith.constant 0.000000e+00 : f32
      %12 = vector.broadcast %cst_9 : f32 to vector<32x128xf32>
      %c0_10 = arith.constant 0 : index
      %c0_11 = arith.constant 0 : index
      %13 = vector.load %arg8[%c0_10, %c0_11] : memref<32x128xf32, #tpu.memory_space<vmem>>, vector<32x128xf32>
      tpu.vector_store %arg8[%c0_10, %c0_11], %12 {strides = array<i32>} : memref<32x128xf32, #tpu.memory_space<vmem>>, vector<32x128xf32>,
    } else {
    }
    %c0 = arith.constant 0 : index
    %c0_1 = arith.constant 0 : index
    %3 = vector.load %arg8[%c0, %c0_1] : memref<32x128xf32, #tpu.memory_space<vmem>>, vector<32x128xf32>
    %c0_2 = arith.constant 0 : index
    %c0_3 = arith.constant 0 : index
    %4 = vector.load %arg3[%c0_2, %c0_3] : memref<32x384xbf16, #tpu.memory_space<vmem>>, vector<32x384xbf16>
    %c0_4 = arith.constant 0 : index
    %c0_5 = arith.constant 0 : index
    %5 = vector.load %arg4[%c0_4, %c0_5] : memref<384x128xbf16, #tpu.memory_space<vmem>>, vector<384x128xbf16>
    %cst = arith.constant dense<0.000000e+00> : vector<32x128xf32>
    %6 = tpu.matmul %4, %5, %cst {dimension_numbers = #tpu.dot_dimension_numbers<[1], [0], [0], [1], [0, 0, 1, 1], [], []>} : vector<32x384xbf16>, vector<384x128xbf16>, vector<32x128xf32> -> vector<32x128xf32>
    %7 = arith.addf %3, %6 : vector<32x128xf32>
    %c0_6 = arith.constant 0 : index
    %c0_7 = arith.constant 0 : index
    %8 = vector.load %arg8[%c0_6, %c0_7] : memref<32x128xf32, #tpu.memory_space<vmem>>, vector<32x128xf32>
    tpu.vector_store %arg8[%c0_6, %c0_7], %7 {strides = array<i32>} : memref<32x128xf32, #tpu.memory_space<vmem>>, vector<32x128xf32>,
    %c2_i32 = arith.constant 2 : i32
    %9 = arith.cmpi eq, %arg2, %c2_i32 : i32
    %10 = arith.extui %9 : i1 to i32
    %c0_i32_8 = arith.constant 0 : i32
    %11 = arith.cmpi ne, %10, %c0_i32_8 : i32
    scf.if %11 {
      %c0_9 = arith.constant 0 : index
      %c0_10 = arith.constant 0 : index
      %12 = vector.load %arg8[%c0_9, %c0_10] : memref<32x128xf32, #tpu.memory_space<vmem>>, vector<32x128xf32>
      %c0_11 = arith.constant 0 : index
      %c0_12 = arith.constant 0 : index
      %13 = vector.load %arg5[%c0_11, %c0_12] : memref<1x128xf32, #tpu.memory_space<vmem>>, vector<1x128xf32>
      %14 = vector.broadcast %13 : vector<1x128xf32> to vector<32x128xf32>
      %15 = arith.addf %12, %14 : vector<32x128xf32>
      %c0_13 = arith.constant 0 : index
      %c0_14 = arith.constant 0 : index
      %16 = vector.load %arg6[%c0_13, %c0_14] : memref<32x128xbf16, #tpu.memory_space<vmem>>, vector<32x128xbf16>
      %17 = arith.extf %16 : vector<32x128xbf16> to vector<32x128xf32>
      %18 = arith.addf %15, %17 : vector<32x128xf32>
      %cst_15 = arith.constant 0.000000e+00 : f32
      %19 = vector.broadcast %cst_15 : f32 to vector<32x128xf32>
      %20 = arith.maximumf %18, %19 : vector<32x128xf32>
      %21 = arith.truncf %20 : vector<32x128xf32> to vector<32x128xbf16>
      %c0_16 = arith.constant 0 : index
      %c0_17 = arith.constant 0 : index
      %22 = vector.load %arg7[%c0_16, %c0_17] : memref<32x128xbf16, #tpu.memory_space<vmem>>, vector<32x128xbf16>
      tpu.vector_store %arg7[%c0_16, %c0_17], %21 {strides = array<i32>} : memref<32x128xbf16, #tpu.memory_space<vmem>>, vector<32x128xbf16>,
    } else {
    }
    return
  }
  func.func @transform_0(%arg0: i32, %arg1: i32, %arg2: i32) -> (i32, i32) {
    %c0_i32 = arith.constant 0 : i32
    return %arg0, %arg2 : i32, i32
  }
  func.func @transform_1(%arg0: i32, %arg1: i32, %arg2: i32) -> (i32, i32) {
    %c0_i32 = arith.constant 0 : i32
    return %arg2, %arg1 : i32, i32
  }
  func.func @transform_2(%arg0: i32, %arg1: i32, %arg2: i32) -> (i32, i32) {
    %c0_i32 = arith.constant 0 : i32
    %c0_i32_0 = arith.constant 0 : i32
    return %c0_i32, %arg1 : i32, i32
  }
  func.func @transform_3(%arg0: i32, %arg1: i32, %arg2: i32) -> (i32, i32) {
    %c0_i32 = arith.constant 0 : i32
    return %arg0, %arg1 : i32, i32
  }
  func.func @transform_4(%arg0: i32, %arg1: i32, %arg2: i32) -> (i32, i32) {
    %c0_i32 = arith.constant 0 : i32
    return %arg0, %arg1 : i32, i32
  }
}

module attributes {stable_mosaic.version = 11 : i64} {
  func.func @_gemm_bn_kernel(%arg0: i32, %arg1: i32, %arg2: i32, %arg3: memref<32x384xbf16, #tpu.memory_space<vmem>>, %arg4: memref<384x128xbf16, #tpu.memory_space<vmem>>, %arg5: memref<1x128xf32, #tpu.memory_space<vmem>>, %arg6: memref<32x128xbf16, #tpu.memory_space<vmem>>, %arg7: memref<32x128xf32, #tpu.memory_space<vmem>>) attributes {dimension_semantics = [#tpu.dimension_semantics<parallel>, #tpu.dimension_semantics<parallel>, #tpu.dimension_semantics<arbitrary>], iteration_bounds = array<i64: 1, 1, 3>, scalar_prefetch = 0 : i64, scratch_operands = 1 : i64, tpu.core_type = #tpu.core_type<tc>, window_params = [{transform_indices = @transform_0, window_bounds = array<i64: 32, 384>}, {transform_indices = @transform_1, window_bounds = array<i64: 384, 128>}, {transform_indices = @transform_2, window_bounds = array<i64: 1, 128>}, {transform_indices = @transform_3, window_bounds = array<i64: 32, 128>}]} {
    %c0_i32 = arith.constant 0 : i32
    %0 = arith.cmpi eq, %arg2, %c0_i32 : i32
    %1 = arith.extui %0 : i1 to i32
    %c0_i32_0 = arith.constant 0 : i32
    %2 = arith.cmpi ne, %1, %c0_i32_0 : i32
    scf.if %2 {
      %cst_9 = arith.constant 0.000000e+00 : f32
      %12 = vector.broadcast %cst_9 : f32 to vector<32x128xf32>
      %c0_10 = arith.constant 0 : index
      %c0_11 = arith.constant 0 : index
      %13 = vector.load %arg7[%c0_10, %c0_11] : memref<32x128xf32, #tpu.memory_space<vmem>>, vector<32x128xf32>
      tpu.vector_store %arg7[%c0_10, %c0_11], %12 {strides = array<i32>} : memref<32x128xf32, #tpu.memory_space<vmem>>, vector<32x128xf32>,
    } else {
    }
    %c0 = arith.constant 0 : index
    %c0_1 = arith.constant 0 : index
    %3 = vector.load %arg7[%c0, %c0_1] : memref<32x128xf32, #tpu.memory_space<vmem>>, vector<32x128xf32>
    %c0_2 = arith.constant 0 : index
    %c0_3 = arith.constant 0 : index
    %4 = vector.load %arg3[%c0_2, %c0_3] : memref<32x384xbf16, #tpu.memory_space<vmem>>, vector<32x384xbf16>
    %c0_4 = arith.constant 0 : index
    %c0_5 = arith.constant 0 : index
    %5 = vector.load %arg4[%c0_4, %c0_5] : memref<384x128xbf16, #tpu.memory_space<vmem>>, vector<384x128xbf16>
    %cst = arith.constant dense<0.000000e+00> : vector<32x128xf32>
    %6 = tpu.matmul %4, %5, %cst {dimension_numbers = #tpu.dot_dimension_numbers<[1], [0], [0], [1], [0, 0, 1, 1], [], []>} : vector<32x384xbf16>, vector<384x128xbf16>, vector<32x128xf32> -> vector<32x128xf32>
    %7 = arith.addf %3, %6 : vector<32x128xf32>
    %c0_6 = arith.constant 0 : index
    %c0_7 = arith.constant 0 : index
    %8 = vector.load %arg7[%c0_6, %c0_7] : memref<32x128xf32, #tpu.memory_space<vmem>>, vector<32x128xf32>
    tpu.vector_store %arg7[%c0_6, %c0_7], %7 {strides = array<i32>} : memref<32x128xf32, #tpu.memory_space<vmem>>, vector<32x128xf32>,
    %c2_i32 = arith.constant 2 : i32
    %9 = arith.cmpi eq, %arg2, %c2_i32 : i32
    %10 = arith.extui %9 : i1 to i32
    %c0_i32_8 = arith.constant 0 : i32
    %11 = arith.cmpi ne, %10, %c0_i32_8 : i32
    scf.if %11 {
      %c0_9 = arith.constant 0 : index
      %c0_10 = arith.constant 0 : index
      %12 = vector.load %arg7[%c0_9, %c0_10] : memref<32x128xf32, #tpu.memory_space<vmem>>, vector<32x128xf32>
      %c0_11 = arith.constant 0 : index
      %c0_12 = arith.constant 0 : index
      %13 = vector.load %arg5[%c0_11, %c0_12] : memref<1x128xf32, #tpu.memory_space<vmem>>, vector<1x128xf32>
      %14 = vector.broadcast %13 : vector<1x128xf32> to vector<32x128xf32>
      %15 = arith.addf %12, %14 : vector<32x128xf32>
      %cst_13 = arith.constant 0.000000e+00 : f32
      %16 = vector.broadcast %cst_13 : f32 to vector<32x128xf32>
      %17 = arith.maximumf %15, %16 : vector<32x128xf32>
      %18 = arith.truncf %17 : vector<32x128xf32> to vector<32x128xbf16>
      %c0_14 = arith.constant 0 : index
      %c0_15 = arith.constant 0 : index
      %19 = vector.load %arg6[%c0_14, %c0_15] : memref<32x128xbf16, #tpu.memory_space<vmem>>, vector<32x128xbf16>
      tpu.vector_store %arg6[%c0_14, %c0_15], %18 {strides = array<i32>} : memref<32x128xbf16, #tpu.memory_space<vmem>>, vector<32x128xbf16>,
    } else {
    }
    return
  }
  func.func @transform_0(%arg0: i32, %arg1: i32, %arg2: i32) -> (i32, i32) {
    %c0_i32 = arith.constant 0 : i32
    return %arg0, %arg2 : i32, i32
  }
  func.func @transform_1(%arg0: i32, %arg1: i32, %arg2: i32) -> (i32, i32) {
    %c0_i32 = arith.constant 0 : i32
    return %arg2, %arg1 : i32, i32
  }
  func.func @transform_2(%arg0: i32, %arg1: i32, %arg2: i32) -> (i32, i32) {
    %c0_i32 = arith.constant 0 : i32
    %c0_i32_0 = arith.constant 0 : i32
    return %c0_i32, %arg1 : i32, i32
  }
  func.func @transform_3(%arg0: i32, %arg1: i32, %arg2: i32) -> (i32, i32) {
    %c0_i32 = arith.constant 0 : i32
    return %arg0, %arg1 : i32, i32
  }
}

module attributes {stable_mosaic.version = 11 : i64} {
  func.func @_gemm_bn_res_relu_kernel(%arg0: i32, %arg1: i32, %arg2: i32, %arg3: memref<32x384xbf16, #tpu.memory_space<vmem>>, %arg4: memref<384x128xbf16, #tpu.memory_space<vmem>>, %arg5: memref<1x128xf32, #tpu.memory_space<vmem>>, %arg6: memref<32x128xbf16, #tpu.memory_space<vmem>>, %arg7: memref<32x128xbf16, #tpu.memory_space<vmem>>, %arg8: memref<32x128xf32, #tpu.memory_space<vmem>>) attributes {dimension_semantics = [#tpu.dimension_semantics<parallel>, #tpu.dimension_semantics<parallel>, #tpu.dimension_semantics<arbitrary>], iteration_bounds = array<i64: 1, 1, 3>, scalar_prefetch = 0 : i64, scratch_operands = 1 : i64, tpu.core_type = #tpu.core_type<tc>, window_params = [{transform_indices = @transform_0, window_bounds = array<i64: 32, 384>}, {transform_indices = @transform_1, window_bounds = array<i64: 384, 128>}, {transform_indices = @transform_2, window_bounds = array<i64: 1, 128>}, {transform_indices = @transform_3, window_bounds = array<i64: 32, 128>}, {transform_indices = @transform_4, window_bounds = array<i64: 32, 128>}]} {
    %c0_i32 = arith.constant 0 : i32
    %0 = arith.cmpi eq, %arg2, %c0_i32 : i32
    %1 = arith.extui %0 : i1 to i32
    %c0_i32_0 = arith.constant 0 : i32
    %2 = arith.cmpi ne, %1, %c0_i32_0 : i32
    scf.if %2 {
      %cst_9 = arith.constant 0.000000e+00 : f32
      %12 = vector.broadcast %cst_9 : f32 to vector<32x128xf32>
      %c0_10 = arith.constant 0 : index
      %c0_11 = arith.constant 0 : index
      %13 = vector.load %arg8[%c0_10, %c0_11] : memref<32x128xf32, #tpu.memory_space<vmem>>, vector<32x128xf32>
      tpu.vector_store %arg8[%c0_10, %c0_11], %12 {strides = array<i32>} : memref<32x128xf32, #tpu.memory_space<vmem>>, vector<32x128xf32>,
    } else {
    }
    %c0 = arith.constant 0 : index
    %c0_1 = arith.constant 0 : index
    %3 = vector.load %arg8[%c0, %c0_1] : memref<32x128xf32, #tpu.memory_space<vmem>>, vector<32x128xf32>
    %c0_2 = arith.constant 0 : index
    %c0_3 = arith.constant 0 : index
    %4 = vector.load %arg3[%c0_2, %c0_3] : memref<32x384xbf16, #tpu.memory_space<vmem>>, vector<32x384xbf16>
    %c0_4 = arith.constant 0 : index
    %c0_5 = arith.constant 0 : index
    %5 = vector.load %arg4[%c0_4, %c0_5] : memref<384x128xbf16, #tpu.memory_space<vmem>>, vector<384x128xbf16>
    %cst = arith.constant dense<0.000000e+00> : vector<32x128xf32>
    %6 = tpu.matmul %4, %5, %cst {dimension_numbers = #tpu.dot_dimension_numbers<[1], [0], [0], [1], [0, 0, 1, 1], [], []>} : vector<32x384xbf16>, vector<384x128xbf16>, vector<32x128xf32> -> vector<32x128xf32>
    %7 = arith.addf %3, %6 : vector<32x128xf32>
    %c0_6 = arith.constant 0 : index
    %c0_7 = arith.constant 0 : index
    %8 = vector.load %arg8[%c0_6, %c0_7] : memref<32x128xf32, #tpu.memory_space<vmem>>, vector<32x128xf32>
    tpu.vector_store %arg8[%c0_6, %c0_7], %7 {strides = array<i32>} : memref<32x128xf32, #tpu.memory_space<vmem>>, vector<32x128xf32>,
    %c2_i32 = arith.constant 2 : i32
    %9 = arith.cmpi eq, %arg2, %c2_i32 : i32
    %10 = arith.extui %9 : i1 to i32
    %c0_i32_8 = arith.constant 0 : i32
    %11 = arith.cmpi ne, %10, %c0_i32_8 : i32
    scf.if %11 {
      %c0_9 = arith.constant 0 : index
      %c0_10 = arith.constant 0 : index
      %12 = vector.load %arg8[%c0_9, %c0_10] : memref<32x128xf32, #tpu.memory_space<vmem>>, vector<32x128xf32>
      %c0_11 = arith.constant 0 : index
      %c0_12 = arith.constant 0 : index
      %13 = vector.load %arg5[%c0_11, %c0_12] : memref<1x128xf32, #tpu.memory_space<vmem>>, vector<1x128xf32>
      %14 = vector.broadcast %13 : vector<1x128xf32> to vector<32x128xf32>
      %15 = arith.addf %12, %14 : vector<32x128xf32>
      %c0_13 = arith.constant 0 : index
      %c0_14 = arith.constant 0 : index
      %16 = vector.load %arg6[%c0_13, %c0_14] : memref<32x128xbf16, #tpu.memory_space<vmem>>, vector<32x128xbf16>
      %17 = arith.extf %16 : vector<32x128xbf16> to vector<32x128xf32>
      %18 = arith.addf %15, %17 : vector<32x128xf32>
      %cst_15 = arith.constant 0.000000e+00 : f32
      %19 = vector.broadcast %cst_15 : f32 to vector<32x128xf32>
      %20 = arith.maximumf %18, %19 : vector<32x128xf32>
      %21 = arith.truncf %20 : vector<32x128xf32> to vector<32x128xbf16>
      %c0_16 = arith.constant 0 : index
      %c0_17 = arith.constant 0 : index
      %22 = vector.load %arg7[%c0_16, %c0_17] : memref<32x128xbf16, #tpu.memory_space<vmem>>, vector<32x128xbf16>
      tpu.vector_store %arg7[%c0_16, %c0_17], %21 {strides = array<i32>} : memref<32x128xbf16, #tpu.memory_space<vmem>>, vector<32x128xbf16>,
    } else {
    }
    return
  }
  func.func @transform_0(%arg0: i32, %arg1: i32, %arg2: i32) -> (i32, i32) {
    %c0_i32 = arith.constant 0 : i32
    return %arg0, %arg2 : i32, i32
  }
  func.func @transform_1(%arg0: i32, %arg1: i32, %arg2: i32) -> (i32, i32) {
    %c0_i32 = arith.constant 0 : i32
    return %arg2, %arg1 : i32, i32
  }
  func.func @transform_2(%arg0: i32, %arg1: i32, %arg2: i32) -> (i32, i32) {
    %c0_i32 = arith.constant 0 : i32
    %c0_i32_0 = arith.constant 0 : i32
    return %c0_i32, %arg1 : i32, i32
  }
  func.func @transform_3(%arg0: i32, %arg1: i32, %arg2: i32) -> (i32, i32) {
    %c0_i32 = arith.constant 0 : i32
    return %arg0, %arg1 : i32, i32
  }
  func.func @transform_4(%arg0: i32, %arg1: i32, %arg2: i32) -> (i32, i32) {
    %c0_i32 = arith.constant 0 : i32
    return %arg0, %arg1 : i32, i32
  }
}

module attributes {stable_mosaic.version = 11 : i64} {
  func.func @_gemm_bn_kernel(%arg0: i32, %arg1: i32, %arg2: i32, %arg3: memref<32x384xbf16, #tpu.memory_space<vmem>>, %arg4: memref<384x128xbf16, #tpu.memory_space<vmem>>, %arg5: memref<1x128xf32, #tpu.memory_space<vmem>>, %arg6: memref<32x128xbf16, #tpu.memory_space<vmem>>, %arg7: memref<32x128xf32, #tpu.memory_space<vmem>>) attributes {dimension_semantics = [#tpu.dimension_semantics<parallel>, #tpu.dimension_semantics<parallel>, #tpu.dimension_semantics<arbitrary>], iteration_bounds = array<i64: 1, 1, 3>, scalar_prefetch = 0 : i64, scratch_operands = 1 : i64, tpu.core_type = #tpu.core_type<tc>, window_params = [{transform_indices = @transform_0, window_bounds = array<i64: 32, 384>}, {transform_indices = @transform_1, window_bounds = array<i64: 384, 128>}, {transform_indices = @transform_2, window_bounds = array<i64: 1, 128>}, {transform_indices = @transform_3, window_bounds = array<i64: 32, 128>}]} {
    %c0_i32 = arith.constant 0 : i32
    %0 = arith.cmpi eq, %arg2, %c0_i32 : i32
    %1 = arith.extui %0 : i1 to i32
    %c0_i32_0 = arith.constant 0 : i32
    %2 = arith.cmpi ne, %1, %c0_i32_0 : i32
    scf.if %2 {
      %cst_9 = arith.constant 0.000000e+00 : f32
      %12 = vector.broadcast %cst_9 : f32 to vector<32x128xf32>
      %c0_10 = arith.constant 0 : index
      %c0_11 = arith.constant 0 : index
      %13 = vector.load %arg7[%c0_10, %c0_11] : memref<32x128xf32, #tpu.memory_space<vmem>>, vector<32x128xf32>
      tpu.vector_store %arg7[%c0_10, %c0_11], %12 {strides = array<i32>} : memref<32x128xf32, #tpu.memory_space<vmem>>, vector<32x128xf32>,
    } else {
    }
    %c0 = arith.constant 0 : index
    %c0_1 = arith.constant 0 : index
    %3 = vector.load %arg7[%c0, %c0_1] : memref<32x128xf32, #tpu.memory_space<vmem>>, vector<32x128xf32>
    %c0_2 = arith.constant 0 : index
    %c0_3 = arith.constant 0 : index
    %4 = vector.load %arg3[%c0_2, %c0_3] : memref<32x384xbf16, #tpu.memory_space<vmem>>, vector<32x384xbf16>
    %c0_4 = arith.constant 0 : index
    %c0_5 = arith.constant 0 : index
    %5 = vector.load %arg4[%c0_4, %c0_5] : memref<384x128xbf16, #tpu.memory_space<vmem>>, vector<384x128xbf16>
    %cst = arith.constant dense<0.000000e+00> : vector<32x128xf32>
    %6 = tpu.matmul %4, %5, %cst {dimension_numbers = #tpu.dot_dimension_numbers<[1], [0], [0], [1], [0, 0, 1, 1], [], []>} : vector<32x384xbf16>, vector<384x128xbf16>, vector<32x128xf32> -> vector<32x128xf32>
    %7 = arith.addf %3, %6 : vector<32x128xf32>
    %c0_6 = arith.constant 0 : index
    %c0_7 = arith.constant 0 : index
    %8 = vector.load %arg7[%c0_6, %c0_7] : memref<32x128xf32, #tpu.memory_space<vmem>>, vector<32x128xf32>
    tpu.vector_store %arg7[%c0_6, %c0_7], %7 {strides = array<i32>} : memref<32x128xf32, #tpu.memory_space<vmem>>, vector<32x128xf32>,
    %c2_i32 = arith.constant 2 : i32
    %9 = arith.cmpi eq, %arg2, %c2_i32 : i32
    %10 = arith.extui %9 : i1 to i32
    %c0_i32_8 = arith.constant 0 : i32
    %11 = arith.cmpi ne, %10, %c0_i32_8 : i32
    scf.if %11 {
      %c0_9 = arith.constant 0 : index
      %c0_10 = arith.constant 0 : index
      %12 = vector.load %arg7[%c0_9, %c0_10] : memref<32x128xf32, #tpu.memory_space<vmem>>, vector<32x128xf32>
      %c0_11 = arith.constant 0 : index
      %c0_12 = arith.constant 0 : index
      %13 = vector.load %arg5[%c0_11, %c0_12] : memref<1x128xf32, #tpu.memory_space<vmem>>, vector<1x128xf32>
      %14 = vector.broadcast %13 : vector<1x128xf32> to vector<32x128xf32>
      %15 = arith.addf %12, %14 : vector<32x128xf32>
      %cst_13 = arith.constant 0.000000e+00 : f32
      %16 = vector.broadcast %cst_13 : f32 to vector<32x128xf32>
      %17 = arith.maximumf %15, %16 : vector<32x128xf32>
      %18 = arith.truncf %17 : vector<32x128xf32> to vector<32x128xbf16>
      %c0_14 = arith.constant 0 : index
      %c0_15 = arith.constant 0 : index
      %19 = vector.load %arg6[%c0_14, %c0_15] : memref<32x128xbf16, #tpu.memory_space<vmem>>, vector<32x128xbf16>
      tpu.vector_store %arg6[%c0_14, %c0_15], %18 {strides = array<i32>} : memref<32x128xbf16, #tpu.memory_space<vmem>>, vector<32x128xbf16>,
    } else {
    }
    return
  }
  func.func @transform_0(%arg0: i32, %arg1: i32, %arg2: i32) -> (i32, i32) {
    %c0_i32 = arith.constant 0 : i32
    return %arg0, %arg2 : i32, i32
  }
  func.func @transform_1(%arg0: i32, %arg1: i32, %arg2: i32) -> (i32, i32) {
    %c0_i32 = arith.constant 0 : i32
    return %arg2, %arg1 : i32, i32
  }
  func.func @transform_2(%arg0: i32, %arg1: i32, %arg2: i32) -> (i32, i32) {
    %c0_i32 = arith.constant 0 : i32
    %c0_i32_0 = arith.constant 0 : i32
    return %c0_i32, %arg1 : i32, i32
  }
  func.func @transform_3(%arg0: i32, %arg1: i32, %arg2: i32) -> (i32, i32) {
    %c0_i32 = arith.constant 0 : i32
    return %arg0, %arg1 : i32, i32
  }
}

module attributes {stable_mosaic.version = 11 : i64} {
  func.func @_gemm_bn_kernel(%arg0: i32, %arg1: i32, %arg2: i32, %arg3: memref<8x384xbf16, #tpu.memory_space<vmem>>, %arg4: memref<384x256xbf16, #tpu.memory_space<vmem>>, %arg5: memref<1x256xf32, #tpu.memory_space<vmem>>, %arg6: memref<8x256xbf16, #tpu.memory_space<vmem>>, %arg7: memref<8x256xf32, #tpu.memory_space<vmem>>) attributes {dimension_semantics = [#tpu.dimension_semantics<parallel>, #tpu.dimension_semantics<parallel>, #tpu.dimension_semantics<arbitrary>], iteration_bounds = array<i64: 1, 1, 3>, scalar_prefetch = 0 : i64, scratch_operands = 1 : i64, tpu.core_type = #tpu.core_type<tc>, window_params = [{transform_indices = @transform_0, window_bounds = array<i64: 8, 384>}, {transform_indices = @transform_1, window_bounds = array<i64: 384, 256>}, {transform_indices = @transform_2, window_bounds = array<i64: 1, 256>}, {transform_indices = @transform_3, window_bounds = array<i64: 8, 256>}]} {
    %c0_i32 = arith.constant 0 : i32
    %0 = arith.cmpi eq, %arg2, %c0_i32 : i32
    %1 = arith.extui %0 : i1 to i32
    %c0_i32_0 = arith.constant 0 : i32
    %2 = arith.cmpi ne, %1, %c0_i32_0 : i32
    scf.if %2 {
      %cst_9 = arith.constant 0.000000e+00 : f32
      %12 = vector.broadcast %cst_9 : f32 to vector<8x256xf32>
      %c0_10 = arith.constant 0 : index
      %c0_11 = arith.constant 0 : index
      %13 = vector.load %arg7[%c0_10, %c0_11] : memref<8x256xf32, #tpu.memory_space<vmem>>, vector<8x256xf32>
      tpu.vector_store %arg7[%c0_10, %c0_11], %12 {strides = array<i32>} : memref<8x256xf32, #tpu.memory_space<vmem>>, vector<8x256xf32>,
    } else {
    }
    %c0 = arith.constant 0 : index
    %c0_1 = arith.constant 0 : index
    %3 = vector.load %arg7[%c0, %c0_1] : memref<8x256xf32, #tpu.memory_space<vmem>>, vector<8x256xf32>
    %c0_2 = arith.constant 0 : index
    %c0_3 = arith.constant 0 : index
    %4 = vector.load %arg3[%c0_2, %c0_3] : memref<8x384xbf16, #tpu.memory_space<vmem>>, vector<8x384xbf16>
    %c0_4 = arith.constant 0 : index
    %c0_5 = arith.constant 0 : index
    %5 = vector.load %arg4[%c0_4, %c0_5] : memref<384x256xbf16, #tpu.memory_space<vmem>>, vector<384x256xbf16>
    %cst = arith.constant dense<0.000000e+00> : vector<8x256xf32>
    %6 = tpu.matmul %4, %5, %cst {dimension_numbers = #tpu.dot_dimension_numbers<[1], [0], [0], [1], [0, 0, 1, 1], [], []>} : vector<8x384xbf16>, vector<384x256xbf16>, vector<8x256xf32> -> vector<8x256xf32>
    %7 = arith.addf %3, %6 : vector<8x256xf32>
    %c0_6 = arith.constant 0 : index
    %c0_7 = arith.constant 0 : index
    %8 = vector.load %arg7[%c0_6, %c0_7] : memref<8x256xf32, #tpu.memory_space<vmem>>, vector<8x256xf32>
    tpu.vector_store %arg7[%c0_6, %c0_7], %7 {strides = array<i32>} : memref<8x256xf32, #tpu.memory_space<vmem>>, vector<8x256xf32>,
    %c2_i32 = arith.constant 2 : i32
    %9 = arith.cmpi eq, %arg2, %c2_i32 : i32
    %10 = arith.extui %9 : i1 to i32
    %c0_i32_8 = arith.constant 0 : i32
    %11 = arith.cmpi ne, %10, %c0_i32_8 : i32
    scf.if %11 {
      %c0_9 = arith.constant 0 : index
      %c0_10 = arith.constant 0 : index
      %12 = vector.load %arg7[%c0_9, %c0_10] : memref<8x256xf32, #tpu.memory_space<vmem>>, vector<8x256xf32>
      %c0_11 = arith.constant 0 : index
      %c0_12 = arith.constant 0 : index
      %13 = vector.load %arg5[%c0_11, %c0_12] : memref<1x256xf32, #tpu.memory_space<vmem>>, vector<1x256xf32>
      %14 = vector.broadcast %13 : vector<1x256xf32> to vector<8x256xf32>
      %15 = arith.addf %12, %14 : vector<8x256xf32>
      %cst_13 = arith.constant 0.000000e+00 : f32
      %16 = vector.broadcast %cst_13 : f32 to vector<8x256xf32>
      %17 = arith.maximumf %15, %16 : vector<8x256xf32>
      %18 = arith.truncf %17 : vector<8x256xf32> to vector<8x256xbf16>
      %c0_14 = arith.constant 0 : index
      %c0_15 = arith.constant 0 : index
      %19 = vector.load %arg6[%c0_14, %c0_15] : memref<8x256xbf16, #tpu.memory_space<vmem>>, vector<8x256xbf16>
      tpu.vector_store %arg6[%c0_14, %c0_15], %18 {strides = array<i32>} : memref<8x256xbf16, #tpu.memory_space<vmem>>, vector<8x256xbf16>,
    } else {
    }
    return
  }
  func.func @transform_0(%arg0: i32, %arg1: i32, %arg2: i32) -> (i32, i32) {
    %c0_i32 = arith.constant 0 : i32
    return %arg0, %arg2 : i32, i32
  }
  func.func @transform_1(%arg0: i32, %arg1: i32, %arg2: i32) -> (i32, i32) {
    %c0_i32 = arith.constant 0 : i32
    return %arg2, %arg1 : i32, i32
  }
  func.func @transform_2(%arg0: i32, %arg1: i32, %arg2: i32) -> (i32, i32) {
    %c0_i32 = arith.constant 0 : i32
    %c0_i32_0 = arith.constant 0 : i32
    return %c0_i32, %arg1 : i32, i32
  }
  func.func @transform_3(%arg0: i32, %arg1: i32, %arg2: i32) -> (i32, i32) {
    %c0_i32 = arith.constant 0 : i32
    return %arg0, %arg1 : i32, i32
  }
}

module attributes {stable_mosaic.version = 11 : i64} {
  func.func @_gemm_bn_kernel(%arg0: i32, %arg1: i32, %arg2: i32, %arg3: memref<8x128xbf16, #tpu.memory_space<vmem>>, %arg4: memref<128x256xbf16, #tpu.memory_space<vmem>>, %arg5: memref<1x256xf32, #tpu.memory_space<vmem>>, %arg6: memref<8x256xbf16, #tpu.memory_space<vmem>>, %arg7: memref<8x256xf32, #tpu.memory_space<vmem>>) attributes {dimension_semantics = [#tpu.dimension_semantics<parallel>, #tpu.dimension_semantics<parallel>, #tpu.dimension_semantics<arbitrary>], iteration_bounds = array<i64: 1, 1, 1>, scalar_prefetch = 0 : i64, scratch_operands = 1 : i64, tpu.core_type = #tpu.core_type<tc>, window_params = [{transform_indices = @transform_0, window_bounds = array<i64: 8, 128>}, {transform_indices = @transform_1, window_bounds = array<i64: 128, 256>}, {transform_indices = @transform_2, window_bounds = array<i64: 1, 256>}, {transform_indices = @transform_3, window_bounds = array<i64: 8, 256>}]} {
    %c0_i32 = arith.constant 0 : i32
    %0 = arith.cmpi eq, %arg2, %c0_i32 : i32
    %1 = arith.extui %0 : i1 to i32
    %c0_i32_0 = arith.constant 0 : i32
    %2 = arith.cmpi ne, %1, %c0_i32_0 : i32
    scf.if %2 {
      %cst_10 = arith.constant 0.000000e+00 : f32
      %12 = vector.broadcast %cst_10 : f32 to vector<8x256xf32>
      %c0_11 = arith.constant 0 : index
      %c0_12 = arith.constant 0 : index
      %13 = vector.load %arg7[%c0_11, %c0_12] : memref<8x256xf32, #tpu.memory_space<vmem>>, vector<8x256xf32>
      tpu.vector_store %arg7[%c0_11, %c0_12], %12 {strides = array<i32>} : memref<8x256xf32, #tpu.memory_space<vmem>>, vector<8x256xf32>,
    } else {
    }
    %c0 = arith.constant 0 : index
    %c0_1 = arith.constant 0 : index
    %3 = vector.load %arg7[%c0, %c0_1] : memref<8x256xf32, #tpu.memory_space<vmem>>, vector<8x256xf32>
    %c0_2 = arith.constant 0 : index
    %c0_3 = arith.constant 0 : index
    %4 = vector.load %arg3[%c0_2, %c0_3] : memref<8x128xbf16, #tpu.memory_space<vmem>>, vector<8x128xbf16>
    %c0_4 = arith.constant 0 : index
    %c0_5 = arith.constant 0 : index
    %5 = vector.load %arg4[%c0_4, %c0_5] : memref<128x256xbf16, #tpu.memory_space<vmem>>, vector<128x256xbf16>
    %cst = arith.constant dense<0.000000e+00> : vector<8x256xf32>
    %6 = tpu.matmul %4, %5, %cst {dimension_numbers = #tpu.dot_dimension_numbers<[1], [0], [0], [1], [0, 0, 1, 1], [], []>} : vector<8x128xbf16>, vector<128x256xbf16>, vector<8x256xf32> -> vector<8x256xf32>
    %7 = arith.addf %3, %6 : vector<8x256xf32>
    %c0_6 = arith.constant 0 : index
    %c0_7 = arith.constant 0 : index
    %8 = vector.load %arg7[%c0_6, %c0_7] : memref<8x256xf32, #tpu.memory_space<vmem>>, vector<8x256xf32>
    tpu.vector_store %arg7[%c0_6, %c0_7], %7 {strides = array<i32>} : memref<8x256xf32, #tpu.memory_space<vmem>>, vector<8x256xf32>,
    %c0_i32_8 = arith.constant 0 : i32
    %9 = arith.cmpi eq, %arg2, %c0_i32_8 : i32
    %10 = arith.extui %9 : i1 to i32
    %c0_i32_9 = arith.constant 0 : i32
    %11 = arith.cmpi ne, %10, %c0_i32_9 : i32
    scf.if %11 {
      %c0_10 = arith.constant 0 : index
      %c0_11 = arith.constant 0 : index
      %12 = vector.load %arg7[%c0_10, %c0_11] : memref<8x256xf32, #tpu.memory_space<vmem>>, vector<8x256xf32>
      %c0_12 = arith.constant 0 : index
      %c0_13 = arith.constant 0 : index
      %13 = vector.load %arg5[%c0_12, %c0_13] : memref<1x256xf32, #tpu.memory_space<vmem>>, vector<1x256xf32>
      %14 = vector.broadcast %13 : vector<1x256xf32> to vector<8x256xf32>
      %15 = arith.addf %12, %14 : vector<8x256xf32>
      %16 = arith.truncf %15 : vector<8x256xf32> to vector<8x256xbf16>
      %c0_14 = arith.constant 0 : index
      %c0_15 = arith.constant 0 : index
      %17 = vector.load %arg6[%c0_14, %c0_15] : memref<8x256xbf16, #tpu.memory_space<vmem>>, vector<8x256xbf16>
      tpu.vector_store %arg6[%c0_14, %c0_15], %16 {strides = array<i32>} : memref<8x256xbf16, #tpu.memory_space<vmem>>, vector<8x256xbf16>,
    } else {
    }
    return
  }
  func.func @transform_0(%arg0: i32, %arg1: i32, %arg2: i32) -> (i32, i32) {
    %c0_i32 = arith.constant 0 : i32
    return %arg0, %arg2 : i32, i32
  }
  func.func @transform_1(%arg0: i32, %arg1: i32, %arg2: i32) -> (i32, i32) {
    %c0_i32 = arith.constant 0 : i32
    return %arg2, %arg1 : i32, i32
  }
  func.func @transform_2(%arg0: i32, %arg1: i32, %arg2: i32) -> (i32, i32) {
    %c0_i32 = arith.constant 0 : i32
    %c0_i32_0 = arith.constant 0 : i32
    return %c0_i32, %arg1 : i32, i32
  }
  func.func @transform_3(%arg0: i32, %arg1: i32, %arg2: i32) -> (i32, i32) {
    %c0_i32 = arith.constant 0 : i32
    return %arg0, %arg1 : i32, i32
  }
}

module attributes {stable_mosaic.version = 11 : i64} {
  func.func @_gemm_bn_kernel(%arg0: i32, %arg1: i32, %arg2: i32, %arg3: memref<8x384xbf16, #tpu.memory_space<vmem>>, %arg4: memref<384x256xbf16, #tpu.memory_space<vmem>>, %arg5: memref<1x256xf32, #tpu.memory_space<vmem>>, %arg6: memref<8x256xbf16, #tpu.memory_space<vmem>>, %arg7: memref<8x256xf32, #tpu.memory_space<vmem>>) attributes {dimension_semantics = [#tpu.dimension_semantics<parallel>, #tpu.dimension_semantics<parallel>, #tpu.dimension_semantics<arbitrary>], iteration_bounds = array<i64: 1, 1, 6>, scalar_prefetch = 0 : i64, scratch_operands = 1 : i64, tpu.core_type = #tpu.core_type<tc>, window_params = [{transform_indices = @transform_0, window_bounds = array<i64: 8, 384>}, {transform_indices = @transform_1, window_bounds = array<i64: 384, 256>}, {transform_indices = @transform_2, window_bounds = array<i64: 1, 256>}, {transform_indices = @transform_3, window_bounds = array<i64: 8, 256>}]} {
    %c0_i32 = arith.constant 0 : i32
    %0 = arith.cmpi eq, %arg2, %c0_i32 : i32
    %1 = arith.extui %0 : i1 to i32
    %c0_i32_0 = arith.constant 0 : i32
    %2 = arith.cmpi ne, %1, %c0_i32_0 : i32
    scf.if %2 {
      %cst_9 = arith.constant 0.000000e+00 : f32
      %12 = vector.broadcast %cst_9 : f32 to vector<8x256xf32>
      %c0_10 = arith.constant 0 : index
      %c0_11 = arith.constant 0 : index
      %13 = vector.load %arg7[%c0_10, %c0_11] : memref<8x256xf32, #tpu.memory_space<vmem>>, vector<8x256xf32>
      tpu.vector_store %arg7[%c0_10, %c0_11], %12 {strides = array<i32>} : memref<8x256xf32, #tpu.memory_space<vmem>>, vector<8x256xf32>,
    } else {
    }
    %c0 = arith.constant 0 : index
    %c0_1 = arith.constant 0 : index
    %3 = vector.load %arg7[%c0, %c0_1] : memref<8x256xf32, #tpu.memory_space<vmem>>, vector<8x256xf32>
    %c0_2 = arith.constant 0 : index
    %c0_3 = arith.constant 0 : index
    %4 = vector.load %arg3[%c0_2, %c0_3] : memref<8x384xbf16, #tpu.memory_space<vmem>>, vector<8x384xbf16>
    %c0_4 = arith.constant 0 : index
    %c0_5 = arith.constant 0 : index
    %5 = vector.load %arg4[%c0_4, %c0_5] : memref<384x256xbf16, #tpu.memory_space<vmem>>, vector<384x256xbf16>
    %cst = arith.constant dense<0.000000e+00> : vector<8x256xf32>
    %6 = tpu.matmul %4, %5, %cst {dimension_numbers = #tpu.dot_dimension_numbers<[1], [0], [0], [1], [0, 0, 1, 1], [], []>} : vector<8x384xbf16>, vector<384x256xbf16>, vector<8x256xf32> -> vector<8x256xf32>
    %7 = arith.addf %3, %6 : vector<8x256xf32>
    %c0_6 = arith.constant 0 : index
    %c0_7 = arith.constant 0 : index
    %8 = vector.load %arg7[%c0_6, %c0_7] : memref<8x256xf32, #tpu.memory_space<vmem>>, vector<8x256xf32>
    tpu.vector_store %arg7[%c0_6, %c0_7], %7 {strides = array<i32>} : memref<8x256xf32, #tpu.memory_space<vmem>>, vector<8x256xf32>,
    %c5_i32 = arith.constant 5 : i32
    %9 = arith.cmpi eq, %arg2, %c5_i32 : i32
    %10 = arith.extui %9 : i1 to i32
    %c0_i32_8 = arith.constant 0 : i32
    %11 = arith.cmpi ne, %10, %c0_i32_8 : i32
    scf.if %11 {
      %c0_9 = arith.constant 0 : index
      %c0_10 = arith.constant 0 : index
      %12 = vector.load %arg7[%c0_9, %c0_10] : memref<8x256xf32, #tpu.memory_space<vmem>>, vector<8x256xf32>
      %c0_11 = arith.constant 0 : index
      %c0_12 = arith.constant 0 : index
      %13 = vector.load %arg5[%c0_11, %c0_12] : memref<1x256xf32, #tpu.memory_space<vmem>>, vector<1x256xf32>
      %14 = vector.broadcast %13 : vector<1x256xf32> to vector<8x256xf32>
      %15 = arith.addf %12, %14 : vector<8x256xf32>
      %cst_13 = arith.constant 0.000000e+00 : f32
      %16 = vector.broadcast %cst_13 : f32 to vector<8x256xf32>
      %17 = arith.maximumf %15, %16 : vector<8x256xf32>
      %18 = arith.truncf %17 : vector<8x256xf32> to vector<8x256xbf16>
      %c0_14 = arith.constant 0 : index
      %c0_15 = arith.constant 0 : index
      %19 = vector.load %arg6[%c0_14, %c0_15] : memref<8x256xbf16, #tpu.memory_space<vmem>>, vector<8x256xbf16>
      tpu.vector_store %arg6[%c0_14, %c0_15], %18 {strides = array<i32>} : memref<8x256xbf16, #tpu.memory_space<vmem>>, vector<8x256xbf16>,
    } else {
    }
    return
  }
  func.func @transform_0(%arg0: i32, %arg1: i32, %arg2: i32) -> (i32, i32) {
    %c0_i32 = arith.constant 0 : i32
    return %arg0, %arg2 : i32, i32
  }
  func.func @transform_1(%arg0: i32, %arg1: i32, %arg2: i32) -> (i32, i32) {
    %c0_i32 = arith.constant 0 : i32
    return %arg2, %arg1 : i32, i32
  }
  func.func @transform_2(%arg0: i32, %arg1: i32, %arg2: i32) -> (i32, i32) {
    %c0_i32 = arith.constant 0 : i32
    %c0_i32_0 = arith.constant 0 : i32
    return %c0_i32, %arg1 : i32, i32
  }
  func.func @transform_3(%arg0: i32, %arg1: i32, %arg2: i32) -> (i32, i32) {
    %c0_i32 = arith.constant 0 : i32
    return %arg0, %arg1 : i32, i32
  }
}

module attributes {stable_mosaic.version = 11 : i64} {
  func.func @_gemm_bn_res_relu_kernel(%arg0: i32, %arg1: i32, %arg2: i32, %arg3: memref<8x384xbf16, #tpu.memory_space<vmem>>, %arg4: memref<384x256xbf16, #tpu.memory_space<vmem>>, %arg5: memref<1x256xf32, #tpu.memory_space<vmem>>, %arg6: memref<8x256xbf16, #tpu.memory_space<vmem>>, %arg7: memref<8x256xbf16, #tpu.memory_space<vmem>>, %arg8: memref<8x256xf32, #tpu.memory_space<vmem>>) attributes {dimension_semantics = [#tpu.dimension_semantics<parallel>, #tpu.dimension_semantics<parallel>, #tpu.dimension_semantics<arbitrary>], iteration_bounds = array<i64: 1, 1, 6>, scalar_prefetch = 0 : i64, scratch_operands = 1 : i64, tpu.core_type = #tpu.core_type<tc>, window_params = [{transform_indices = @transform_0, window_bounds = array<i64: 8, 384>}, {transform_indices = @transform_1, window_bounds = array<i64: 384, 256>}, {transform_indices = @transform_2, window_bounds = array<i64: 1, 256>}, {transform_indices = @transform_3, window_bounds = array<i64: 8, 256>}, {transform_indices = @transform_4, window_bounds = array<i64: 8, 256>}]} {
    %c0_i32 = arith.constant 0 : i32
    %0 = arith.cmpi eq, %arg2, %c0_i32 : i32
    %1 = arith.extui %0 : i1 to i32
    %c0_i32_0 = arith.constant 0 : i32
    %2 = arith.cmpi ne, %1, %c0_i32_0 : i32
    scf.if %2 {
      %cst_9 = arith.constant 0.000000e+00 : f32
      %12 = vector.broadcast %cst_9 : f32 to vector<8x256xf32>
      %c0_10 = arith.constant 0 : index
      %c0_11 = arith.constant 0 : index
      %13 = vector.load %arg8[%c0_10, %c0_11] : memref<8x256xf32, #tpu.memory_space<vmem>>, vector<8x256xf32>
      tpu.vector_store %arg8[%c0_10, %c0_11], %12 {strides = array<i32>} : memref<8x256xf32, #tpu.memory_space<vmem>>, vector<8x256xf32>,
    } else {
    }
    %c0 = arith.constant 0 : index
    %c0_1 = arith.constant 0 : index
    %3 = vector.load %arg8[%c0, %c0_1] : memref<8x256xf32, #tpu.memory_space<vmem>>, vector<8x256xf32>
    %c0_2 = arith.constant 0 : index
    %c0_3 = arith.constant 0 : index
    %4 = vector.load %arg3[%c0_2, %c0_3] : memref<8x384xbf16, #tpu.memory_space<vmem>>, vector<8x384xbf16>
    %c0_4 = arith.constant 0 : index
    %c0_5 = arith.constant 0 : index
    %5 = vector.load %arg4[%c0_4, %c0_5] : memref<384x256xbf16, #tpu.memory_space<vmem>>, vector<384x256xbf16>
    %cst = arith.constant dense<0.000000e+00> : vector<8x256xf32>
    %6 = tpu.matmul %4, %5, %cst {dimension_numbers = #tpu.dot_dimension_numbers<[1], [0], [0], [1], [0, 0, 1, 1], [], []>} : vector<8x384xbf16>, vector<384x256xbf16>, vector<8x256xf32> -> vector<8x256xf32>
    %7 = arith.addf %3, %6 : vector<8x256xf32>
    %c0_6 = arith.constant 0 : index
    %c0_7 = arith.constant 0 : index
    %8 = vector.load %arg8[%c0_6, %c0_7] : memref<8x256xf32, #tpu.memory_space<vmem>>, vector<8x256xf32>
    tpu.vector_store %arg8[%c0_6, %c0_7], %7 {strides = array<i32>} : memref<8x256xf32, #tpu.memory_space<vmem>>, vector<8x256xf32>,
    %c5_i32 = arith.constant 5 : i32
    %9 = arith.cmpi eq, %arg2, %c5_i32 : i32
    %10 = arith.extui %9 : i1 to i32
    %c0_i32_8 = arith.constant 0 : i32
    %11 = arith.cmpi ne, %10, %c0_i32_8 : i32
    scf.if %11 {
      %c0_9 = arith.constant 0 : index
      %c0_10 = arith.constant 0 : index
      %12 = vector.load %arg8[%c0_9, %c0_10] : memref<8x256xf32, #tpu.memory_space<vmem>>, vector<8x256xf32>
      %c0_11 = arith.constant 0 : index
      %c0_12 = arith.constant 0 : index
      %13 = vector.load %arg5[%c0_11, %c0_12] : memref<1x256xf32, #tpu.memory_space<vmem>>, vector<1x256xf32>
      %14 = vector.broadcast %13 : vector<1x256xf32> to vector<8x256xf32>
      %15 = arith.addf %12, %14 : vector<8x256xf32>
      %c0_13 = arith.constant 0 : index
      %c0_14 = arith.constant 0 : index
      %16 = vector.load %arg6[%c0_13, %c0_14] : memref<8x256xbf16, #tpu.memory_space<vmem>>, vector<8x256xbf16>
      %17 = arith.extf %16 : vector<8x256xbf16> to vector<8x256xf32>
      %18 = arith.addf %15, %17 : vector<8x256xf32>
      %cst_15 = arith.constant 0.000000e+00 : f32
      %19 = vector.broadcast %cst_15 : f32 to vector<8x256xf32>
      %20 = arith.maximumf %18, %19 : vector<8x256xf32>
      %21 = arith.truncf %20 : vector<8x256xf32> to vector<8x256xbf16>
      %c0_16 = arith.constant 0 : index
      %c0_17 = arith.constant 0 : index
      %22 = vector.load %arg7[%c0_16, %c0_17] : memref<8x256xbf16, #tpu.memory_space<vmem>>, vector<8x256xbf16>
      tpu.vector_store %arg7[%c0_16, %c0_17], %21 {strides = array<i32>} : memref<8x256xbf16, #tpu.memory_space<vmem>>, vector<8x256xbf16>,
    } else {
    }
    return
  }
  func.func @transform_0(%arg0: i32, %arg1: i32, %arg2: i32) -> (i32, i32) {
    %c0_i32 = arith.constant 0 : i32
    return %arg0, %arg2 : i32, i32
  }
  func.func @transform_1(%arg0: i32, %arg1: i32, %arg2: i32) -> (i32, i32) {
    %c0_i32 = arith.constant 0 : i32
    return %arg2, %arg1 : i32, i32
  }
  func.func @transform_2(%arg0: i32, %arg1: i32, %arg2: i32) -> (i32, i32) {
    %c0_i32 = arith.constant 0 : i32
    %c0_i32_0 = arith.constant 0 : i32
    return %c0_i32, %arg1 : i32, i32
  }
  func.func @transform_3(%arg0: i32, %arg1: i32, %arg2: i32) -> (i32, i32) {
    %c0_i32 = arith.constant 0 : i32
    return %arg0, %arg1 : i32, i32
  }
  func.func @transform_4(%arg0: i32, %arg1: i32, %arg2: i32) -> (i32, i32) {
    %c0_i32 = arith.constant 0 : i32
    return %arg0, %arg1 : i32, i32
  }
}

</mosaic_0001>

<bundles_post_ra>
// kernel: resnet34_trunk_forward.29
= control target key start
LH: loop header
LB: loop body
LE: loop exit
PB: predicated region body
PF: predicated region fallthrough
CT: control target
= control target key end

     0   :  { %s928_s1 = inlined_call_operand.vmem [shape: bf16[256,128], index: 1, kind: input, shape index: {}]   ;;  %s929_s0 = inlined_call_operand.vmem [shape: bf16[128,256], index: 0, kind: input, shape index: {}]   ;;  %s930_s2 = inlined_call_operand.vmem [shape: f32[1,128], index: 2, kind: input, shape index: {}]   ;;  %s931_s3 = inlined_call_operand.vmem [shape: bf16[128,128], index: 3, kind: output, shape index: {}]  }
   0x1   :  { %v646_v0 = vld [vmem:[%s928_s1 + $0x38] sm:$0xff]  ;;  %v645_v2 = vld [vmem:[%s928_s1 + $0x30] sm:$0xff]  ;;  %v644_v4 = vld [vmem:[%s928_s1 + $0x28] sm:$0xff] }
   0x2   :  { %v654_v1 = vld [vmem:[%s928_s1 + $0x78] sm:$0xff]  ;;  %274 = vmatpush.bf16.msra.mxu0 %v646_v0  ;;  %702 = vmatpush.bf16.msra.mxu2 %v646_v0  ;;  %v653_v3 = vld [vmem:[%s928_s1 + $0x70] sm:$0xff]  ;;  %v652_v5 = vld [vmem:[%s928_s1 + $0x68] sm:$0xff] }
   0x3   :  { %323 = vmatpush.bf16.msra.mxu1 %v654_v1  ;;  %710 = vmatpush.bf16.msra.mxu3 %v654_v1  ;;  %v643_v6 = vld [vmem:[%s928_s1 + $0x20] sm:$0xff]  ;;  %v642_v8 = vld [vmem:[%s928_s1 + $0x18] sm:$0xff]  ;;  %v641_v10 = vld [vmem:[%s928_s1 + $0x10] sm:$0xff] }
   0x4   :  { %v651_v7 = vld [vmem:[%s928_s1 + $0x60] sm:$0xff]  ;;  %v650_v9 = vld [vmem:[%s928_s1 + $0x58] sm:$0xff]  ;;  %v649_v11 = vld [vmem:[%s928_s1 + $0x50] sm:$0xff] }
   0x5   :  { %v640_v12 = vld [vmem:[%s928_s1 + $0x8] sm:$0xff]  ;;  %v639_v14 = vld [vmem:[%s928_s1] sm:$0xff]  ;;  %v505_v28 = vld [vmem:[%s929_s0 + $0x10] sm:$0xf] }
   0x6   :  { %275 = vmatpush.bf16.msra.mxu0 %v645_v2  ;;  %703 = vmatpush.bf16.msra.mxu2 %v645_v2  ;;  %v648_v13 = vld [vmem:[%s928_s1 + $0x48] sm:$0xff]  ;;  %v647_v15 = vld [vmem:[%s928_s1 + $0x40] sm:$0xff]  ;;  %v626_v29 = vld [vmem:[%s929_s0 + $0x14] sm:$0xf0] }
   0x7   :  { %324 = vmatpush.bf16.msra.mxu1 %v653_v3  ;;  %711 = vmatpush.bf16.msra.mxu3 %v653_v3  ;;  %v497_v16 = vld [vmem:[%s929_s0] sm:$0xf]  ;;  %v624_v17 = vld [vmem:[%s929_s0 + $0x4] sm:$0xf0]  ;;  %v623_v20 = vld [vmem:[%s929_s0 + $0x4] sm:$0xf]  ;;  %v506_v36 = vor.u32 %v626_v29, %v505_v28 }
   0x8   :  { %v529_v18 = vld [vmem:[%s929_s0 + $0x40] sm:$0xf]  ;;  %v632_v19 = vld [vmem:[%s929_s0 + $0x44] sm:$0xf0]  ;;  %v499_v21 = vld [vmem:[%s929_s0 + $0x8] sm:$0xf0]  ;;  %v498_v24 = vor.u32 %v624_v17, %v497_v16 }
   0x9   :  { %v631_v22 = vld [vmem:[%s929_s0 + $0x44] sm:$0xf]  ;;  %v531_v23 = vld [vmem:[%s929_s0 + $0x48] sm:$0xf0]  ;;  %v530_v25 = vor.u32 %v632_v19, %v529_v18  ;;  %v502_v26 = vor.u32 %v623_v20, %v499_v21  ;;  %v537_v30 = vld [vmem:[%s929_s0 + $0x50] sm:$0xf] }
   0xa   :  { %276 = vmatpush.bf16.msra.mxu0 %v644_v4  ;;  %704 = vmatpush.bf16.msra.mxu2 %v644_v4  ;;  %v534_v27 = vor.u32 %v631_v22, %v531_v23  ;;  %v634_v31 = vld [vmem:[%s929_s0 + $0x54] sm:$0xf0]  ;;  %v625_v32 = vld [vmem:[%s929_s0 + $0x14] sm:$0xf]  ;;  %v507_v33 = vld [vmem:[%s929_s0 + $0x18] sm:$0xf0] }
   0xb   :  { %325 = vmatpush.bf16.msra.mxu1 %v652_v5  ;;  %712 = vmatpush.bf16.msra.mxu3 %v652_v5  ;;  %v633_v34 = vld [vmem:[%s929_s0 + $0x54] sm:$0xf]  ;;  %v539_v35 = vld [vmem:[%s929_s0 + $0x58] sm:$0xf0]  ;;  %v538_v37 = vor.u32 %v634_v31, %v537_v30  ;;  %v510_v38 = vor.u32 %v625_v32, %v507_v33  ;;  %v513_v40 = vld [vmem:[%s929_s0 + $0x20] sm:$0xf] }
   0xc   :  { %v542_v39 = vor.u32 %v633_v34, %v539_v35  ;;  %v628_v41 = vld [vmem:[%s929_s0 + $0x24] sm:$0xf0]  ;;  %v545_v42 = vld [vmem:[%s929_s0 + $0x60] sm:$0xf]  ;;  %v627_v44 = vld [vmem:[%s929_s0 + $0x24] sm:$0xf] }
   0xd   :  { %v636_v43 = vld [vmem:[%s929_s0 + $0x64] sm:$0xf0]  ;;  %v515_v45 = vld [vmem:[%s929_s0 + $0x28] sm:$0xf0]  ;;  %v635_v46 = vld [vmem:[%s929_s0 + $0x64] sm:$0xf]  ;;  %v514_v48 = vor.u32 %v628_v41, %v513_v40 }
   0xe   :  { %277 = vmatpush.bf16.msra.mxu0 %v643_v6  ;;  %705 = vmatpush.bf16.msra.mxu2 %v643_v6  ;;  %v547_v47 = vld [vmem:[%s929_s0 + $0x68] sm:$0xf0]  ;;  %v546_v49 = vor.u32 %v636_v43, %v545_v42  ;;  %v518_v50 = vor.u32 %v627_v44, %v515_v45  ;;  %v521_v52 = vld [vmem:[%s929_s0 + $0x30] sm:$0xf]  ;;  %v630_v53 = vld [vmem:[%s929_s0 + $0x34] sm:$0xf0] }
   0xf   :  { %326 = vmatpush.bf16.msra.mxu1 %v651_v7  ;;  %713 = vmatpush.bf16.msra.mxu3 %v651_v7  ;;  %v550_v51 = vor.u32 %v635_v46, %v547_v47  ;;  %v553_v54 = vld [vmem:[%s929_s0 + $0x70] sm:$0xf]  ;;  %v638_v55 = vld [vmem:[%s929_s0 + $0x74] sm:$0xf0]  ;;  %v629_v56 = vld [vmem:[%s929_s0 + $0x34] sm:$0xf]  ;;  %v522_v60 = vor.u32 %v630_v53, %v521_v52 }
  0x10   :  { %v523_v57 = vld [vmem:[%s929_s0 + $0x38] sm:$0xf0]  ;;  %v637_v58 = vld [vmem:[%s929_s0 + $0x74] sm:$0xf]  ;;  %v554_v61 = vor.u32 %v638_v55, %v553_v54  ;;  %v886_v3 = vld [vmem:[%s930_s2] ss:$0 sm:$0xff] }
  0x11   :  { %v555_v59 = vld [vmem:[%s929_s0 + $0x78] sm:$0xf0]  ;;  %v526_v62 = vor.u32 %v629_v56, %v523_v57 }
  0x12   :  { %278 = vmatpush.bf16.msra.mxu0 %v642_v8  ;;  %706 = vmatpush.bf16.msra.mxu2 %v642_v8  ;;  %v558_v63 = vor.u32 %v637_v58, %v555_v59 }
  0x13   :  { %327 = vmatpush.bf16.msra.mxu1 %v650_v9  ;;  %714 = vmatpush.bf16.msra.mxu3 %v650_v9 }
  0x16   :  { %279 = vmatpush.bf16.msra.mxu0 %v641_v10  ;;  %707 = vmatpush.bf16.msra.mxu2 %v641_v10 }
  0x17   :  { %328 = vmatpush.bf16.msra.mxu1 %v649_v11  ;;  %715 = vmatpush.bf16.msra.mxu3 %v649_v11 }
  0x1a   :  { %280 = vmatpush.bf16.msra.mxu0 %v640_v12  ;;  %708 = vmatpush.bf16.msra.mxu2 %v640_v12 }
  0x1b   :  { %329 = vmatpush.bf16.msra.mxu1 %v648_v13  ;;  %716 = vmatpush.bf16.msra.mxu3 %v648_v13 }
  0x1e   :  { %281 = vmatpush.bf16.msra.mxu0 %v639_v14  ;;  %709 = vmatpush.bf16.msra.mxu2 %v639_v14 }
  0x1f   :  { %330 = vmatpush.bf16.msra.mxu1 %v647_v15  ;;  %717 = vmatpush.bf16.msra.mxu3 %v647_v15 }
  0x21   :  { %282 = vmatmul.bf16.vlgmr.msra.gmra.mxu0 %v498_v24  ;;  %302 = vmatmul.bf16.vlgmr.msra.gmra.mxu2 %v530_v25 }
  0x22   :  { %331 = vmatmul.bf16.vlgmr.msra.gmra.mxu1 %v502_v26  ;;  %351 = vmatmul.bf16.vlgmr.msra.gmra.mxu3 %v534_v27 }
  0x31   :  { %287 = vmatmul.bf16.gmra.mxu0 %v506_v36  ;;  %307 = vmatmul.bf16.gmra.mxu2 %v538_v37 }
  0x32   :  { %336 = vmatmul.bf16.gmra.mxu1 %v510_v38  ;;  %356 = vmatmul.bf16.gmra.mxu3 %v542_v39 }
  0x41   :  { %292 = vmatmul.bf16.gmra.mxu0 %v514_v48  ;;  %312 = vmatmul.bf16.gmra.mxu2 %v546_v49 }
  0x42   :  { %341 = vmatmul.bf16.gmra.mxu1 %v518_v50  ;;  %361 = vmatmul.bf16.gmra.mxu3 %v550_v51 }
  0x51   :  { %297 = vmatmul.bf16.gmra.mxu0 %v522_v60  ;;  %317 = vmatmul.bf16.gmra.mxu2 %v554_v61 }
  0x52   :  { %346 = vmatmul.bf16.gmra.mxu1 %v526_v62  ;;  %366 = vmatmul.bf16.gmra.mxu3 %v558_v63 }
  0x9e   :  { %v283_v0 = vpop.f32.mrf.mxu0 }
  0x9f   :  { %v332_v1 = vpop.f32.mrf.mxu1 }
  0xa0   :  { %v333_v2 = vadd.f32 %v332_v1, %v283_v0 }
  0xa2   :  { %v427_v8 = vadd.f32 %v886_v3, %v333_v2 }
  0xa4   :  { %v303_v4 = vpop.f32.mrf.mxu2  ;;  %v443_v12 = vmax.f32 %v427_v8, 0.0 }
  0xa5   :  { %v352_v5 = vpop.f32.mrf.mxu3 }
  0xa6   :  { %v285_v6 = vpop.f32.mrf.mxu0  ;;  %v353_v10 = vadd.f32 %v352_v5, %v303_v4 }
  0xa7   :  { %v334_v7 = vpop.f32.mrf.mxu1 }
  0xa8   :  { %v335_v9 = vadd.f32 %v334_v7, %v285_v6  ;;  %v435_v16 = vadd.f32 %v886_v3, %v353_v10 }
  0xaa   :  { %v428_v11 = vadd.f32 %v886_v3, %v335_v9  ;;  %v451_v22 = vmax.f32 %v435_v16, 0.0 }
  0xac   :  { %v444_v13 = vmax.f32 %v428_v11, 0.0  ;;  %v305_v14 = vpop.f32.mrf.mxu2 }
  0xad   :  { %v354_v15 = vpop.f32.mrf.mxu3 }
  0xae   :  { %v658_v17 = vpack.c.bf16 %v444_v13, %v443_v12  ;;  %v355_v18 = vadd.f32 %v354_v15, %v305_v14  ;;  %v288_v19 = vpop.f32.mrf.mxu0 }
  0xaf   :  { %v337_v20 = vpop.f32.mrf.mxu1 }
  0xb0   :  { %659 = vst [vmem:[%s931_s3] sm:$0xff] %v658_v17   ;;  %v436_v21 = vadd.f32 %v886_v3, %v355_v18  ;;  %v338_v25 = vadd.f32 %v337_v20, %v288_v19 }
  0xb2   :  { %v452_v23 = vmax.f32 %v436_v21, 0.0  ;;  %v429_v30 = vadd.f32 %v886_v3, %v338_v25 }
  0xb4   :  { %v678_v24 = vpack.c.bf16 %v452_v23, %v451_v22  ;;  %v308_v26 = vpop.f32.mrf.mxu2  ;;  %v445_v34 = vmax.f32 %v429_v30, 0.0 }
  0xb5   :  { %v357_v27 = vpop.f32.mrf.mxu3 }
  0xb6   :  { %698 = vst [vmem:[%s931_s3 + $0x20] sm:$0xff] %v678_v24   ;;  %v290_v28 = vpop.f32.mrf.mxu0  ;;  %v358_v32 = vadd.f32 %v357_v27, %v308_v26 }
  0xb7   :  { %v339_v29 = vpop.f32.mrf.mxu1 }
  0xb8   :  { %v340_v31 = vadd.f32 %v339_v29, %v290_v28  ;;  %v437_v38 = vadd.f32 %v886_v3, %v358_v32 }
  0xba   :  { %v430_v33 = vadd.f32 %v886_v3, %v340_v31  ;;  %v453_v44 = vmax.f32 %v437_v38, 0.0 }
  0xbc   :  { %v446_v35 = vmax.f32 %v430_v33, 0.0  ;;  %v310_v36 = vpop.f32.mrf.mxu2 }
  0xbd   :  { %v359_v37 = vpop.f32.mrf.mxu3 }
  0xbe   :  { %v663_v39 = vpack.c.bf16 %v446_v35, %v445_v34  ;;  %v360_v40 = vadd.f32 %v359_v37, %v310_v36  ;;  %v293_v41 = vpop.f32.mrf.mxu0 }
  0xbf   :  { %v342_v42 = vpop.f32.mrf.mxu1 }
  0xc0   :  { %695 = vst [vmem:[%s931_s3 + $0x8] sm:$0xff] %v663_v39   ;;  %v438_v43 = vadd.f32 %v886_v3, %v360_v40  ;;  %v343_v47 = vadd.f32 %v342_v42, %v293_v41 }
  0xc2   :  { %v454_v45 = vmax.f32 %v438_v43, 0.0  ;;  %v431_v52 = vadd.f32 %v886_v3, %v343_v47 }
  0xc4   :  { %v683_v46 = vpack.c.bf16 %v454_v45, %v453_v44  ;;  %v313_v48 = vpop.f32.mrf.mxu2  ;;  %v447_v56 = vmax.f32 %v431_v52, 0.0 }
  0xc5   :  { %v362_v49 = vpop.f32.mrf.mxu3 }
  0xc6   :  { %699 = vst [vmem:[%s931_s3 + $0x28] sm:$0xff] %v683_v46   ;;  %v295_v50 = vpop.f32.mrf.mxu0  ;;  %v363_v54 = vadd.f32 %v362_v49, %v313_v48 }
  0xc7   :  { %v344_v51 = vpop.f32.mrf.mxu1 }
  0xc8   :  { %v345_v53 = vadd.f32 %v344_v51, %v295_v50  ;;  %v439_v60 = vadd.f32 %v886_v3, %v363_v54 }
  0xca   :  { %v432_v55 = vadd.f32 %v886_v3, %v345_v53  ;;  %v455_v2 = vmax.f32 %v439_v60, 0.0 }
  0xcc   :  { %v448_v57 = vmax.f32 %v432_v55, 0.0  ;;  %v315_v58 = vpop.f32.mrf.mxu2 }
  0xcd   :  { %v364_v59 = vpop.f32.mrf.mxu3 }
  0xce   :  { %v668_v61 = vpack.c.bf16 %v448_v57, %v447_v56  ;;  %v365_v62 = vadd.f32 %v364_v59, %v315_v58  ;;  %v298_v63 = vpop.f32.mrf.mxu0 }
  0xcf   :  { %v347_v0 = vpop.f32.mrf.mxu1 }
  0xd0   :  { %696 = vst [vmem:[%s931_s3 + $0x10] sm:$0xff] %v668_v61   ;;  %v440_v1 = vadd.f32 %v886_v3, %v365_v62  ;;  %v348_v6 = vadd.f32 %v347_v0, %v298_v63 }
  0xd2   :  { %v456_v4 = vmax.f32 %v440_v1, 0.0  ;;  %v433_v11 = vadd.f32 %v886_v3, %v348_v6 }
  0xd4   :  { %v688_v5 = vpack.c.bf16 %v456_v4, %v455_v2  ;;  %v318_v7 = vpop.f32.mrf.mxu2  ;;  %v449_v15 = vmax.f32 %v433_v11, 0.0 }
  0xd5   :  { %v367_v8 = vpop.f32.mrf.mxu3 }
  0xd6   :  { %700 = vst [vmem:[%s931_s3 + $0x30] sm:$0xff] %v688_v5   ;;  %v300_v9 = vpop.f32.mrf.mxu0  ;;  %v368_v13 = vadd.f32 %v367_v8, %v318_v7 }
  0xd7   :  { %v349_v10 = vpop.f32.mrf.mxu1 }
  0xd8   :  { %v350_v12 = vadd.f32 %v349_v10, %v300_v9  ;;  %v441_v19 = vadd.f32 %v886_v3, %v368_v13 }
  0xda   :  { %v434_v14 = vadd.f32 %v886_v3, %v350_v12  ;;  %v457_v23 = vmax.f32 %v441_v19, 0.0 }
  0xdc   :  { %v450_v16 = vmax.f32 %v434_v14, 0.0  ;;  %v320_v17 = vpop.f32.mrf.mxu2 }
  0xdd   :  { %v369_v18 = vpop.f32.mrf.mxu3 }
  0xde   :  { %v673_v20 = vpack.c.bf16 %v450_v16, %v449_v15  ;;  %v370_v21 = vadd.f32 %v369_v18, %v320_v17 }
  0xe0   :  { %697 = vst [vmem:[%s931_s3 + $0x18] sm:$0xff] %v673_v20   ;;  %v442_v22 = vadd.f32 %v886_v3, %v370_v21 }
  0xe2   :  { %v458_v24 = vmax.f32 %v442_v22, 0.0 }
  0xe4   :  { %v693_v25 = vpack.c.bf16 %v458_v24, %v457_v23 }
  0xe6   :  { %701 = vst [vmem:[%s931_s3 + $0x38] sm:$0xff] %v693_v25  }

// kernel: resnet34_trunk_forward.30
= control target key start
LH: loop header
LB: loop body
LE: loop exit
PB: predicated region body
PF: predicated region fallthrough
CT: control target
= control target key end

     0   :  { %s1068_s12 = smov 0   ;;  %s1070_s13 = smov 0   ;;  %s1200_s0 = inlined_call_operand.vmem [shape: bf16[128,640], index: 0, kind: input, shape index: {}]   ;;  %s1201_s1 = inlined_call_operand.vmem [shape: bf16[640,128], index: 1, kind: input, shape index: {}]   ;;  %s1202_s2 = inlined_call_operand.vmem [shape: f32[1,128], index: 2, kind: input, shape index: {}]   ;;  %s1203_s3 = inlined_call_operand.vmem [shape: bf16[128,128], index: 3, kind: output, shape index: {}]  }
   0x1   :  { %s1072_s14 = smov 0   ;;  %s1074_s15 = smov 0  }
   0x2   :  { %s1076_s16 = smov 0  }
   0x3 LB: > { %s25_s17 = sadd.s32 1, %s1041_s15  ;;  %p48_p1 = scmp.ne.s32.totalorder %s1033_s13, %s1029_s12  ;;  %s1045_s16 = sphi %s1076_s16, %s13_s16   ;;  %s1041_s15 = sphi %s1074_s15, %s1207_s15   ;;  %s1037_s14 = sphi %s1072_s14, %s1206_s14   ;;  %s1033_s13 = sphi %s1070_s13, %s1205_s13   ;;  %s1029_s12 = sphi %s1068_s12, %s1204_s12  }
   0x4   : > { %p26_p0 = scmp.ge.s32.totalorder %s25_s17, 5  ;;  %p49_p2 = scmp.eq.s32.totalorder %s1045_s16, 0 }
   0x5   : > { %s41_s19 = sadd.s32 1, %s1033_s13  ;;  %p801_p5 = scmp.ge.s32.totalorder %s1045_s16, 5 }
   0x6   : > { %s1209_s17 = smov (%p26_p0, %s25_s17), 0  ;;  %p50_p3 = por %p49_p2, %p48_p1 }
   0x7   : > { %s37_s18 = ssub.s32 %s1041_s15, %s1209_s17  ;;  %162 = sbr.rel (%p801_p5) target bundleno = 32 (0x20), region = 20 }
   0x8   : > { %p39_p4 = scmp.eq.s32.totalorder %s37_s18, 0 }
   0xa   : > { %s1103_s20 = scalar_select %p39_p4, %s1033_s13, %s41_s19  }
   0xc   : > { %165 = sbr.rel (!%p50_p3) target bundleno = 32 (0x20), region = 24  ;;  %s167_s21 = sand.u32 (%p50_p3), 1, %s1033_s13  }
   0xd   : > { %s803_s22 = sshll.u32 (%p50_p3), %s1041_s15, 2  ;;  %s802_s23 = sshll.u32 (%p50_p3), %s167_s21, 6 }
   0xe   : > { %s1111_s26 = scalar_lea.vmem (%p50_p3), %s1200_s0, %s803_s22  ;;  %s169_s27 = scalar_lea.vmem (%p50_p3), [#allocation3], %s802_s23 }
   0xf   : > { %v191_v0 = vld [vmem:[%s1111_s26] sm:$0xf] (%p50_p3)  ;;  %v193_v1 = vld [vmem:[%s1111_s26 + $0x14] sm:$0xf] (%p50_p3)  ;;  %v195_v2 = vld [vmem:[%s1111_s26 + $0x28] sm:$0xf] (%p50_p3) }
  0x10   : > { %192 = vst [vmem:[%s169_s27] sm:$0xf] (%p50_p3), %v191_v0  ;;  %v197_v3 = vld [vmem:[%s1111_s26 + $0x3c] sm:$0xf] (%p50_p3)  ;;  %v199_v4 = vld [vmem:[%s1111_s26 + $0x50] sm:$0xf] (%p50_p3) }
  0x11   : > { %194 = vst [vmem:[%s169_s27 + $0x4] sm:$0xf] %v193_v1  ;;  %v201_v5 = vld [vmem:[%s1111_s26 + $0x64] sm:$0xf]  ;;  %v203_v6 = vld [vmem:[%s1111_s26 + $0x78] sm:$0xf] }
  0x12   : > { %196 = vst [vmem:[%s169_s27 + $0x8] sm:$0xf] %v195_v2  ;;  %v205_v7 = vld [vmem:[%s1111_s26 + $0x8c] sm:$0xf]  ;;  %v207_v8 = vld [vmem:[%s1111_s26 + $0xa0] sm:$0xf] }
  0x13   : > { %198 = vst [vmem:[%s169_s27 + $0xc] sm:$0xf] %v197_v3  ;;  %v209_v9 = vld [vmem:[%s1111_s26 + $0xb4] sm:$0xf]  ;;  %v211_v10 = vld [vmem:[%s1111_s26 + $0xc8] sm:$0xf] }
  0x14   : > { %200 = vst [vmem:[%s169_s27 + $0x10] sm:$0xf] %v199_v4  ;;  %v213_v11 = vld [vmem:[%s1111_s26 + $0xdc] sm:$0xf]  ;;  %v215_v12 = vld [vmem:[%s1111_s26 + $0xf0] sm:$0xf] }
  0x15   : > { %202 = vst [vmem:[%s169_s27 + $0x14] sm:$0xf] %v201_v5  ;;  %v217_v13 = vld [vmem:[%s1111_s26 + $0x104] sm:$0xf]  ;;  %v219_v14 = vld [vmem:[%s1111_s26 + $0x118] sm:$0xf] }
  0x16   : > { %204 = vst [vmem:[%s169_s27 + $0x18] sm:$0xf] %v203_v6  ;;  %v221_v15 = vld [vmem:[%s1111_s26 + $0x12c] sm:$0xf] }
  0x17   : > { %206 = vst [vmem:[%s169_s27 + $0x1c] sm:$0xf] %v205_v7 }
  0x18   : > { %208 = vst [vmem:[%s169_s27 + $0x20] sm:$0xf] %v207_v8 }
  0x19   : > { %210 = vst [vmem:[%s169_s27 + $0x24] sm:$0xf] %v209_v9 }
  0x1a   : > { %212 = vst [vmem:[%s169_s27 + $0x28] sm:$0xf] %v211_v10 }
  0x1b   : > { %214 = vst [vmem:[%s169_s27 + $0x2c] sm:$0xf] %v213_v11 }
  0x1c   : > { %216 = vst [vmem:[%s169_s27 + $0x30] sm:$0xf] %v215_v12 }
  0x1d   : > { %218 = vst [vmem:[%s169_s27 + $0x34] sm:$0xf] %v217_v13 }
  0x1e   : > { %220 = vst [vmem:[%s169_s27 + $0x38] sm:$0xf] %v219_v14 }
  0x1f   : > { %222 = vst [vmem:[%s169_s27 + $0x3c] sm:$0xf] %v221_v15 }
  0x20 PF: > { %p804_p6 = scmp.ge.s32.totalorder %s1045_s16, 1  ;;  %p289_p7 = scmp.lt.s32.totalorder %s1045_s16, 6 }
  0x22   : > { %p290_p8 = pnand %p804_p6, %p289_p7 }
  0x23   : > { %s296_s28 = sand.u32 (!%p290_p8), 1, %s1029_s12   ;;  %s806_s29 = sshll.u32 (!%p290_p8), %s1037_s14, 4 }
  0x24   : > { %293 = sbr.rel (%p290_p8) target bundleno = 272 (0x110), region = 69  ;;  %s805_s30 = sshll.u32 (!%p290_p8), %s296_s28, 6 }
  0x25   : > { %p335_p9 = scmp.lt.s32.totalorder (!%p290_p8), %s806_s29, 79  ;;  %s1138_s8 = scalar_lea.vmem (!%p290_p8), [#allocation3], %s805_s30 }
  0x26   : > { %p808_p10 = scmp.ne.s32.totalorder (!%p290_p8), %s1037_s14, 0 }
  0x29   : > { %s1211_s29 = smov (!%p335_p9, %s806_s29), 79  ;;  %358 = sbr.rel (%p808_p10) target bundleno = 63 (0x3f), region = 77 }
  0x2a   : > { %s807_s4 = sshll.u32 %s1211_s29, 2 }
  0x2b   : > { %s1136_s7 = scalar_lea.vmem %s1201_s1, %s807_s4 }
  0x2e   : > { %v1047_v16 = vmov 0.0  }
  0x2f   : > { %359 = vst [vmem:[#allocation2 + $0x30] sm:$0xff] %v1047_v16 }
  0x30   : > { %360 = vst [vmem:[#allocation2] sm:$0xff] %v1047_v16 }
  0x31   : > { %361 = vst [vmem:[#allocation2 + $0x58] sm:$0xff] %v1047_v16 }
  0x32   : > { %362 = vst [vmem:[#allocation2 + $0x18] sm:$0xff] %v1047_v16 }
  0x33   : > { %363 = vst [vmem:[#allocation2 + $0x50] sm:$0xff] %v1047_v16 }
  0x34   : > { %364 = vst [vmem:[#allocation2 + $0x68] sm:$0xff] %v1047_v16 }
  0x35   : > { %365 = vst [vmem:[#allocation2 + $0x8] sm:$0xff] %v1047_v16 }
  0x36   : > { %366 = vst [vmem:[#allocation2 + $0x48] sm:$0xff] %v1047_v16 }
  0x37   : > { %367 = vst [vmem:[#allocation2 + $0x40] sm:$0xff] %v1047_v16 }
  0x38   : > { %368 = vst [vmem:[#allocation2 + $0x20] sm:$0xff] %v1047_v16 }
  0x39   : > { %369 = vst [vmem:[#allocation2 + $0x10] sm:$0xff] %v1047_v16 }
  0x3a   : > { %370 = vst [vmem:[#allocation2 + $0x38] sm:$0xff] %v1047_v16 }
  0x3b   : > { %371 = vst [vmem:[#allocation2 + $0x60] sm:$0xff] %v1047_v16 }
  0x3c   : > { %372 = vst [vmem:[#allocation2 + $0x70] sm:$0xff] %v1047_v16 }
  0x3d   : > { %373 = vst [vmem:[#allocation2 + $0x78] sm:$0xff] %v1047_v16 }
  0x3e   : > { %374 = vst [vmem:[#allocation2 + $0x28] sm:$0xff] %v1047_v16 }
  0x3f PF: > { %v893_v17 = vld [vmem:[%s1136_s7 + $0x38] sm:$0xff]  ;;  %v892_v18 = vld [vmem:[%s1136_s7 + $0x30] sm:$0xff]  ;;  %v891_v19 = vld [vmem:[%s1136_s7 + $0x28] sm:$0xff]  ;;  %p873_p11 = scmp.ne.s32.totalorder %s1037_s14, 4 }
  0x40   : > { %519 = vmatpush.bf16.msra.mxu0 %v893_v17  ;;  %941 = vmatpush.bf16.msra.mxu1 %v893_v17  ;;  %v890_v20 = vld [vmem:[%s1136_s7 + $0x20] sm:$0xff]  ;;  %v889_v21 = vld [vmem:[%s1136_s7 + $0x18] sm:$0xff]  ;;  %v888_v22 = vld [vmem:[%s1136_s7 + $0x10] sm:$0xff] }
  0x41   : > { %942 = vmatpush.bf16.msra.mxu2 %v893_v17  ;;  %943 = vmatpush.bf16.msra.mxu3 %v893_v17  ;;  %v887_v23 = vld [vmem:[%s1136_s7 + $0x8] sm:$0xff]  ;;  %v886_v24 = vld [vmem:[%s1136_s7] sm:$0xff]  ;;  %v880_v26 = vld [vmem:[%s1138_s8 + $0x10] sm:$0xff] }
  0x42   : > { %v878_v25 = vld [vmem:[%s1138_s8] sm:$0xff]  ;;  %v884_v28 = vld [vmem:[%s1138_s8 + $0x30] sm:$0xff]  ;;  %v879_v29 = vld [vmem:[%s1138_s8 + $0x8] sm:$0xff] }
  0x43   : > { %v882_v27 = vld [vmem:[%s1138_s8 + $0x20] sm:$0xff]  ;;  %v881_v30 = vld [vmem:[%s1138_s8 + $0x18] sm:$0xff]  ;;  %v883_v31 = vld [vmem:[%s1138_s8 + $0x28] sm:$0xff] }
  0x44   : > { %520 = vmatpush.bf16.msra.mxu0 %v892_v18  ;;  %944 = vmatpush.bf16.msra.mxu1 %v892_v18  ;;  %v885_v32 = vld [vmem:[%s1138_s8 + $0x38] sm:$0xff]  ;;  %v375_v33 = vld [vmem:[#allocation2 + $0x30] sm:$0xff]  ;;  %v383_v39 = vld [vmem:[#allocation2 + $0x40] sm:$0xff] }
  0x45   : > { %945 = vmatpush.bf16.msra.mxu2 %v892_v18  ;;  %946 = vmatpush.bf16.msra.mxu3 %v892_v18  ;;  %v379_v34 = vld [vmem:[#allocation2 + $0x50] sm:$0xff]  ;;  %v387_v40 = vld [vmem:[#allocation2 + $0x60] sm:$0xff]  ;;  %v380_v42 = vld [vmem:[#allocation2 + $0x68] sm:$0xff] }
  0x46   : > { %v376_v41 = vld [vmem:[#allocation2] sm:$0xff]  ;;  %v388_v52 = vld [vmem:[#allocation2 + $0x70] sm:$0xff]  ;;  %v377_v53 = vld [vmem:[#allocation2 + $0x58] sm:$0xff] }
  0x47   : > { %v384_v51 = vld [vmem:[#allocation2 + $0x20] sm:$0xff]  ;;  %v381_v54 = vld [vmem:[#allocation2 + $0x8] sm:$0xff]  ;;  %v385_v63 = vld [vmem:[#allocation2 + $0x10] sm:$0xff] }
  0x48   : > { %521 = vmatpush.bf16.msra.mxu0 %v891_v19  ;;  %947 = vmatpush.bf16.msra.mxu1 %v891_v19  ;;  %v389_v0 = vld [vmem:[#allocation2 + $0x78] sm:$0xff]  ;;  %v382_v2 = vld [vmem:[#allocation2 + $0x48] sm:$0xff] }
  0x49   : > { %948 = vmatpush.bf16.msra.mxu2 %v891_v19  ;;  %949 = vmatpush.bf16.msra.mxu3 %v891_v19  ;;  %v378_v1 = vld [vmem:[#allocation2 + $0x18] sm:$0xff]  ;;  %v390_v12 = vld [vmem:[#allocation2 + $0x28] sm:$0xff] }
  0x4a   : > { %v386_v11 = vld [vmem:[#allocation2 + $0x38] sm:$0xff] }
  0x4c   : > { %522 = vmatpush.bf16.msra.mxu0 %v890_v20  ;;  %950 = vmatpush.bf16.msra.mxu1 %v890_v20 }
  0x4d   : > { %951 = vmatpush.bf16.msra.mxu2 %v890_v20  ;;  %952 = vmatpush.bf16.msra.mxu3 %v890_v20 }
  0x50   : > { %523 = vmatpush.bf16.msra.mxu0 %v889_v21  ;;  %953 = vmatpush.bf16.msra.mxu1 %v889_v21 }
  0x51   : > { %954 = vmatpush.bf16.msra.mxu2 %v889_v21  ;;  %955 = vmatpush.bf16.msra.mxu3 %v889_v21 }
  0x54   : > { %524 = vmatpush.bf16.msra.mxu0 %v888_v22  ;;  %956 = vmatpush.bf16.msra.mxu1 %v888_v22 }
  0x55   : > { %957 = vmatpush.bf16.msra.mxu2 %v888_v22  ;;  %958 = vmatpush.bf16.msra.mxu3 %v888_v22 }
  0x58   : > { %525 = vmatpush.bf16.msra.mxu0 %v887_v23  ;;  %959 = vmatpush.bf16.msra.mxu1 %v887_v23 }
  0x59   : > { %960 = vmatpush.bf16.msra.mxu2 %v887_v23  ;;  %961 = vmatpush.bf16.msra.mxu3 %v887_v23 }
  0x5c   : > { %526 = vmatpush.bf16.msra.mxu0 %v886_v24  ;;  %962 = vmatpush.bf16.msra.mxu1 %v886_v24 }
  0x5d   : > { %963 = vmatpush.bf16.msra.mxu2 %v886_v24  ;;  %964 = vmatpush.bf16.msra.mxu3 %v886_v24 }
  0x5f   : > { %527 = vmatmul.bf16.vlgmr.msra.gmra.mxu0 %v878_v25  ;;  %537 = vmatmul.bf16.vlgmr.msra.gmra.mxu1 %v880_v26 }
  0x60   : > { %547 = vmatmul.bf16.vlgmr.msra.gmra.mxu2 %v882_v27  ;;  %557 = vmatmul.bf16.vlgmr.msra.gmra.mxu3 %v884_v28 }
  0x6f   : > { %532 = vmatmul.bf16.gmra.mxu0 %v879_v29  ;;  %542 = vmatmul.bf16.gmra.mxu1 %v881_v30 }
  0x70   : > { %552 = vmatmul.bf16.gmra.mxu2 %v883_v31  ;;  %562 = vmatmul.bf16.gmra.mxu3 %v885_v32 }
  0xdc   : > { %v528_v35 = vpop.f32.mrf.mxu0  ;;  %v538_v36 = vpop.f32.mrf.mxu1 }
  0xdd   : > { %v568_v37 = vadd.f32 %v528_v35, %v375_v33  ;;  %v572_v38 = vadd.f32 %v538_v36, %v379_v34 }
  0xdf   : > { %584 = vst [vmem:[#allocation2 + $0x30] sm:$0xff] %v568_v37 }
  0xe0   : > { %588 = vst [vmem:[#allocation2 + $0x50] sm:$0xff] %v572_v38 }
  0xe3   : > { %v548_v43 = vpop.f32.mrf.mxu2  ;;  %v558_v44 = vpop.f32.mrf.mxu3 }
  0xe4   : > { %v576_v45 = vadd.f32 %v548_v43, %v383_v39  ;;  %v580_v46 = vadd.f32 %v558_v44, %v387_v40  ;;  %v530_v47 = vpop.f32.mrf.mxu0  ;;  %v540_v48 = vpop.f32.mrf.mxu1 }
  0xe5   : > { %v569_v49 = vadd.f32 %v530_v47, %v376_v41  ;;  %v573_v50 = vadd.f32 %v540_v48, %v380_v42 }
  0xe6   : > { %592 = vst [vmem:[#allocation2 + $0x40] sm:$0xff] %v576_v45 }
  0xe7   : > { %596 = vst [vmem:[#allocation2 + $0x60] sm:$0xff] %v580_v46 }
  0xe8   : > { %585 = vst [vmem:[#allocation2] sm:$0xff] %v569_v49 }
  0xe9   : > { %589 = vst [vmem:[#allocation2 + $0x68] sm:$0xff] %v573_v50 }
  0xeb   : > { %v550_v55 = vpop.f32.mrf.mxu2  ;;  %v560_v56 = vpop.f32.mrf.mxu3 }
  0xec   : > { %v577_v57 = vadd.f32 %v550_v55, %v384_v51  ;;  %v581_v58 = vadd.f32 %v560_v56, %v388_v52  ;;  %v533_v59 = vpop.f32.mrf.mxu0  ;;  %v543_v60 = vpop.f32.mrf.mxu1 }
  0xed   : > { %v570_v61 = vadd.f32 %v533_v59, %v377_v53  ;;  %v574_v62 = vadd.f32 %v543_v60, %v381_v54 }
  0xee   : > { %593 = vst [vmem:[#allocation2 + $0x20] sm:$0xff] %v577_v57 }
  0xef   : > { %597 = vst [vmem:[#allocation2 + $0x70] sm:$0xff] %v581_v58 }
  0xf0   : > { %586 = vst [vmem:[#allocation2 + $0x58] sm:$0xff] %v570_v61 }
  0xf1   : > { %590 = vst [vmem:[#allocation2 + $0x8] sm:$0xff] %v574_v62 }
  0xf3   : > { %v553_v3 = vpop.f32.mrf.mxu2  ;;  %v563_v4 = vpop.f32.mrf.mxu3 }
  0xf4   : > { %v578_v5 = vadd.f32 %v553_v3, %v385_v63  ;;  %v582_v6 = vadd.f32 %v563_v4, %v389_v0  ;;  %v535_v7 = vpop.f32.mrf.mxu0  ;;  %v545_v8 = vpop.f32.mrf.mxu1 }
  0xf5   : > { %v571_v9 = vadd.f32 %v535_v7, %v378_v1  ;;  %v575_v10 = vadd.f32 %v545_v8, %v382_v2 }
  0xf6   : > { %594 = vst [vmem:[#allocation2 + $0x10] sm:$0xff] %v578_v5 }
  0xf7   : > { %598 = vst [vmem:[#allocation2 + $0x78] sm:$0xff] %v582_v6 }
  0xf8   : > { %587 = vst [vmem:[#allocation2 + $0x18] sm:$0xff] %v571_v9 }
  0xf9   : > { %591 = vst [vmem:[#allocation2 + $0x48] sm:$0xff] %v575_v10 }
  0xfb   : > { %v555_v13 = vpop.f32.mrf.mxu2  ;;  %v565_v14 = vpop.f32.mrf.mxu3  ;;  %603 = sbr.rel (%p873_p11) target bundleno = 272 (0x110), region = 81 }
  0xfc   : > { %v579_v15 = vadd.f32 %v555_v13, %v386_v11  ;;  %v583_v16 = vadd.f32 %v565_v14, %v390_v12 }
  0xfe   : > { %595 = vst [vmem:[#allocation2 + $0x38] sm:$0xff] %v579_v15 }
  0xff   : > { %599 = vst [vmem:[#allocation2 + $0x28] sm:$0xff] %v583_v16 }
 0x100   : > { %v604_v17 = vld [vmem:[#allocation2 + $0x30] sm:$0xff]  ;;  %v605_v18 = vld [vmem:[#allocation2] sm:$0xff]  ;;  %v606_v20 = vld [vmem:[#allocation2 + $0x58] sm:$0xff] }
 0x101   : > { %v1006_v19 = vld [vmem:[%s1202_s2] ss:$0 sm:$0xff]  ;;  %v607_v21 = vld [vmem:[#allocation2 + $0x18] sm:$0xff]  ;;  %v608_v22 = vld [vmem:[#allocation2 + $0x50] sm:$0xff] }
 0x102   : > { %v609_v23 = vld [vmem:[#allocation2 + $0x68] sm:$0xff]  ;;  %v624_v25 = vadd.f32 %v1006_v19, %v604_v17  ;;  %v625_v26 = vadd.f32 %v1006_v19, %v605_v18  ;;  %v626_v27 = vadd.f32 %v1006_v19, %v606_v20  ;;  %v627_v28 = vadd.f32 %v1006_v19, %v607_v21  ;;  %v612_v34 = vld [vmem:[#allocation2 + $0x40] sm:$0xff]  ;;  %v614_v40 = vld [vmem:[#allocation2 + $0x10] sm:$0xff] }
 0x103   : > { %v610_v24 = vld [vmem:[#allocation2 + $0x8] sm:$0xff]  ;;  %v628_v30 = vadd.f32 %v1006_v19, %v608_v22  ;;  %v629_v31 = vadd.f32 %v1006_v19, %v609_v23  ;;  %v613_v35 = vld [vmem:[#allocation2 + $0x20] sm:$0xff]  ;;  %v617_v47 = vld [vmem:[#allocation2 + $0x70] sm:$0xff]  ;;  %v632_v50 = vadd.f32 %v1006_v19, %v612_v34  ;;  %v634_v56 = vadd.f32 %v1006_v19, %v614_v40 }
 0x104   : > { %v611_v29 = vld [vmem:[#allocation2 + $0x48] sm:$0xff]  ;;  %v630_v32 = vadd.f32 %v1006_v19, %v610_v24  ;;  %v640_v36 = vmax.f32 %v624_v25, 0.0  ;;  %v641_v37 = vmax.f32 %v625_v26, 0.0  ;;  %v642_v38 = vmax.f32 %v626_v27, 0.0  ;;  %v616_v46 = vld [vmem:[#allocation2 + $0x60] sm:$0xff]  ;;  %v618_v52 = vld [vmem:[#allocation2 + $0x78] sm:$0xff] }
 0x105   : > { %v631_v33 = vadd.f32 %v1006_v19, %v611_v29  ;;  %v643_v39 = vmax.f32 %v627_v28, 0.0  ;;  %v615_v41 = vld [vmem:[#allocation2 + $0x38] sm:$0xff]  ;;  %v644_v42 = vmax.f32 %v628_v30, 0.0  ;;  %v645_v43 = vmax.f32 %v629_v31, 0.0 }
 0x106   : > { %v646_v44 = vmax.f32 %v630_v32, 0.0  ;;  %v897_v48 = vpack.c.bf16 %v641_v37, %v640_v36  ;;  %v633_v51 = vadd.f32 %v1006_v19, %v613_v35  ;;  %v619_v53 = vld [vmem:[#allocation2 + $0x28] sm:$0xff]  ;;  %v635_v57 = vadd.f32 %v1006_v19, %v615_v41 }
 0x107   : > { %v647_v45 = vmax.f32 %v631_v33, 0.0  ;;  %v902_v49 = vpack.c.bf16 %v643_v39, %v642_v38  ;;  %v907_v54 = vpack.c.bf16 %v645_v43, %v644_v42  ;;  %v648_v58 = vmax.f32 %v632_v50, 0.0 }
 0x108   : > { %898 = vst [vmem:[%s1203_s3] sm:$0xff] %v897_v48   ;;  %v649_v59 = vmax.f32 %v633_v51, 0.0  ;;  %v636_v60 = vadd.f32 %v1006_v19, %v616_v46  ;;  %v637_v61 = vadd.f32 %v1006_v19, %v617_v47  ;;  %v650_v62 = vmax.f32 %v634_v56, 0.0 }
 0x109   : > { %v912_v55 = vpack.c.bf16 %v647_v45, %v646_v44  ;;  %934 = vst [vmem:[%s1203_s3 + $0x8] sm:$0xff] %v902_v49   ;;  %v651_v63 = vmax.f32 %v635_v57, 0.0  ;;  %v638_v0 = vadd.f32 %v1006_v19, %v618_v52  ;;  %v639_v1 = vadd.f32 %v1006_v19, %v619_v53 }
 0x10a   : > { %935 = vst [vmem:[%s1203_s3 + $0x10] sm:$0xff] %v907_v54   ;;  %v917_v2 = vpack.c.bf16 %v649_v59, %v648_v58  ;;  %v652_v3 = vmax.f32 %v636_v60, 0.0  ;;  %v653_v4 = vmax.f32 %v637_v61, 0.0 }
 0x10b   : > { %936 = vst [vmem:[%s1203_s3 + $0x18] sm:$0xff] %v912_v55   ;;  %v922_v5 = vpack.c.bf16 %v651_v63, %v650_v62  ;;  %v654_v6 = vmax.f32 %v638_v0, 0.0  ;;  %v655_v7 = vmax.f32 %v639_v1, 0.0 }
 0x10c   : > { %937 = vst [vmem:[%s1203_s3 + $0x20] sm:$0xff] %v917_v2   ;;  %v927_v8 = vpack.c.bf16 %v653_v4, %v652_v3 }
 0x10d   : > { %938 = vst [vmem:[%s1203_s3 + $0x28] sm:$0xff] %v922_v5   ;;  %v932_v9 = vpack.c.bf16 %v655_v7, %v654_v6 }
 0x10e   : > { %939 = vst [vmem:[%s1203_s3 + $0x30] sm:$0xff] %v927_v8  }
 0x10f   : > { %940 = vst [vmem:[%s1203_s3 + $0x38] sm:$0xff] %v932_v9  }
 0x110 PF: > { %s13_s16 = sadd.s32 1, %s1045_s16   ;;  %s1204_s12 = smov %s1033_s13 }
 0x111   : > { %p10_p12 = scmp.ge.s32.totalorder %s13_s16, 7   ;;  %s1205_s13 = smov %s1103_s20 }
 0x112   : > { %s1206_s14 = smov %s1041_s15  ;;  %s1207_s15 = smov %s1209_s17 }
 0x113   :  { %12 = sbr.rel (!%p10_p12) target bundleno = 3 (0x3), region = 122 }

// kernel: resnet34_trunk_forward.31
= control target key start
LH: loop header
LB: loop body
LE: loop exit
PB: predicated region body
PF: predicated region fallthrough
CT: control target
= control target key end

     0   :  { %s1239_s15 = smov 0   ;;  %s1241_s16 = smov 0   ;;  %s1413_s0 = inlined_call_operand.vmem [shape: bf16[128,640], index: 0, kind: input, shape index: {}]   ;;  %s1414_s1 = inlined_call_operand.vmem [shape: bf16[640,128], index: 1, kind: input, shape index: {}]   ;;  %s1415_s2 = inlined_call_operand.vmem [shape: f32[1,128], index: 2, kind: input, shape index: {}]   ;;  %s1416_s3 = inlined_call_operand.vmem [shape: bf16[128,128], index: 3, kind: input, shape index: {}]   ;;  %s1417_s4 = inlined_call_operand.vmem [shape: bf16[128,128], index: 4, kind: output, shape index: {}]  }
   0x1   :  { %s1243_s17 = smov 0   ;;  %s1245_s18 = smov 0  }
   0x2   :  { %s1247_s19 = smov 0  }
   0x3 LB: > { %s26_s20 = sadd.s32 1, %s1207_s18  ;;  %p49_p1 = scmp.ne.s32.totalorder %s1199_s16, %s1195_s15  ;;  %s1211_s19 = sphi %s1247_s19, %s14_s19   ;;  %s1207_s18 = sphi %s1245_s18, %s1421_s18   ;;  %s1203_s17 = sphi %s1243_s17, %s1420_s17   ;;  %s1199_s16 = sphi %s1241_s16, %s1419_s16   ;;  %s1195_s15 = sphi %s1239_s15, %s1418_s15  }
   0x4   : > { %p27_p0 = scmp.ge.s32.totalorder %s26_s20, 5  ;;  %p50_p2 = scmp.eq.s32.totalorder %s1211_s19, 0 }
   0x5   : > { %s42_s22 = sadd.s32 1, %s1199_s16  ;;  %p928_p5 = scmp.ge.s32.totalorder %s1211_s19, 5 }
   0x6   : > { %s1423_s20 = smov (%p27_p0, %s26_s20), 0  ;;  %p51_p3 = por %p50_p2, %p49_p1 }
   0x7   : > { %s38_s21 = ssub.s32 %s1207_s18, %s1423_s20  ;;  %203 = sbr.rel (%p928_p5) target bundleno = 32 (0x20), region = 24 }
   0x8   : > { %p40_p4 = scmp.eq.s32.totalorder %s38_s21, 0 }
   0xa   : > { %s1274_s23 = scalar_select %p40_p4, %s1199_s16, %s42_s22  }
   0xc   : > { %206 = sbr.rel (!%p51_p3) target bundleno = 32 (0x20), region = 28  ;;  %s208_s24 = sand.u32 (%p51_p3), 1, %s1199_s16  }
   0xd   : > { %s930_s25 = sshll.u32 (%p51_p3), %s1207_s18, 2  ;;  %s929_s26 = sshll.u32 (%p51_p3), %s208_s24, 6 }
   0xe   : > { %s1282_s29 = scalar_lea.vmem (%p51_p3), %s1413_s0, %s930_s25  ;;  %s210_s30 = scalar_lea.vmem (%p51_p3), [#allocation3], %s929_s26 }
   0xf   : > { %v232_v0 = vld [vmem:[%s1282_s29] sm:$0xf] (%p51_p3)  ;;  %v234_v1 = vld [vmem:[%s1282_s29 + $0x14] sm:$0xf] (%p51_p3)  ;;  %v236_v2 = vld [vmem:[%s1282_s29 + $0x28] sm:$0xf] (%p51_p3) }
  0x10   : > { %233 = vst [vmem:[%s210_s30] sm:$0xf] (%p51_p3), %v232_v0  ;;  %v238_v3 = vld [vmem:[%s1282_s29 + $0x3c] sm:$0xf] (%p51_p3)  ;;  %v240_v4 = vld [vmem:[%s1282_s29 + $0x50] sm:$0xf] (%p51_p3) }
  0x11   : > { %235 = vst [vmem:[%s210_s30 + $0x4] sm:$0xf] %v234_v1  ;;  %v242_v5 = vld [vmem:[%s1282_s29 + $0x64] sm:$0xf]  ;;  %v244_v6 = vld [vmem:[%s1282_s29 + $0x78] sm:$0xf] }
  0x12   : > { %237 = vst [vmem:[%s210_s30 + $0x8] sm:$0xf] %v236_v2  ;;  %v246_v7 = vld [vmem:[%s1282_s29 + $0x8c] sm:$0xf]  ;;  %v248_v8 = vld [vmem:[%s1282_s29 + $0xa0] sm:$0xf] }
  0x13   : > { %239 = vst [vmem:[%s210_s30 + $0xc] sm:$0xf] %v238_v3  ;;  %v250_v9 = vld [vmem:[%s1282_s29 + $0xb4] sm:$0xf]  ;;  %v252_v10 = vld [vmem:[%s1282_s29 + $0xc8] sm:$0xf] }
  0x14   : > { %241 = vst [vmem:[%s210_s30 + $0x10] sm:$0xf] %v240_v4  ;;  %v254_v11 = vld [vmem:[%s1282_s29 + $0xdc] sm:$0xf]  ;;  %v256_v12 = vld [vmem:[%s1282_s29 + $0xf0] sm:$0xf] }
  0x15   : > { %243 = vst [vmem:[%s210_s30 + $0x14] sm:$0xf] %v242_v5  ;;  %v258_v13 = vld [vmem:[%s1282_s29 + $0x104] sm:$0xf]  ;;  %v260_v14 = vld [vmem:[%s1282_s29 + $0x118] sm:$0xf] }
  0x16   : > { %245 = vst [vmem:[%s210_s30 + $0x18] sm:$0xf] %v244_v6  ;;  %v262_v15 = vld [vmem:[%s1282_s29 + $0x12c] sm:$0xf] }
  0x17   : > { %247 = vst [vmem:[%s210_s30 + $0x1c] sm:$0xf] %v246_v7 }
  0x18   : > { %249 = vst [vmem:[%s210_s30 + $0x20] sm:$0xf] %v248_v8 }
  0x19   : > { %251 = vst [vmem:[%s210_s30 + $0x24] sm:$0xf] %v250_v9 }
  0x1a   : > { %253 = vst [vmem:[%s210_s30 + $0x28] sm:$0xf] %v252_v10 }
  0x1b   : > { %255 = vst [vmem:[%s210_s30 + $0x2c] sm:$0xf] %v254_v11 }
  0x1c   : > { %257 = vst [vmem:[%s210_s30 + $0x30] sm:$0xf] %v256_v12 }
  0x1d   : > { %259 = vst [vmem:[%s210_s30 + $0x34] sm:$0xf] %v258_v13 }
  0x1e   : > { %261 = vst [vmem:[%s210_s30 + $0x38] sm:$0xf] %v260_v14 }
  0x1f   : > { %263 = vst [vmem:[%s210_s30 + $0x3c] sm:$0xf] %v262_v15 }
  0x20 PF: > { %p931_p6 = scmp.ge.s32.totalorder %s1211_s19, 1  ;;  %p330_p7 = scmp.lt.s32.totalorder %s1211_s19, 6 }
  0x22   : > { %p331_p8 = pnand %p931_p6, %p330_p7 }
  0x23   : > { %s337_s5 = sand.u32 (!%p331_p8), 1, %s1195_s15   ;;  %s933_s6 = sshll.u32 (!%p331_p8), %s1203_s17, 4 }
  0x24   : > { %334 = sbr.rel (%p331_p8) target bundleno = 282 (0x11a), region = 73  ;;  %s932_s7 = sshll.u32 (!%p331_p8), %s337_s5, 6 }
  0x25   : > { %p386_p9 = scmp.lt.s32.totalorder (!%p331_p8), %s933_s6, 79  ;;  %s1309_s12 = scalar_lea.vmem (!%p331_p8), [#allocation3], %s932_s7 }
  0x26   : > { %p935_p10 = scmp.ne.s32.totalorder (!%p331_p8), %s1203_s17, 0 }
  0x29   : > { %s1425_s6 = smov (!%p386_p9, %s933_s6), 79  ;;  %418 = sbr.rel (%p935_p10) target bundleno = 63 (0x3f), region = 81 }
  0x2a   : > { %s934_s8 = sshll.u32 %s1425_s6, 2 }
  0x2b   : > { %s1307_s11 = scalar_lea.vmem %s1414_s1, %s934_s8 }
  0x2e   : > { %v1213_v16 = vmov 0.0  }
  0x2f   : > { %419 = vst [vmem:[#allocation2 + $0x30] sm:$0xff] %v1213_v16 }
  0x30   : > { %420 = vst [vmem:[#allocation2] sm:$0xff] %v1213_v16 }
  0x31   : > { %421 = vst [vmem:[#allocation2 + $0x58] sm:$0xff] %v1213_v16 }
  0x32   : > { %422 = vst [vmem:[#allocation2 + $0x18] sm:$0xff] %v1213_v16 }
  0x33   : > { %423 = vst [vmem:[#allocation2 + $0x50] sm:$0xff] %v1213_v16 }
  0x34   : > { %424 = vst [vmem:[#allocation2 + $0x68] sm:$0xff] %v1213_v16 }
  0x35   : > { %425 = vst [vmem:[#allocation2 + $0x8] sm:$0xff] %v1213_v16 }
  0x36   : > { %426 = vst [vmem:[#allocation2 + $0x48] sm:$0xff] %v1213_v16 }
  0x37   : > { %427 = vst [vmem:[#allocation2 + $0x40] sm:$0xff] %v1213_v16 }
  0x38   : > { %428 = vst [vmem:[#allocation2 + $0x20] sm:$0xff] %v1213_v16 }
  0x39   : > { %429 = vst [vmem:[#allocation2 + $0x10] sm:$0xff] %v1213_v16 }
  0x3a   : > { %430 = vst [vmem:[#allocation2 + $0x38] sm:$0xff] %v1213_v16 }
  0x3b   : > { %431 = vst [vmem:[#allocation2 + $0x60] sm:$0xff] %v1213_v16 }
  0x3c   : > { %432 = vst [vmem:[#allocation2 + $0x70] sm:$0xff] %v1213_v16 }
  0x3d   : > { %433 = vst [vmem:[#allocation2 + $0x78] sm:$0xff] %v1213_v16 }
  0x3e   : > { %434 = vst [vmem:[#allocation2 + $0x28] sm:$0xff] %v1213_v16 }
  0x3f PF: > { %v1020_v17 = vld [vmem:[%s1307_s11 + $0x38] sm:$0xff]  ;;  %v1019_v18 = vld [vmem:[%s1307_s11 + $0x30] sm:$0xff]  ;;  %v1018_v19 = vld [vmem:[%s1307_s11 + $0x28] sm:$0xff]  ;;  %p1000_p11 = scmp.ne.s32.totalorder %s1203_s17, 4 }
  0x40   : > { %579 = vmatpush.bf16.msra.mxu0 %v1020_v17  ;;  %1107 = vmatpush.bf16.msra.mxu1 %v1020_v17  ;;  %v1017_v20 = vld [vmem:[%s1307_s11 + $0x20] sm:$0xff]  ;;  %v1016_v21 = vld [vmem:[%s1307_s11 + $0x18] sm:$0xff]  ;;  %v1015_v22 = vld [vmem:[%s1307_s11 + $0x10] sm:$0xff] }
  0x41   : > { %1108 = vmatpush.bf16.msra.mxu2 %v1020_v17  ;;  %1109 = vmatpush.bf16.msra.mxu3 %v1020_v17  ;;  %v1014_v23 = vld [vmem:[%s1307_s11 + $0x8] sm:$0xff]  ;;  %v1013_v24 = vld [vmem:[%s1307_s11] sm:$0xff]  ;;  %v1007_v26 = vld [vmem:[%s1309_s12 + $0x10] sm:$0xff] }
  0x42   : > { %v1005_v25 = vld [vmem:[%s1309_s12] sm:$0xff]  ;;  %v1011_v28 = vld [vmem:[%s1309_s12 + $0x30] sm:$0xff]  ;;  %v1006_v29 = vld [vmem:[%s1309_s12 + $0x8] sm:$0xff] }
  0x43   : > { %v1009_v27 = vld [vmem:[%s1309_s12 + $0x20] sm:$0xff]  ;;  %v1008_v30 = vld [vmem:[%s1309_s12 + $0x18] sm:$0xff]  ;;  %v1010_v31 = vld [vmem:[%s1309_s12 + $0x28] sm:$0xff] }
  0x44   : > { %580 = vmatpush.bf16.msra.mxu0 %v1019_v18  ;;  %1110 = vmatpush.bf16.msra.mxu1 %v1019_v18  ;;  %v1012_v32 = vld [vmem:[%s1309_s12 + $0x38] sm:$0xff]  ;;  %v435_v33 = vld [vmem:[#allocation2 + $0x30] sm:$0xff]  ;;  %v443_v39 = vld [vmem:[#allocation2 + $0x40] sm:$0xff] }
  0x45   : > { %1111 = vmatpush.bf16.msra.mxu2 %v1019_v18  ;;  %1112 = vmatpush.bf16.msra.mxu3 %v1019_v18  ;;  %v439_v34 = vld [vmem:[#allocation2 + $0x50] sm:$0xff]  ;;  %v447_v40 = vld [vmem:[#allocation2 + $0x60] sm:$0xff]  ;;  %v440_v42 = vld [vmem:[#allocation2 + $0x68] sm:$0xff] }
  0x46   : > { %v436_v41 = vld [vmem:[#allocation2] sm:$0xff]  ;;  %v448_v52 = vld [vmem:[#allocation2 + $0x70] sm:$0xff]  ;;  %v437_v53 = vld [vmem:[#allocation2 + $0x58] sm:$0xff] }
  0x47   : > { %v444_v51 = vld [vmem:[#allocation2 + $0x20] sm:$0xff]  ;;  %v441_v54 = vld [vmem:[#allocation2 + $0x8] sm:$0xff]  ;;  %v445_v63 = vld [vmem:[#allocation2 + $0x10] sm:$0xff] }
  0x48   : > { %581 = vmatpush.bf16.msra.mxu0 %v1018_v19  ;;  %1113 = vmatpush.bf16.msra.mxu1 %v1018_v19  ;;  %v449_v0 = vld [vmem:[#allocation2 + $0x78] sm:$0xff]  ;;  %v442_v2 = vld [vmem:[#allocation2 + $0x48] sm:$0xff] }
  0x49   : > { %1114 = vmatpush.bf16.msra.mxu2 %v1018_v19  ;;  %1115 = vmatpush.bf16.msra.mxu3 %v1018_v19  ;;  %v438_v1 = vld [vmem:[#allocation2 + $0x18] sm:$0xff]  ;;  %v450_v12 = vld [vmem:[#allocation2 + $0x28] sm:$0xff] }
  0x4a   : > { %v446_v11 = vld [vmem:[#allocation2 + $0x38] sm:$0xff] }
  0x4c   : > { %582 = vmatpush.bf16.msra.mxu0 %v1017_v20  ;;  %1116 = vmatpush.bf16.msra.mxu1 %v1017_v20 }
  0x4d   : > { %1117 = vmatpush.bf16.msra.mxu2 %v1017_v20  ;;  %1118 = vmatpush.bf16.msra.mxu3 %v1017_v20 }
  0x50   : > { %583 = vmatpush.bf16.msra.mxu0 %v1016_v21  ;;  %1119 = vmatpush.bf16.msra.mxu1 %v1016_v21 }
  0x51   : > { %1120 = vmatpush.bf16.msra.mxu2 %v1016_v21  ;;  %1121 = vmatpush.bf16.msra.mxu3 %v1016_v21 }
  0x54   : > { %584 = vmatpush.bf16.msra.mxu0 %v1015_v22  ;;  %1122 = vmatpush.bf16.msra.mxu1 %v1015_v22 }
  0x55   : > { %1123 = vmatpush.bf16.msra.mxu2 %v1015_v22  ;;  %1124 = vmatpush.bf16.msra.mxu3 %v1015_v22 }
  0x58   : > { %585 = vmatpush.bf16.msra.mxu0 %v1014_v23  ;;  %1125 = vmatpush.bf16.msra.mxu1 %v1014_v23 }
  0x59   : > { %1126 = vmatpush.bf16.msra.mxu2 %v1014_v23  ;;  %1127 = vmatpush.bf16.msra.mxu3 %v1014_v23 }
  0x5c   : > { %586 = vmatpush.bf16.msra.mxu0 %v1013_v24  ;;  %1128 = vmatpush.bf16.msra.mxu1 %v1013_v24 }
  0x5d   : > { %1129 = vmatpush.bf16.msra.mxu2 %v1013_v24  ;;  %1130 = vmatpush.bf16.msra.mxu3 %v1013_v24 }
  0x5f   : > { %587 = vmatmul.bf16.vlgmr.msra.gmra.mxu0 %v1005_v25  ;;  %597 = vmatmul.bf16.vlgmr.msra.gmra.mxu1 %v1007_v26 }
  0x60   : > { %607 = vmatmul.bf16.vlgmr.msra.gmra.mxu2 %v1009_v27  ;;  %617 = vmatmul.bf16.vlgmr.msra.gmra.mxu3 %v1011_v28 }
  0x6f   : > { %592 = vmatmul.bf16.gmra.mxu0 %v1006_v29  ;;  %602 = vmatmul.bf16.gmra.mxu1 %v1008_v30 }
  0x70   : > { %612 = vmatmul.bf16.gmra.mxu2 %v1010_v31  ;;  %622 = vmatmul.bf16.gmra.mxu3 %v1012_v32 }
  0xdc   : > { %v588_v35 = vpop.f32.mrf.mxu0  ;;  %v598_v36 = vpop.f32.mrf.mxu1 }
  0xdd   : > { %v628_v37 = vadd.f32 %v588_v35, %v435_v33  ;;  %v632_v38 = vadd.f32 %v598_v36, %v439_v34 }
  0xdf   : > { %644 = vst [vmem:[#allocation2 + $0x30] sm:$0xff] %v628_v37 }
  0xe0   : > { %648 = vst [vmem:[#allocation2 + $0x50] sm:$0xff] %v632_v38 }
  0xe3   : > { %v608_v43 = vpop.f32.mrf.mxu2  ;;  %v618_v44 = vpop.f32.mrf.mxu3 }
  0xe4   : > { %v636_v45 = vadd.f32 %v608_v43, %v443_v39  ;;  %v640_v46 = vadd.f32 %v618_v44, %v447_v40  ;;  %v590_v47 = vpop.f32.mrf.mxu0  ;;  %v600_v48 = vpop.f32.mrf.mxu1 }
  0xe5   : > { %v629_v49 = vadd.f32 %v590_v47, %v436_v41  ;;  %v633_v50 = vadd.f32 %v600_v48, %v440_v42 }
  0xe6   : > { %652 = vst [vmem:[#allocation2 + $0x40] sm:$0xff] %v636_v45 }
  0xe7   : > { %656 = vst [vmem:[#allocation2 + $0x60] sm:$0xff] %v640_v46 }
  0xe8   : > { %645 = vst [vmem:[#allocation2] sm:$0xff] %v629_v49 }
  0xe9   : > { %649 = vst [vmem:[#allocation2 + $0x68] sm:$0xff] %v633_v50 }
  0xeb   : > { %v610_v55 = vpop.f32.mrf.mxu2  ;;  %v620_v56 = vpop.f32.mrf.mxu3 }
  0xec   : > { %v637_v57 = vadd.f32 %v610_v55, %v444_v51  ;;  %v641_v58 = vadd.f32 %v620_v56, %v448_v52  ;;  %v593_v59 = vpop.f32.mrf.mxu0  ;;  %v603_v60 = vpop.f32.mrf.mxu1 }
  0xed   : > { %v630_v61 = vadd.f32 %v593_v59, %v437_v53  ;;  %v634_v62 = vadd.f32 %v603_v60, %v441_v54 }
  0xee   : > { %653 = vst [vmem:[#allocation2 + $0x20] sm:$0xff] %v637_v57 }
  0xef   : > { %657 = vst [vmem:[#allocation2 + $0x70] sm:$0xff] %v641_v58 }
  0xf0   : > { %646 = vst [vmem:[#allocation2 + $0x58] sm:$0xff] %v630_v61 }
  0xf1   : > { %650 = vst [vmem:[#allocation2 + $0x8] sm:$0xff] %v634_v62 }
  0xf3   : > { %v613_v3 = vpop.f32.mrf.mxu2  ;;  %v623_v4 = vpop.f32.mrf.mxu3 }
  0xf4   : > { %v638_v5 = vadd.f32 %v613_v3, %v445_v63  ;;  %v642_v6 = vadd.f32 %v623_v4, %v449_v0  ;;  %v595_v7 = vpop.f32.mrf.mxu0  ;;  %v605_v8 = vpop.f32.mrf.mxu1 }
  0xf5   : > { %v631_v9 = vadd.f32 %v595_v7, %v438_v1  ;;  %v635_v10 = vadd.f32 %v605_v8, %v442_v2 }
  0xf6   : > { %654 = vst [vmem:[#allocation2 + $0x10] sm:$0xff] %v638_v5 }
  0xf7   : > { %658 = vst [vmem:[#allocation2 + $0x78] sm:$0xff] %v642_v6 }
  0xf8   : > { %647 = vst [vmem:[#allocation2 + $0x18] sm:$0xff] %v631_v9 }
  0xf9   : > { %651 = vst [vmem:[#allocation2 + $0x48] sm:$0xff] %v635_v10 }
  0xfb   : > { %v615_v13 = vpop.f32.mrf.mxu2  ;;  %v625_v14 = vpop.f32.mrf.mxu3  ;;  %663 = sbr.rel (%p1000_p11) target bundleno = 282 (0x11a), region = 85 }
  0xfc   : > { %v639_v15 = vadd.f32 %v615_v13, %v446_v11  ;;  %v643_v16 = vadd.f32 %v625_v14, %v450_v12 }
  0xfe   : > { %655 = vst [vmem:[#allocation2 + $0x38] sm:$0xff] %v639_v15 }
  0xff   : > { %659 = vst [vmem:[#allocation2 + $0x28] sm:$0xff] %v643_v16 }
 0x100   : > { %v664_v17 = vld [vmem:[#allocation2 + $0x30] sm:$0xff]  ;;  %v665_v18 = vld [vmem:[#allocation2] sm:$0xff]  ;;  %v666_v21 = vld [vmem:[#allocation2 + $0x58] sm:$0xff] }
 0x101   : > { %v1332_v19 = vld [vmem:[%s1415_s2] ss:$0 sm:$0xff]  ;;  %v667_v24 = vld [vmem:[#allocation2 + $0x18] sm:$0xff]  ;;  %v1093_v25 = vld [vmem:[%s1416_s3 + $0x8] sm:$0xff]  }
 0x102   : > { %v1022_v20 = vld [vmem:[%s1416_s3] sm:$0xff]   ;;  %v668_v26 = vld [vmem:[#allocation2 + $0x50] sm:$0xff]  ;;  %v684_v27 = vadd.f32 %v1332_v19, %v664_v17  ;;  %v685_v28 = vadd.f32 %v1332_v19, %v665_v18  ;;  %v686_v29 = vadd.f32 %v1332_v19, %v666_v21  ;;  %v687_v30 = vadd.f32 %v1332_v19, %v667_v24  ;;  %v669_v31 = vld [vmem:[#allocation2 + $0x68] sm:$0xff] }
 0x103   : > { %v1023_v22 = vunpack.c.l.bf16 %v1022_v20  ;;  %v1024_v23 = vunpack.c.h.bf16 %v1022_v20  ;;  %v1094_v32 = vld [vmem:[%s1416_s3 + $0x10] sm:$0xff]   ;;  %v670_v33 = vld [vmem:[#allocation2 + $0x8] sm:$0xff]  ;;  %v1027_v34 = vunpack.c.l.bf16 %v1093_v25  ;;  %v1028_v35 = vunpack.c.h.bf16 %v1093_v25  ;;  %v1095_v43 = vld [vmem:[%s1416_s3 + $0x18] sm:$0xff]  }
 0x104   : > { %v688_v36 = vadd.f32 %v1332_v19, %v668_v26  ;;  %v689_v37 = vadd.f32 %v1332_v19, %v669_v31  ;;  %v671_v38 = vld [vmem:[#allocation2 + $0x48] sm:$0xff]  ;;  %v1031_v41 = vunpack.c.l.bf16 %v1094_v32  ;;  %v1032_v42 = vunpack.c.h.bf16 %v1094_v32  ;;  %v672_v48 = vld [vmem:[#allocation2 + $0x40] sm:$0xff]  ;;  %v674_v59 = vld [vmem:[#allocation2 + $0x10] sm:$0xff] }
 0x105   : > { %v732_v39 = vadd.f32 %v1023_v22, %v684_v27  ;;  %v733_v40 = vadd.f32 %v1024_v23, %v685_v28  ;;  %v734_v44 = vadd.f32 %v1027_v34, %v686_v29  ;;  %v735_v45 = vadd.f32 %v1028_v35, %v687_v30  ;;  %v673_v53 = vld [vmem:[#allocation2 + $0x20] sm:$0xff]  ;;  %v675_v0 = vld [vmem:[#allocation2 + $0x38] sm:$0xff]  ;;  %v1097_v1 = vld [vmem:[%s1416_s3 + $0x28] sm:$0xff]  }
 0x106   : > { %v690_v46 = vadd.f32 %v1332_v19, %v670_v33  ;;  %v691_v47 = vadd.f32 %v1332_v19, %v671_v38  ;;  %v736_v51 = vadd.f32 %v1031_v41, %v688_v36  ;;  %v737_v52 = vadd.f32 %v1032_v42, %v689_v37  ;;  %v1096_v58 = vld [vmem:[%s1416_s3 + $0x20] sm:$0xff]   ;;  %v677_v11 = vld [vmem:[#allocation2 + $0x70] sm:$0xff]  ;;  %v678_v22 = vld [vmem:[#allocation2 + $0x78] sm:$0xff] }
 0x107   : > { %v748_v49 = vmax.f32 %v732_v39, 0.0  ;;  %v749_v50 = vmax.f32 %v733_v40, 0.0  ;;  %v750_v54 = vmax.f32 %v734_v44, 0.0  ;;  %v751_v55 = vmax.f32 %v735_v45, 0.0  ;;  %v676_v6 = vld [vmem:[#allocation2 + $0x60] sm:$0xff]  ;;  %v1098_v12 = vld [vmem:[%s1416_s3 + $0x30] sm:$0xff]  }
 0x108   : > { %v1035_v56 = vunpack.c.l.bf16 %v1095_v43  ;;  %v1036_v57 = vunpack.c.h.bf16 %v1095_v43  ;;  %v752_v61 = vmax.f32 %v736_v51, 0.0  ;;  %v753_v62 = vmax.f32 %v737_v52, 0.0  ;;  %v679_v23 = vld [vmem:[#allocation2 + $0x28] sm:$0xff]  ;;  %v1099_v28 = vld [vmem:[%s1416_s3 + $0x38] sm:$0xff]  }
 0x109   : > { %v1056_v60 = vpack.c.bf16 %v749_v50, %v748_v49  ;;  %v692_v63 = vadd.f32 %v1332_v19, %v672_v48  ;;  %v1061_v2 = vpack.c.bf16 %v751_v55, %v750_v54  ;;  %v693_v5 = vadd.f32 %v1332_v19, %v673_v53 }
 0x10a   : > { %v738_v3 = vadd.f32 %v1035_v56, %v690_v46  ;;  %v739_v4 = vadd.f32 %v1036_v57, %v691_v47  ;;  %v1066_v7 = vpack.c.bf16 %v753_v62, %v752_v61  ;;  %v1039_v8 = vunpack.c.l.bf16 %v1096_v58 }
 0x10b   : > { %1057 = vst [vmem:[%s1417_s4] sm:$0xff] %v1056_v60   ;;  %v1040_v9 = vunpack.c.h.bf16 %v1096_v58  ;;  %v694_v10 = vadd.f32 %v1332_v19, %v674_v59  ;;  %v695_v15 = vadd.f32 %v1332_v19, %v675_v0  ;;  %v1043_v16 = vunpack.c.l.bf16 %v1097_v1 }
 0x10c   : > { %1100 = vst [vmem:[%s1417_s4 + $0x8] sm:$0xff] %v1061_v2   ;;  %v754_v13 = vmax.f32 %v738_v3, 0.0  ;;  %v755_v14 = vmax.f32 %v739_v4, 0.0  ;;  %v740_v17 = vadd.f32 %v1039_v8, %v692_v63  ;;  %v1044_v20 = vunpack.c.h.bf16 %v1097_v1 }
 0x10d   : > { %1101 = vst [vmem:[%s1417_s4 + $0x10] sm:$0xff] %v1066_v7   ;;  %v741_v18 = vadd.f32 %v1040_v9, %v693_v5  ;;  %v696_v21 = vadd.f32 %v1332_v19, %v676_v6  ;;  %v742_v25 = vadd.f32 %v1043_v16, %v694_v10  ;;  %v697_v26 = vadd.f32 %v1332_v19, %v677_v11 }
 0x10e   : > { %v1071_v24 = vpack.c.bf16 %v755_v14, %v754_v13  ;;  %v1047_v27 = vunpack.c.l.bf16 %v1098_v12  ;;  %v756_v29 = vmax.f32 %v740_v17, 0.0  ;;  %v743_v31 = vadd.f32 %v1044_v20, %v695_v15 }
 0x10f   : > { %v757_v30 = vmax.f32 %v741_v18, 0.0  ;;  %v1048_v32 = vunpack.c.h.bf16 %v1098_v12  ;;  %v758_v33 = vmax.f32 %v742_v25, 0.0  ;;  %v698_v35 = vadd.f32 %v1332_v19, %v678_v22 }
 0x110   : > { %1102 = vst [vmem:[%s1417_s4 + $0x18] sm:$0xff] %v1071_v24   ;;  %v744_v34 = vadd.f32 %v1047_v27, %v696_v21  ;;  %v699_v36 = vadd.f32 %v1332_v19, %v679_v23  ;;  %v759_v38 = vmax.f32 %v743_v31, 0.0  ;;  %v1051_v40 = vunpack.c.l.bf16 %v1099_v28 }
 0x111   : > { %v1076_v37 = vpack.c.bf16 %v757_v30, %v756_v29  ;;  %v745_v39 = vadd.f32 %v1048_v32, %v697_v26  ;;  %v1052_v42 = vunpack.c.h.bf16 %v1099_v28 }
 0x112   : > { %v760_v41 = vmax.f32 %v744_v34, 0.0  ;;  %v1081_v43 = vpack.c.bf16 %v759_v38, %v758_v33  ;;  %v746_v45 = vadd.f32 %v1051_v40, %v698_v35 }
 0x113   : > { %1103 = vst [vmem:[%s1417_s4 + $0x20] sm:$0xff] %v1076_v37   ;;  %v761_v44 = vmax.f32 %v745_v39, 0.0  ;;  %v747_v46 = vadd.f32 %v1052_v42, %v699_v36 }
 0x114   : > { %1104 = vst [vmem:[%s1417_s4 + $0x28] sm:$0xff] %v1081_v43   ;;  %v762_v19 = vmax.f32 %v746_v45, 0.0 }
 0x115   : > { %v1086_v47 = vpack.c.bf16 %v761_v44, %v760_v41  ;;  %v763_v48 = vmax.f32 %v747_v46, 0.0 }
 0x117   : > { %1105 = vst [vmem:[%s1417_s4 + $0x30] sm:$0xff] %v1086_v47   ;;  %v1091_v49 = vpack.c.bf16 %v763_v48, %v762_v19 }
 0x119   : > { %1106 = vst [vmem:[%s1417_s4 + $0x38] sm:$0xff] %v1091_v49  }
 0x11a PF: > { %s14_s19 = sadd.s32 1, %s1211_s19   ;;  %s1418_s15 = smov %s1199_s16 }
 0x11b   : > { %p11_p12 = scmp.ge.s32.totalorder %s14_s19, 7   ;;  %s1419_s16 = smov %s1274_s23 }
 0x11c   : > { %s1420_s17 = smov %s1207_s18  ;;  %s1421_s18 = smov %s1423_s20 }
 0x11d   :  { %13 = sbr.rel (!%p11_p12) target bundleno = 3 (0x3), region = 129 }

// kernel: resnet34_trunk_forward.37
= control target key start
LH: loop header
LB: loop body
LE: loop exit
PB: predicated region body
PF: predicated region fallthrough
CT: control target
= control target key end

     0   :  { %s752_s12 = smov 0   ;;  %s754_s13 = smov 0   ;;  %s845_s0 = inlined_call_operand.vmem [shape: bf16[32,640], index: 0, kind: input, shape index: {}]   ;;  %s846_s1 = inlined_call_operand.vmem [shape: bf16[640,128], index: 1, kind: input, shape index: {}]   ;;  %s847_s2 = inlined_call_operand.vmem [shape: f32[1,128], index: 2, kind: input, shape index: {}]   ;;  %s848_s3 = inlined_call_operand.vmem [shape: bf16[32,128], index: 3, kind: output, shape index: {}]  }
   0x1   :  { %s756_s14 = smov 0   ;;  %s758_s15 = smov 0  }
   0x2   :  { %s760_s16 = smov 0  }
   0x3 LB: > { %s25_s17 = sadd.s32 1, %s725_s15  ;;  %p48_p1 = scmp.ne.s32.totalorder %s717_s13, %s713_s12  ;;  %s729_s16 = sphi %s760_s16, %s13_s16   ;;  %s725_s15 = sphi %s758_s15, %s852_s15   ;;  %s721_s14 = sphi %s756_s14, %s851_s14   ;;  %s717_s13 = sphi %s754_s13, %s850_s13   ;;  %s713_s12 = sphi %s752_s12, %s849_s12  }
   0x4   : > { %p26_p0 = scmp.ge.s32.totalorder %s25_s17, 5  ;;  %p49_p2 = scmp.eq.s32.totalorder %s729_s16, 0 }
   0x5   : > { %s41_s19 = sadd.s32 1, %s717_s13  ;;  %p567_p5 = scmp.ge.s32.totalorder %s729_s16, 5 }
   0x6   : > { %s854_s17 = smov (%p26_p0, %s25_s17), 0  ;;  %p50_p3 = por %p49_p2, %p48_p1 }
   0x7   : > { %s37_s18 = ssub.s32 %s725_s15, %s854_s17  ;;  %162 = sbr.rel (%p567_p5) target bundleno = 20 (0x14), region = 20 }
   0x8   : > { %p39_p4 = scmp.eq.s32.totalorder %s37_s18, 0 }
   0xa   : > { %s787_s20 = scalar_select %p39_p4, %s717_s13, %s41_s19  }
   0xc   : > { %165 = sbr.rel (!%p50_p3) target bundleno = 20 (0x14), region = 24  ;;  %s167_s21 = sand.u32 (%p50_p3), 1, %s717_s13  }
   0xd   : > { %s569_s22 = sshll.u32 (%p50_p3), %s725_s15, 2  ;;  %s568_s23 = sshll.u32 (%p50_p3), %s167_s21, 4 }
   0xe   : > { %s174_s26 = scalar_lea.vmem (%p50_p3), %s845_s0, %s569_s22  ;;  %s169_s27 = scalar_lea.vmem (%p50_p3), [#allocation3], %s568_s23 }
   0xf   : > { %v191_v0 = vld [vmem:[%s174_s26] sm:$0xf] (%p50_p3)  ;;  %v193_v1 = vld [vmem:[%s174_s26 + $0x14] sm:$0xf] (%p50_p3)  ;;  %v195_v2 = vld [vmem:[%s174_s26 + $0x28] sm:$0xf] (%p50_p3) }
  0x10   : > { %192 = vst [vmem:[%s169_s27] sm:$0xf] (%p50_p3), %v191_v0  ;;  %v197_v3 = vld [vmem:[%s174_s26 + $0x3c] sm:$0xf] (%p50_p3) }
  0x11   : > { %194 = vst [vmem:[%s169_s27 + $0x4] sm:$0xf] %v193_v1 }
  0x12   : > { %196 = vst [vmem:[%s169_s27 + $0x8] sm:$0xf] %v195_v2 }
  0x13   : > { %198 = vst [vmem:[%s169_s27 + $0xc] sm:$0xf] %v197_v3 }
  0x14 PF: > { %p570_p6 = scmp.ge.s32.totalorder %s729_s16, 1  ;;  %p241_p7 = scmp.lt.s32.totalorder %s729_s16, 6 }
  0x16   : > { %p242_p8 = pnand %p570_p6, %p241_p7 }
  0x17   : > { %s248_s28 = sand.u32 (!%p242_p8), 1, %s713_s12   ;;  %s572_s29 = sshll.u32 (!%p242_p8), %s721_s14, 4 }
  0x18   : > { %245 = sbr.rel (%p242_p8) target bundleno = 223 (0xdf), region = 69  ;;  %s799_s30 = sshll.u32 (!%p242_p8), %s248_s28, 4 }
  0x19   : > { %p287_p9 = scmp.lt.s32.totalorder (!%p242_p8), %s572_s29, 79  ;;  %s250_s8 = scalar_lea.vmem (!%p242_p8), [#allocation3], %s799_s30 }
  0x1a   : > { %p574_p10 = scmp.ne.s32.totalorder (!%p242_p8), %s721_s14, 0 }
  0x1d   : > { %s856_s29 = smov (!%p287_p9, %s572_s29), 79  ;;  %310 = sbr.rel (%p574_p10) target bundleno = 39 (0x27), region = 77 }
  0x1e   : > { %s573_s4 = sshll.u32 %s856_s29, 2 }
  0x1f   : > { %s804_s7 = scalar_lea.vmem %s846_s1, %s573_s4 }
  0x22   : > { %v731_v4 = vmov 0.0  }
  0x23   : > { %311 = vst [vmem:[#allocation2 + $0x10] sm:$0xff] %v731_v4 }
  0x24   : > { %312 = vst [vmem:[#allocation2] sm:$0xff] %v731_v4 }
  0x25   : > { %313 = vst [vmem:[#allocation2 + $0x18] sm:$0xff] %v731_v4 }
  0x26   : > { %314 = vst [vmem:[#allocation2 + $0x8] sm:$0xff] %v731_v4 }
  0x27 PF: > { %v629_v5 = vld [vmem:[%s804_s7 + $0x38] sm:$0xff]  ;;  %v628_v6 = vld [vmem:[%s804_s7 + $0x30] sm:$0xff]  ;;  %v627_v7 = vld [vmem:[%s804_s7 + $0x28] sm:$0xff]  ;;  %p615_p11 = scmp.ne.s32.totalorder %s721_s14, 4 }
  0x28   : > { %399 = vmatpush.bf16.msra.mxu0 %v629_v5  ;;  %641 = vmatpush.bf16.msra.mxu1 %v629_v5  ;;  %v626_v8 = vld [vmem:[%s804_s7 + $0x20] sm:$0xff]  ;;  %v625_v9 = vld [vmem:[%s804_s7 + $0x18] sm:$0xff]  ;;  %v624_v10 = vld [vmem:[%s804_s7 + $0x10] sm:$0xff] }
  0x29   : > { %v623_v11 = vld [vmem:[%s804_s7 + $0x8] sm:$0xff]  ;;  %v622_v12 = vld [vmem:[%s804_s7] sm:$0xff] }
  0x2a   : > { %v620_v13 = vld [vmem:[%s250_s8] sm:$0xff]  ;;  %v621_v14 = vld [vmem:[%s250_s8 + $0x8] sm:$0xff] }
  0x2b   : > { %v315_v15 = vld [vmem:[#allocation2 + $0x10] sm:$0xff]  ;;  %v316_v21 = vld [vmem:[#allocation2] sm:$0xff] }
  0x2c   : > { %400 = vmatpush.bf16.msra.mxu0 %v628_v6  ;;  %642 = vmatpush.bf16.msra.mxu1 %v628_v6  ;;  %v317_v16 = vld [vmem:[#allocation2 + $0x18] sm:$0xff] }
  0x2d   : > { %v318_v22 = vld [vmem:[#allocation2 + $0x8] sm:$0xff] }
  0x30   : > { %401 = vmatpush.bf16.msra.mxu0 %v627_v7  ;;  %643 = vmatpush.bf16.msra.mxu1 %v627_v7 }
  0x34   : > { %402 = vmatpush.bf16.msra.mxu0 %v626_v8  ;;  %644 = vmatpush.bf16.msra.mxu1 %v626_v8 }
  0x38   : > { %403 = vmatpush.bf16.msra.mxu0 %v625_v9  ;;  %645 = vmatpush.bf16.msra.mxu1 %v625_v9 }
  0x3c   : > { %404 = vmatpush.bf16.msra.mxu0 %v624_v10  ;;  %646 = vmatpush.bf16.msra.mxu1 %v624_v10 }
  0x40   : > { %405 = vmatpush.bf16.msra.mxu0 %v623_v11  ;;  %647 = vmatpush.bf16.msra.mxu1 %v623_v11 }
  0x44   : > { %406 = vmatpush.bf16.msra.mxu0 %v622_v12  ;;  %648 = vmatpush.bf16.msra.mxu1 %v622_v12 }
  0x47   : > { %407 = vmatmul.bf16.vlgmr.msra.gmra.mxu0 %v620_v13  ;;  %412 = vmatmul.bf16.vlgmr.msra.gmra.mxu1 %v621_v14 }
  0xc4   : > { %v408_v17 = vpop.f32.mrf.mxu0  ;;  %v413_v18 = vpop.f32.mrf.mxu1 }
  0xc5   : > { %v418_v19 = vadd.f32 %v408_v17, %v315_v15  ;;  %v420_v20 = vadd.f32 %v413_v18, %v317_v16 }
  0xc7   : > { %422 = vst [vmem:[#allocation2 + $0x10] sm:$0xff] %v418_v19 }
  0xc8   : > { %424 = vst [vmem:[#allocation2 + $0x18] sm:$0xff] %v420_v20 }
  0xcc   : > { %v410_v23 = vpop.f32.mrf.mxu0  ;;  %v415_v24 = vpop.f32.mrf.mxu1  ;;  %429 = sbr.rel (%p615_p11) target bundleno = 223 (0xdf), region = 81 }
  0xcd   : > { %v419_v25 = vadd.f32 %v410_v23, %v316_v21  ;;  %v421_v26 = vadd.f32 %v415_v24, %v318_v22 }
  0xcf   : > { %423 = vst [vmem:[#allocation2] sm:$0xff] %v419_v25 }
  0xd0   : > { %425 = vst [vmem:[#allocation2 + $0x8] sm:$0xff] %v421_v26 }
  0xd1   : > { %v430_v27 = vld [vmem:[#allocation2 + $0x10] sm:$0xff]  ;;  %v690_v29 = vld [vmem:[%s847_s2] ss:$0 sm:$0xff]  ;;  %v432_v30 = vld [vmem:[#allocation2 + $0x18] sm:$0xff] }
  0xd2   : > { %v438_v32 = vadd.f32 %v690_v29, %v430_v27  ;;  %v440_v34 = vadd.f32 %v690_v29, %v432_v30 }
  0xd4   : > { %v442_v36 = vmax.f32 %v438_v32, 0.0  ;;  %v444_v38 = vmax.f32 %v440_v34, 0.0 }
  0xd6   : > { %v431_v28 = vld [vmem:[#allocation2] sm:$0xff] }
  0xd7   : > { %v433_v31 = vld [vmem:[#allocation2 + $0x8] sm:$0xff]  ;;  %v439_v33 = vadd.f32 %v690_v29, %v431_v28 }
  0xd8   : > { %v441_v35 = vadd.f32 %v690_v29, %v433_v31 }
  0xd9   : > { %v443_v37 = vmax.f32 %v439_v33, 0.0 }
  0xda   : > { %v445_v39 = vmax.f32 %v441_v35, 0.0 }
  0xdb   : > { %v633_v40 = vpack.c.bf16 %v443_v37, %v442_v36 }
  0xdc   : > { %v638_v41 = vpack.c.bf16 %v445_v39, %v444_v38 }
  0xdd   : > { %634 = vst [vmem:[%s848_s3] sm:$0xff] %v633_v40  }
  0xde   : > { %640 = vst [vmem:[%s848_s3 + $0x8] sm:$0xff] %v638_v41  }
  0xdf PF: > { %s13_s16 = sadd.s32 1, %s729_s16   ;;  %s849_s12 = smov %s717_s13 }
  0xe0   : > { %p10_p12 = scmp.ge.s32.totalorder %s13_s16, 7   ;;  %s850_s13 = smov %s787_s20 }
  0xe1   : > { %s851_s14 = smov %s725_s15  ;;  %s852_s15 = smov %s854_s17 }
  0xe2   :  { %12 = sbr.rel (!%p10_p12) target bundleno = 3 (0x3), region = 122 }

// kernel: resnet34_trunk_forward.36
= control target key start
LH: loop header
LB: loop body
LE: loop exit
PB: predicated region body
PF: predicated region fallthrough
CT: control target
= control target key end

     0   :  { %s289_s1 = inlined_call_operand.vmem [shape: bf16[128,128], index: 1, kind: input, shape index: {}]   ;;  %s290_s2 = inlined_call_operand.vmem [shape: f32[1,128], index: 2, kind: input, shape index: {}]   ;;  %s291_s0 = inlined_call_operand.vmem [shape: bf16[32,128], index: 0, kind: input, shape index: {}]   ;;  %s292_s3 = inlined_call_operand.vmem [shape: bf16[32,128], index: 3, kind: output, shape index: {}]  }
   0x1   :  { %v209_v0 = vld [vmem:[%s289_s1 + $0x38] sm:$0xff]  ;;  %v208_v1 = vld [vmem:[%s289_s1 + $0x30] sm:$0xff]  ;;  %v207_v2 = vld [vmem:[%s289_s1 + $0x28] sm:$0xff] }
   0x2   :  { %106 = vmatpush.bf16.msra.mxu0 %v209_v0  ;;  %221 = vmatpush.bf16.msra.mxu1 %v209_v0  ;;  %v206_v3 = vld [vmem:[%s289_s1 + $0x20] sm:$0xff]  ;;  %v205_v4 = vld [vmem:[%s289_s1 + $0x18] sm:$0xff]  ;;  %v204_v5 = vld [vmem:[%s289_s1 + $0x10] sm:$0xff] }
   0x3   :  { %v203_v6 = vld [vmem:[%s289_s1 + $0x8] sm:$0xff]  ;;  %v202_v7 = vld [vmem:[%s289_s1] sm:$0xff] }
   0x4   :  { %v200_v8 = vld [vmem:[%s291_s0] sm:$0xff]  ;;  %v201_v9 = vld [vmem:[%s291_s0 + $0x8] sm:$0xff] }
   0x5   :  { %v229_v12 = vld [vmem:[%s290_s2] ss:$0 sm:$0xff] }
   0x6   :  { %107 = vmatpush.bf16.msra.mxu0 %v208_v1  ;;  %222 = vmatpush.bf16.msra.mxu1 %v208_v1 }
   0xa   :  { %108 = vmatpush.bf16.msra.mxu0 %v207_v2  ;;  %223 = vmatpush.bf16.msra.mxu1 %v207_v2 }
   0xe   :  { %109 = vmatpush.bf16.msra.mxu0 %v206_v3  ;;  %224 = vmatpush.bf16.msra.mxu1 %v206_v3 }
  0x12   :  { %110 = vmatpush.bf16.msra.mxu0 %v205_v4  ;;  %225 = vmatpush.bf16.msra.mxu1 %v205_v4 }
  0x16   :  { %111 = vmatpush.bf16.msra.mxu0 %v204_v5  ;;  %226 = vmatpush.bf16.msra.mxu1 %v204_v5 }
  0x1a   :  { %112 = vmatpush.bf16.msra.mxu0 %v203_v6  ;;  %227 = vmatpush.bf16.msra.mxu1 %v203_v6 }
  0x1e   :  { %113 = vmatpush.bf16.msra.mxu0 %v202_v7  ;;  %228 = vmatpush.bf16.msra.mxu1 %v202_v7 }
  0x21   :  { %114 = vmatmul.bf16.vlgmr.msra.gmra.mxu0 %v200_v8  ;;  %119 = vmatmul.bf16.vlgmr.msra.gmra.mxu1 %v201_v9 }
  0x9e   :  { %v115_v10 = vpop.f32.mrf.mxu0  ;;  %v120_v11 = vpop.f32.mrf.mxu1 }
  0x9f   :  { %v144_v15 = vadd.f32 %v229_v12, %v115_v10  ;;  %v146_v16 = vadd.f32 %v229_v12, %v120_v11 }
  0xa6   :  { %v117_v13 = vpop.f32.mrf.mxu0  ;;  %v122_v14 = vpop.f32.mrf.mxu1 }
  0xa7   :  { %v145_v17 = vadd.f32 %v229_v12, %v117_v13  ;;  %v147_v18 = vadd.f32 %v229_v12, %v122_v14 }
  0xa9   :  { %v213_v19 = vpack.c.bf16 %v145_v17, %v144_v15  ;;  %v218_v20 = vpack.c.bf16 %v147_v18, %v146_v16 }
  0xab   :  { %214 = vst [vmem:[%s292_s3] sm:$0xff] %v213_v19  }
  0xac   :  { %220 = vst [vmem:[%s292_s3 + $0x8] sm:$0xff] %v218_v20  }

// kernel: resnet34_trunk_forward.38
= control target key start
LH: loop header
LB: loop body
LE: loop exit
PB: predicated region body
PF: predicated region fallthrough
CT: control target
= control target key end

     0   :  { %s1150_s15 = smov 0   ;;  %s1152_s16 = smov 0   ;;  %s1272_s0 = inlined_call_operand.vmem [shape: bf16[32,1152], index: 0, kind: input, shape index: {}]   ;;  %s1273_s1 = inlined_call_operand.vmem [shape: bf16[1152,128], index: 1, kind: input, shape index: {}]   ;;  %s1274_s2 = inlined_call_operand.vmem [shape: f32[1,128], index: 2, kind: input, shape index: {}]   ;;  %s1275_s3 = inlined_call_operand.vmem [shape: bf16[32,128], index: 3, kind: input, shape index: {}]   ;;  %s1276_s4 = inlined_call_operand.vmem [shape: bf16[32,128], index: 4, kind: output, shape index: {}]  }
   0x1   :  { %s1154_s17 = smov 0   ;;  %s1156_s18 = smov 0  }
   0x2   :  { %s1158_s19 = smov 0  }
   0x3 LB: > { %s26_s20 = sadd.s32 1, %s1118_s18  ;;  %p49_p1 = scmp.ne.s32.totalorder %s1110_s16, %s1106_s15  ;;  %s1122_s19 = sphi %s1158_s19, %s14_s19   ;;  %s1118_s18 = sphi %s1156_s18, %s1280_s18   ;;  %s1114_s17 = sphi %s1154_s17, %s1279_s17   ;;  %s1110_s16 = sphi %s1152_s16, %s1278_s16   ;;  %s1106_s15 = sphi %s1150_s15, %s1277_s15  }
   0x4   : > { %p27_p0 = scmp.ge.s32.totalorder %s26_s20, 3  ;;  %p50_p2 = scmp.eq.s32.totalorder %s1122_s19, 0 }
   0x5   : > { %s42_s22 = sadd.s32 1, %s1110_s16  ;;  %p843_p5 = scmp.ge.s32.totalorder %s1122_s19, 3 }
   0x6   : > { %s1282_s20 = smov (%p27_p0, %s26_s20), 0  ;;  %p51_p3 = por %p50_p2, %p49_p1 }
   0x7   : > { %s38_s21 = ssub.s32 %s1118_s18, %s1282_s20  ;;  %203 = sbr.rel (%p843_p5) target bundleno = 25 (0x19), region = 24 }
   0x8   : > { %p40_p4 = scmp.eq.s32.totalorder %s38_s21, 0 }
   0xa   : > { %s1185_s23 = scalar_select %p40_p4, %s1110_s16, %s42_s22  }
   0xc   : > { %206 = sbr.rel (!%p51_p3) target bundleno = 25 (0x19), region = 28  ;;  %s208_s24 = sand.u32 (%p51_p3), 1, %s1110_s16  }
   0xd   : > { %s981_s25 = smul.u32 (%p51_p3), 12, %s1118_s18 }
   0xe   : > { %s1040_s26 = smul.u32 (%p51_p3), 48, %s208_s24 }
   0xf   : > { %s216_s29 = scalar_lea.vmem (%p51_p3), %s1272_s0, %s981_s25 }
  0x10   : > { %v231_v0 = vld [vmem:[%s216_s29] sm:$0xff] (%p51_p3)  ;;  %v235_v2 = vld [vmem:[%s216_s29 + $0x48] sm:$0xff] (%p51_p3)  ;;  %s210_s30 = scalar_lea.vmem (%p51_p3), [#allocation3], %s1040_s26  ;;  %v849_v6 = vld [vmem:[%s216_s29 + $0x50] sm:$0xf] (%p51_p3) }
  0x11   : > { %v233_v1 = vld [vmem:[%s216_s29 + $0x24] sm:$0xff]  ;;  %232 = vst [vmem:[%s210_s30] sm:$0xff] %v231_v0  ;;  %v237_v3 = vld [vmem:[%s216_s29 + $0x6c] sm:$0xff]  ;;  %v851_v7 = vld [vmem:[%s216_s29 + $0x74] sm:$0xf] }
  0x12   : > { %234 = vst [vmem:[%s210_s30 + $0xc] sm:$0xff] %v233_v1  ;;  %v845_v4 = vld [vmem:[%s216_s29 + $0x8] sm:$0xf]  ;;  %v847_v5 = vld [vmem:[%s216_s29 + $0x2c] sm:$0xf] }
  0x13   : > { %236 = vst [vmem:[%s210_s30 + $0x18] sm:$0xff] %v235_v2 }
  0x14   : > { %238 = vst [vmem:[%s210_s30 + $0x24] sm:$0xff] %v237_v3 }
  0x15   : > { %846 = vst [vmem:[%s210_s30 + $0x8] sm:$0xf] %v845_v4 }
  0x16   : > { %848 = vst [vmem:[%s210_s30 + $0x14] sm:$0xf] %v847_v5 }
  0x17   : > { %850 = vst [vmem:[%s210_s30 + $0x20] sm:$0xf] %v849_v6 }
  0x18   : > { %852 = vst [vmem:[%s210_s30 + $0x2c] sm:$0xf] %v851_v7 }
  0x19 PF: > { %p853_p6 = scmp.ge.s32.totalorder %s1122_s19, 1  ;;  %p271_p7 = scmp.lt.s32.totalorder %s1122_s19, 4 }
  0x1b   : > { %p272_p8 = pnand %p853_p6, %p271_p7 }
  0x1c   : > { %s278_s5 = sand.u32 (!%p272_p8), 1, %s1106_s15   ;;  %s327_s6 = smul.u32 (!%p272_p8), 48, %s1114_s17 }
  0x1d   : > { %275 = sbr.rel (%p272_p8) target bundleno = 255 (0xff), region = 58  ;;  %p855_p10 = scmp.ne.s32.totalorder (!%p272_p8), %s1114_s17, 0 }
  0x1e   : > { %s1041_s7 = smul.u32 (!%p272_p8), 48, %s278_s5  ;;  %p328_p9 = scmp.lt.s32.totalorder (!%p272_p8), %s327_s6, 143 }
  0x20   : > { %s1202_s12 = scalar_lea.vmem (!%p272_p8), [#allocation3], %s1041_s7 }
  0x22   : > { %s1284_s6 = smov (!%p328_p9, %s327_s6), 143  ;;  %360 = sbr.rel (%p855_p10) target bundleno = 44 (0x2c), region = 66 }
  0x23   : > { %s854_s8 = sshll.u32 %s1284_s6, 2 }
  0x24   : > { %s1200_s11 = scalar_lea.vmem %s1273_s1, %s854_s8 }
  0x27   : > { %v1124_v8 = vmov 0.0  }
  0x28   : > { %361 = vst [vmem:[#allocation2 + $0x10] sm:$0xff] %v1124_v8 }
  0x29   : > { %362 = vst [vmem:[#allocation2] sm:$0xff] %v1124_v8 }
  0x2a   : > { %363 = vst [vmem:[#allocation2 + $0x18] sm:$0xff] %v1124_v8 }
  0x2b   : > { %364 = vst [vmem:[#allocation2 + $0x8] sm:$0xff] %v1124_v8 }
  0x2c PF: > { %v995_v9 = vld [vmem:[%s1200_s11 + $0x38] sm:$0xff]  ;;  %v994_v12 = vld [vmem:[%s1200_s11 + $0x30] sm:$0xff]  ;;  %v993_v15 = vld [vmem:[%s1200_s11 + $0x28] sm:$0xff]  ;;  %p976_p11 = scmp.ne.s32.totalorder %s1114_s17, 2 }
  0x2d   : > { %v1003_v10 = vld [vmem:[%s1200_s11 + $0x78] sm:$0xff]  ;;  %601 = vmatpush.bf16.msra.mxu0 %v995_v9  ;;  %v1002_v13 = vld [vmem:[%s1200_s11 + $0x70] sm:$0xff]  ;;  %1032 = vmatpush.bf16.msra.mxu3 %v995_v9  ;;  %v1001_v16 = vld [vmem:[%s1200_s11 + $0x68] sm:$0xff] }
  0x2e   : > { %v1011_v11 = vld [vmem:[%s1200_s11 + $0xb8] sm:$0xff]  ;;  %620 = vmatpush.bf16.msra.mxu1 %v1003_v10  ;;  %v1010_v14 = vld [vmem:[%s1200_s11 + $0xb0] sm:$0xff]  ;;  %v1009_v17 = vld [vmem:[%s1200_s11 + $0xa8] sm:$0xff] }
  0x2f   : > { %639 = vmatpush.bf16.msra.mxu2 %v1011_v11  ;;  %v992_v18 = vld [vmem:[%s1200_s11 + $0x20] sm:$0xff]  ;;  %v991_v21 = vld [vmem:[%s1200_s11 + $0x18] sm:$0xff]  ;;  %v990_v24 = vld [vmem:[%s1200_s11 + $0x10] sm:$0xff] }
  0x30   : > { %v1000_v19 = vld [vmem:[%s1200_s11 + $0x60] sm:$0xff]  ;;  %v999_v22 = vld [vmem:[%s1200_s11 + $0x58] sm:$0xff]  ;;  %v998_v25 = vld [vmem:[%s1200_s11 + $0x50] sm:$0xff] }
  0x31   : > { %602 = vmatpush.bf16.msra.mxu0 %v994_v12  ;;  %1033 = vmatpush.bf16.msra.mxu3 %v994_v12  ;;  %v1008_v20 = vld [vmem:[%s1200_s11 + $0xa0] sm:$0xff]  ;;  %v1007_v23 = vld [vmem:[%s1200_s11 + $0x98] sm:$0xff]  ;;  %v1006_v26 = vld [vmem:[%s1200_s11 + $0x90] sm:$0xff] }
  0x32   : > { %621 = vmatpush.bf16.msra.mxu1 %v1002_v13  ;;  %v989_v27 = vld [vmem:[%s1200_s11 + $0x8] sm:$0xff]  ;;  %v988_v30 = vld [vmem:[%s1200_s11] sm:$0xff]  ;;  %v365_v54 = vld [vmem:[#allocation2 + $0x10] sm:$0xff] }
  0x33   : > { %640 = vmatpush.bf16.msra.mxu2 %v1010_v14  ;;  %v997_v28 = vld [vmem:[%s1200_s11 + $0x48] sm:$0xff]  ;;  %v996_v31 = vld [vmem:[%s1200_s11 + $0x40] sm:$0xff]  ;;  %v367_v4 = vld [vmem:[#allocation2 + $0x18] sm:$0xff] }
  0x34   : > { %v1005_v29 = vld [vmem:[%s1200_s11 + $0x88] sm:$0xff]  ;;  %v1004_v32 = vld [vmem:[%s1200_s11 + $0x80] sm:$0xff] }
  0x35   : > { %603 = vmatpush.bf16.msra.mxu0 %v993_v15  ;;  %1034 = vmatpush.bf16.msra.mxu3 %v993_v15  ;;  %v858_v33 = vld [vmem:[%s1202_s12] sm:$0xf]  ;;  %v983_v34 = vld [vmem:[%s1202_s12 + $0x8] sm:$0xf0]  ;;  %v982_v35 = vld [vmem:[%s1202_s12 + $0x4] sm:$0xf] }
  0x36   : > { %622 = vmatpush.bf16.msra.mxu1 %v1001_v16  ;;  %v860_v36 = vld [vmem:[%s1202_s12 + $0xc] sm:$0xf0]  ;;  %v866_v37 = vld [vmem:[%s1202_s12 + $0x8] sm:$0xf]  ;;  %v984_v38 = vld [vmem:[%s1202_s12 + $0x10] sm:$0xf0]  ;;  %v859_v41 = vor.u32 %v983_v34, %v858_v33 }
  0x37   : > { %641 = vmatpush.bf16.msra.mxu2 %v1009_v17  ;;  %v870_v39 = vld [vmem:[%s1202_s12 + $0x18] sm:$0xf]  ;;  %v986_v40 = vld [vmem:[%s1202_s12 + $0x20] sm:$0xf0]  ;;  %v863_v42 = vor.u32 %v982_v35, %v860_v36  ;;  %v867_v43 = vor.u32 %v984_v38, %v866_v37  ;;  %v985_v45 = vld [vmem:[%s1202_s12 + $0x1c] sm:$0xf] }
  0x38   : > { %v871_v44 = vor.u32 %v986_v40, %v870_v39  ;;  %v872_v46 = vld [vmem:[%s1202_s12 + $0x24] sm:$0xf0]  ;;  %v878_v47 = vld [vmem:[%s1202_s12 + $0x20] sm:$0xf]  ;;  %v987_v48 = vld [vmem:[%s1202_s12 + $0x28] sm:$0xf0] }
  0x39   : > { %604 = vmatpush.bf16.msra.mxu0 %v992_v18  ;;  %1035 = vmatpush.bf16.msra.mxu3 %v992_v18  ;;  %v875_v49 = vor.u32 %v985_v45, %v872_v46  ;;  %v879_v50 = vor.u32 %v987_v48, %v878_v47  ;;  %v366_v61 = vld [vmem:[#allocation2] sm:$0xff]  ;;  %v368_v11 = vld [vmem:[#allocation2 + $0x8] sm:$0xff] }
  0x3a   : > { %623 = vmatpush.bf16.msra.mxu1 %v1000_v19 }
  0x3b   : > { %642 = vmatpush.bf16.msra.mxu2 %v1008_v20 }
  0x3d   : > { %605 = vmatpush.bf16.msra.mxu0 %v991_v21  ;;  %1036 = vmatpush.bf16.msra.mxu3 %v991_v21 }
  0x3e   : > { %624 = vmatpush.bf16.msra.mxu1 %v999_v22 }
  0x3f   : > { %643 = vmatpush.bf16.msra.mxu2 %v1007_v23 }
  0x41   : > { %606 = vmatpush.bf16.msra.mxu0 %v990_v24  ;;  %1037 = vmatpush.bf16.msra.mxu3 %v990_v24 }
  0x42   : > { %625 = vmatpush.bf16.msra.mxu1 %v998_v25 }
  0x43   : > { %644 = vmatpush.bf16.msra.mxu2 %v1006_v26 }
  0x45   : > { %607 = vmatpush.bf16.msra.mxu0 %v989_v27  ;;  %1038 = vmatpush.bf16.msra.mxu3 %v989_v27 }
  0x46   : > { %626 = vmatpush.bf16.msra.mxu1 %v997_v28 }
  0x47   : > { %645 = vmatpush.bf16.msra.mxu2 %v1005_v29 }
  0x49   : > { %608 = vmatpush.bf16.msra.mxu0 %v988_v30  ;;  %1039 = vmatpush.bf16.msra.mxu3 %v988_v30 }
  0x4a   : > { %627 = vmatpush.bf16.msra.mxu1 %v996_v31 }
  0x4b   : > { %646 = vmatpush.bf16.msra.mxu2 %v1004_v32 }
  0x4c   : > { %609 = vmatmul.bf16.vlgmr.msra.gmra.mxu0 %v859_v41  ;;  %614 = vmatmul.bf16.vlgmr.msra.gmra.mxu3 %v871_v44 }
  0x4d   : > { %628 = vmatmul.bf16.vlgmr.msra.gmra.mxu1 %v863_v42 }
  0x4e   : > { %647 = vmatmul.bf16.vlgmr.msra.gmra.mxu2 %v867_v43 }
  0x5d   : > { %633 = vmatmul.bf16.gmra.mxu1 %v875_v49 }
  0x5e   : > { %652 = vmatmul.bf16.gmra.mxu2 %v879_v50 }
  0xc9   : > { %v610_v52 = vpop.f32.mrf.mxu0 }
  0xca   : > { %v629_v51 = vpop.f32.mrf.mxu1 }
  0xcb   : > { %v630_v53 = vadd.f32 %v629_v51, %v610_v52 }
  0xcf   : > { %v615_v2 = vpop.f32.mrf.mxu3 }
  0xd1   : > { %v648_v55 = vpop.f32.mrf.mxu2  ;;  %v612_v59 = vpop.f32.mrf.mxu0 }
  0xd2   : > { %v649_v56 = vadd.f32 %v648_v55, %v630_v53  ;;  %v631_v57 = vpop.f32.mrf.mxu1 }
  0xd3   : > { %v632_v60 = vadd.f32 %v631_v57, %v612_v59 }
  0xd4   : > { %v658_v58 = vadd.f32 %v649_v56, %v365_v54 }
  0xd6   : > { %662 = vst [vmem:[#allocation2 + $0x10] sm:$0xff] %v658_v58 }
  0xd7   : > { %v617_v9 = vpop.f32.mrf.mxu3 }
  0xd9   : > { %v650_v62 = vpop.f32.mrf.mxu2 }
  0xda   : > { %v651_v63 = vadd.f32 %v650_v62, %v632_v60  ;;  %v634_v0 = vpop.f32.mrf.mxu1 }
  0xdb   : > { %v635_v3 = vadd.f32 %v634_v0, %v615_v2 }
  0xdc   : > { %v659_v1 = vadd.f32 %v651_v63, %v366_v61 }
  0xde   : > { %663 = vst [vmem:[#allocation2] sm:$0xff] %v659_v1 }
  0xe1   : > { %v653_v5 = vpop.f32.mrf.mxu2 }
  0xe2   : > { %v654_v6 = vadd.f32 %v653_v5, %v635_v3  ;;  %v636_v8 = vpop.f32.mrf.mxu1 }
  0xe3   : > { %v637_v10 = vadd.f32 %v636_v8, %v617_v9 }
  0xe4   : > { %v660_v7 = vadd.f32 %v654_v6, %v367_v4 }
  0xe6   : > { %664 = vst [vmem:[#allocation2 + $0x18] sm:$0xff] %v660_v7 }
  0xe9   : > { %v655_v12 = vpop.f32.mrf.mxu2 }
  0xea   : > { %v656_v13 = vadd.f32 %v655_v12, %v637_v10  ;;  %669 = sbr.rel (%p976_p11) target bundleno = 255 (0xff), region = 70 }
  0xec   : > { %v661_v14 = vadd.f32 %v656_v13, %v368_v11 }
  0xee   : > { %665 = vst [vmem:[#allocation2 + $0x8] sm:$0xff] %v661_v14 }
  0xef   : > { %v670_v15 = vld [vmem:[#allocation2 + $0x10] sm:$0xff]  ;;  %v671_v16 = vld [vmem:[#allocation2] sm:$0xff]  ;;  %v672_v19 = vld [vmem:[#allocation2 + $0x18] sm:$0xff] }
  0xf0   : > { %v1083_v17 = vld [vmem:[%s1274_s2] ss:$0 sm:$0xff]  ;;  %v1030_v23 = vld [vmem:[%s1275_s3 + $0x8] sm:$0xff]  }
  0xf1   : > { %v1013_v18 = vld [vmem:[%s1275_s3] sm:$0xff]   ;;  %v678_v24 = vadd.f32 %v1083_v17, %v670_v15  ;;  %v679_v25 = vadd.f32 %v1083_v17, %v671_v16  ;;  %v680_v26 = vadd.f32 %v1083_v17, %v672_v19  ;;  %v1018_v28 = vunpack.c.l.bf16 %v1030_v23 }
  0xf2   : > { %v1014_v20 = vunpack.c.l.bf16 %v1013_v18  ;;  %v1015_v21 = vunpack.c.h.bf16 %v1013_v18  ;;  %v1019_v29 = vunpack.c.h.bf16 %v1030_v23 }
  0xf3   : > { %v692_v32 = vadd.f32 %v1018_v28, %v680_v26 }
  0xf4   : > { %v690_v30 = vadd.f32 %v1014_v20, %v678_v24  ;;  %v691_v31 = vadd.f32 %v1015_v21, %v679_v25 }
  0xf5   : > { %v673_v22 = vld [vmem:[#allocation2 + $0x8] sm:$0xff]  ;;  %v696_v36 = vmax.f32 %v692_v32, 0.0 }
  0xf6   : > { %v681_v27 = vadd.f32 %v1083_v17, %v673_v22  ;;  %v694_v34 = vmax.f32 %v690_v30, 0.0  ;;  %v695_v35 = vmax.f32 %v691_v31, 0.0 }
  0xf8   : > { %v693_v33 = vadd.f32 %v1019_v29, %v681_v27  ;;  %v1023_v38 = vpack.c.bf16 %v695_v35, %v694_v34 }
  0xfa   : > { %v697_v37 = vmax.f32 %v693_v33, 0.0  ;;  %1024 = vst [vmem:[%s1276_s4] sm:$0xff] %v1023_v38  }
  0xfc   : > { %v1028_v39 = vpack.c.bf16 %v697_v37, %v696_v36 }
  0xfe   : > { %1031 = vst [vmem:[%s1276_s4 + $0x8] sm:$0xff] %v1028_v39  }
  0xff PF: > { %s14_s19 = sadd.s32 1, %s1122_s19   ;;  %s1277_s15 = smov %s1110_s16 }
 0x100   : > { %p11_p12 = scmp.ge.s32.totalorder %s14_s19, 5   ;;  %s1278_s16 = smov %s1185_s23 }
 0x101   : > { %s1279_s17 = smov %s1118_s18  ;;  %s1280_s18 = smov %s1282_s20 }
 0x102   :  { %13 = sbr.rel (!%p11_p12) target bundleno = 3 (0x3), region = 120 }

// kernel: resnet34_trunk_forward.39
= control target key start
LH: loop header
LB: loop body
LE: loop exit
PB: predicated region body
PF: predicated region fallthrough
CT: control target
= control target key end

     0   :  { %s1045_s12 = smov 0   ;;  %s1047_s13 = smov 0   ;;  %s1161_s0 = inlined_call_operand.vmem [shape: bf16[32,1152], index: 0, kind: input, shape index: {}]   ;;  %s1162_s1 = inlined_call_operand.vmem [shape: bf16[1152,128], index: 1, kind: input, shape index: {}]   ;;  %s1163_s2 = inlined_call_operand.vmem [shape: f32[1,128], index: 2, kind: input, shape index: {}]   ;;  %s1164_s3 = inlined_call_operand.vmem [shape: bf16[32,128], index: 3, kind: output, shape index: {}]  }
   0x1   :  { %s1049_s14 = smov 0   ;;  %s1051_s15 = smov 0  }
   0x2   :  { %s1053_s16 = smov 0  }
   0x3 LB: > { %s25_s17 = sadd.s32 1, %s1018_s15  ;;  %p48_p1 = scmp.ne.s32.totalorder %s1010_s13, %s1006_s12  ;;  %s1022_s16 = sphi %s1053_s16, %s13_s16   ;;  %s1018_s15 = sphi %s1051_s15, %s1168_s15   ;;  %s1014_s14 = sphi %s1049_s14, %s1167_s14   ;;  %s1010_s13 = sphi %s1047_s13, %s1166_s13   ;;  %s1006_s12 = sphi %s1045_s12, %s1165_s12  }
   0x4   : > { %p26_p0 = scmp.ge.s32.totalorder %s25_s17, 3  ;;  %p49_p2 = scmp.eq.s32.totalorder %s1022_s16, 0 }
   0x5   : > { %s41_s19 = sadd.s32 1, %s1010_s13  ;;  %p752_p5 = scmp.ge.s32.totalorder %s1022_s16, 3 }
   0x6   : > { %s1170_s17 = smov (%p26_p0, %s25_s17), 0  ;;  %p50_p3 = por %p49_p2, %p48_p1 }
   0x7   : > { %s37_s18 = ssub.s32 %s1018_s15, %s1170_s17  ;;  %162 = sbr.rel (%p752_p5) target bundleno = 25 (0x19), region = 20 }
   0x8   : > { %p39_p4 = scmp.eq.s32.totalorder %s37_s18, 0 }
   0xa   : > { %s1080_s20 = scalar_select %p39_p4, %s1010_s13, %s41_s19  }
   0xc   : > { %165 = sbr.rel (!%p50_p3) target bundleno = 25 (0x19), region = 24  ;;  %s167_s21 = sand.u32 (%p50_p3), 1, %s1010_s13  }
   0xd   : > { %s890_s22 = smul.u32 (%p50_p3), 12, %s1018_s15 }
   0xe   : > { %s940_s23 = smul.u32 (%p50_p3), 48, %s167_s21 }
   0xf   : > { %s175_s26 = scalar_lea.vmem (%p50_p3), %s1161_s0, %s890_s22 }
  0x10   : > { %v190_v0 = vld [vmem:[%s175_s26] sm:$0xff] (%p50_p3)  ;;  %v194_v2 = vld [vmem:[%s175_s26 + $0x48] sm:$0xff] (%p50_p3)  ;;  %s169_s27 = scalar_lea.vmem (%p50_p3), [#allocation3], %s940_s23  ;;  %v758_v6 = vld [vmem:[%s175_s26 + $0x50] sm:$0xf] (%p50_p3) }
  0x11   : > { %v192_v1 = vld [vmem:[%s175_s26 + $0x24] sm:$0xff]  ;;  %191 = vst [vmem:[%s169_s27] sm:$0xff] %v190_v0  ;;  %v196_v3 = vld [vmem:[%s175_s26 + $0x6c] sm:$0xff]  ;;  %v760_v7 = vld [vmem:[%s175_s26 + $0x74] sm:$0xf] }
  0x12   : > { %193 = vst [vmem:[%s169_s27 + $0xc] sm:$0xff] %v192_v1  ;;  %v754_v4 = vld [vmem:[%s175_s26 + $0x8] sm:$0xf]  ;;  %v756_v5 = vld [vmem:[%s175_s26 + $0x2c] sm:$0xf] }
  0x13   : > { %195 = vst [vmem:[%s169_s27 + $0x18] sm:$0xff] %v194_v2 }
  0x14   : > { %197 = vst [vmem:[%s169_s27 + $0x24] sm:$0xff] %v196_v3 }
  0x15   : > { %755 = vst [vmem:[%s169_s27 + $0x8] sm:$0xf] %v754_v4 }
  0x16   : > { %757 = vst [vmem:[%s169_s27 + $0x14] sm:$0xf] %v756_v5 }
  0x17   : > { %759 = vst [vmem:[%s169_s27 + $0x20] sm:$0xf] %v758_v6 }
  0x18   : > { %761 = vst [vmem:[%s169_s27 + $0x2c] sm:$0xf] %v760_v7 }
  0x19 PF: > { %p762_p6 = scmp.ge.s32.totalorder %s1022_s16, 1  ;;  %p230_p7 = scmp.lt.s32.totalorder %s1022_s16, 4 }
  0x1b   : > { %p231_p8 = pnand %p762_p6, %p230_p7 }
  0x1c   : > { %s237_s28 = sand.u32 (!%p231_p8), 1, %s1006_s12   ;;  %s276_s29 = smul.u32 (!%p231_p8), 48, %s1014_s14 }
  0x1d   : > { %234 = sbr.rel (%p231_p8) target bundleno = 253 (0xfd), region = 54  ;;  %p764_p10 = scmp.ne.s32.totalorder (!%p231_p8), %s1014_s14, 0 }
  0x1e   : > { %s941_s30 = smul.u32 (!%p231_p8), 48, %s237_s28  ;;  %p277_p9 = scmp.lt.s32.totalorder (!%p231_p8), %s276_s29, 143 }
  0x20   : > { %s1097_s8 = scalar_lea.vmem (!%p231_p8), [#allocation3], %s941_s30 }
  0x22   : > { %s1172_s29 = smov (!%p277_p9, %s276_s29), 143  ;;  %300 = sbr.rel (%p764_p10) target bundleno = 44 (0x2c), region = 62 }
  0x23   : > { %s763_s4 = sshll.u32 %s1172_s29, 2 }
  0x24   : > { %s1095_s7 = scalar_lea.vmem %s1162_s1, %s763_s4 }
  0x27   : > { %v1024_v8 = vmov 0.0  }
  0x28   : > { %301 = vst [vmem:[#allocation2 + $0x10] sm:$0xff] %v1024_v8 }
  0x29   : > { %302 = vst [vmem:[#allocation2] sm:$0xff] %v1024_v8 }
  0x2a   : > { %303 = vst [vmem:[#allocation2 + $0x18] sm:$0xff] %v1024_v8 }
  0x2b   : > { %304 = vst [vmem:[#allocation2 + $0x8] sm:$0xff] %v1024_v8 }
  0x2c PF: > { %v904_v9 = vld [vmem:[%s1095_s7 + $0x38] sm:$0xff]  ;;  %v903_v12 = vld [vmem:[%s1095_s7 + $0x30] sm:$0xff]  ;;  %v902_v15 = vld [vmem:[%s1095_s7 + $0x28] sm:$0xff]  ;;  %p885_p11 = scmp.ne.s32.totalorder %s1014_s14, 2 }
  0x2d   : > { %v912_v10 = vld [vmem:[%s1095_s7 + $0x78] sm:$0xff]  ;;  %541 = vmatpush.bf16.msra.mxu0 %v904_v9  ;;  %v911_v13 = vld [vmem:[%s1095_s7 + $0x70] sm:$0xff]  ;;  %932 = vmatpush.bf16.msra.mxu3 %v904_v9  ;;  %v910_v16 = vld [vmem:[%s1095_s7 + $0x68] sm:$0xff] }
  0x2e   : > { %v920_v11 = vld [vmem:[%s1095_s7 + $0xb8] sm:$0xff]  ;;  %560 = vmatpush.bf16.msra.mxu1 %v912_v10  ;;  %v919_v14 = vld [vmem:[%s1095_s7 + $0xb0] sm:$0xff]  ;;  %v918_v17 = vld [vmem:[%s1095_s7 + $0xa8] sm:$0xff] }
  0x2f   : > { %579 = vmatpush.bf16.msra.mxu2 %v920_v11  ;;  %v901_v18 = vld [vmem:[%s1095_s7 + $0x20] sm:$0xff]  ;;  %v900_v21 = vld [vmem:[%s1095_s7 + $0x18] sm:$0xff]  ;;  %v899_v24 = vld [vmem:[%s1095_s7 + $0x10] sm:$0xff] }
  0x30   : > { %v909_v19 = vld [vmem:[%s1095_s7 + $0x60] sm:$0xff]  ;;  %v908_v22 = vld [vmem:[%s1095_s7 + $0x58] sm:$0xff]  ;;  %v907_v25 = vld [vmem:[%s1095_s7 + $0x50] sm:$0xff] }
  0x31   : > { %542 = vmatpush.bf16.msra.mxu0 %v903_v12  ;;  %933 = vmatpush.bf16.msra.mxu3 %v903_v12  ;;  %v917_v20 = vld [vmem:[%s1095_s7 + $0xa0] sm:$0xff]  ;;  %v916_v23 = vld [vmem:[%s1095_s7 + $0x98] sm:$0xff]  ;;  %v915_v26 = vld [vmem:[%s1095_s7 + $0x90] sm:$0xff] }
  0x32   : > { %561 = vmatpush.bf16.msra.mxu1 %v911_v13  ;;  %v898_v27 = vld [vmem:[%s1095_s7 + $0x8] sm:$0xff]  ;;  %v897_v30 = vld [vmem:[%s1095_s7] sm:$0xff]  ;;  %v305_v54 = vld [vmem:[#allocation2 + $0x10] sm:$0xff] }
  0x33   : > { %580 = vmatpush.bf16.msra.mxu2 %v919_v14  ;;  %v906_v28 = vld [vmem:[%s1095_s7 + $0x48] sm:$0xff]  ;;  %v905_v31 = vld [vmem:[%s1095_s7 + $0x40] sm:$0xff]  ;;  %v307_v4 = vld [vmem:[#allocation2 + $0x18] sm:$0xff] }
  0x34   : > { %v914_v29 = vld [vmem:[%s1095_s7 + $0x88] sm:$0xff]  ;;  %v913_v32 = vld [vmem:[%s1095_s7 + $0x80] sm:$0xff] }
  0x35   : > { %543 = vmatpush.bf16.msra.mxu0 %v902_v15  ;;  %934 = vmatpush.bf16.msra.mxu3 %v902_v15  ;;  %v767_v33 = vld [vmem:[%s1097_s8] sm:$0xf]  ;;  %v892_v34 = vld [vmem:[%s1097_s8 + $0x8] sm:$0xf0]  ;;  %v891_v35 = vld [vmem:[%s1097_s8 + $0x4] sm:$0xf] }
  0x36   : > { %562 = vmatpush.bf16.msra.mxu1 %v910_v16  ;;  %v769_v36 = vld [vmem:[%s1097_s8 + $0xc] sm:$0xf0]  ;;  %v775_v37 = vld [vmem:[%s1097_s8 + $0x8] sm:$0xf]  ;;  %v893_v38 = vld [vmem:[%s1097_s8 + $0x10] sm:$0xf0]  ;;  %v768_v41 = vor.u32 %v892_v34, %v767_v33 }
  0x37   : > { %581 = vmatpush.bf16.msra.mxu2 %v918_v17  ;;  %v779_v39 = vld [vmem:[%s1097_s8 + $0x18] sm:$0xf]  ;;  %v895_v40 = vld [vmem:[%s1097_s8 + $0x20] sm:$0xf0]  ;;  %v772_v42 = vor.u32 %v891_v35, %v769_v36  ;;  %v776_v43 = vor.u32 %v893_v38, %v775_v37  ;;  %v894_v45 = vld [vmem:[%s1097_s8 + $0x1c] sm:$0xf] }
  0x38   : > { %v780_v44 = vor.u32 %v895_v40, %v779_v39  ;;  %v781_v46 = vld [vmem:[%s1097_s8 + $0x24] sm:$0xf0]  ;;  %v787_v47 = vld [vmem:[%s1097_s8 + $0x20] sm:$0xf]  ;;  %v896_v48 = vld [vmem:[%s1097_s8 + $0x28] sm:$0xf0] }
  0x39   : > { %544 = vmatpush.bf16.msra.mxu0 %v901_v18  ;;  %935 = vmatpush.bf16.msra.mxu3 %v901_v18  ;;  %v784_v49 = vor.u32 %v894_v45, %v781_v46  ;;  %v788_v50 = vor.u32 %v896_v48, %v787_v47  ;;  %v306_v61 = vld [vmem:[#allocation2] sm:$0xff]  ;;  %v308_v11 = vld [vmem:[#allocation2 + $0x8] sm:$0xff] }
  0x3a   : > { %563 = vmatpush.bf16.msra.mxu1 %v909_v19 }
  0x3b   : > { %582 = vmatpush.bf16.msra.mxu2 %v917_v20 }
  0x3d   : > { %545 = vmatpush.bf16.msra.mxu0 %v900_v21  ;;  %936 = vmatpush.bf16.msra.mxu3 %v900_v21 }
  0x3e   : > { %564 = vmatpush.bf16.msra.mxu1 %v908_v22 }
  0x3f   : > { %583 = vmatpush.bf16.msra.mxu2 %v916_v23 }
  0x41   : > { %546 = vmatpush.bf16.msra.mxu0 %v899_v24  ;;  %937 = vmatpush.bf16.msra.mxu3 %v899_v24 }
  0x42   : > { %565 = vmatpush.bf16.msra.mxu1 %v907_v25 }
  0x43   : > { %584 = vmatpush.bf16.msra.mxu2 %v915_v26 }
  0x45   : > { %547 = vmatpush.bf16.msra.mxu0 %v898_v27  ;;  %938 = vmatpush.bf16.msra.mxu3 %v898_v27 }
  0x46   : > { %566 = vmatpush.bf16.msra.mxu1 %v906_v28 }
  0x47   : > { %585 = vmatpush.bf16.msra.mxu2 %v914_v29 }
  0x49   : > { %548 = vmatpush.bf16.msra.mxu0 %v897_v30  ;;  %939 = vmatpush.bf16.msra.mxu3 %v897_v30 }
  0x4a   : > { %567 = vmatpush.bf16.msra.mxu1 %v905_v31 }
  0x4b   : > { %586 = vmatpush.bf16.msra.mxu2 %v913_v32 }
  0x4c   : > { %549 = vmatmul.bf16.vlgmr.msra.gmra.mxu0 %v768_v41  ;;  %554 = vmatmul.bf16.vlgmr.msra.gmra.mxu3 %v780_v44 }
  0x4d   : > { %568 = vmatmul.bf16.vlgmr.msra.gmra.mxu1 %v772_v42 }
  0x4e   : > { %587 = vmatmul.bf16.vlgmr.msra.gmra.mxu2 %v776_v43 }
  0x5d   : > { %573 = vmatmul.bf16.gmra.mxu1 %v784_v49 }
  0x5e   : > { %592 = vmatmul.bf16.gmra.mxu2 %v788_v50 }
  0xc9   : > { %v550_v52 = vpop.f32.mrf.mxu0 }
  0xca   : > { %v569_v51 = vpop.f32.mrf.mxu1 }
  0xcb   : > { %v570_v53 = vadd.f32 %v569_v51, %v550_v52 }
  0xcf   : > { %v555_v2 = vpop.f32.mrf.mxu3 }
  0xd1   : > { %v588_v55 = vpop.f32.mrf.mxu2  ;;  %v552_v59 = vpop.f32.mrf.mxu0 }
  0xd2   : > { %v589_v56 = vadd.f32 %v588_v55, %v570_v53  ;;  %v571_v57 = vpop.f32.mrf.mxu1 }
  0xd3   : > { %v572_v60 = vadd.f32 %v571_v57, %v552_v59 }
  0xd4   : > { %v598_v58 = vadd.f32 %v589_v56, %v305_v54 }
  0xd6   : > { %602 = vst [vmem:[#allocation2 + $0x10] sm:$0xff] %v598_v58 }
  0xd7   : > { %v557_v9 = vpop.f32.mrf.mxu3 }
  0xd9   : > { %v590_v62 = vpop.f32.mrf.mxu2 }
  0xda   : > { %v591_v63 = vadd.f32 %v590_v62, %v572_v60  ;;  %v574_v0 = vpop.f32.mrf.mxu1 }
  0xdb   : > { %v575_v3 = vadd.f32 %v574_v0, %v555_v2 }
  0xdc   : > { %v599_v1 = vadd.f32 %v591_v63, %v306_v61 }
  0xde   : > { %603 = vst [vmem:[#allocation2] sm:$0xff] %v599_v1 }
  0xe1   : > { %v593_v5 = vpop.f32.mrf.mxu2 }
  0xe2   : > { %v594_v6 = vadd.f32 %v593_v5, %v575_v3  ;;  %v576_v8 = vpop.f32.mrf.mxu1 }
  0xe3   : > { %v577_v10 = vadd.f32 %v576_v8, %v557_v9 }
  0xe4   : > { %v600_v7 = vadd.f32 %v594_v6, %v307_v4 }
  0xe6   : > { %604 = vst [vmem:[#allocation2 + $0x18] sm:$0xff] %v600_v7 }
  0xe9   : > { %v595_v12 = vpop.f32.mrf.mxu2 }
  0xea   : > { %v596_v13 = vadd.f32 %v595_v12, %v577_v10  ;;  %609 = sbr.rel (%p885_p11) target bundleno = 253 (0xfd), region = 66 }
  0xec   : > { %v601_v14 = vadd.f32 %v596_v13, %v308_v11 }
  0xee   : > { %605 = vst [vmem:[#allocation2 + $0x8] sm:$0xff] %v601_v14 }
  0xef   : > { %v610_v15 = vld [vmem:[#allocation2 + $0x10] sm:$0xff]  ;;  %v611_v16 = vld [vmem:[#allocation2] sm:$0xff]  ;;  %v612_v18 = vld [vmem:[#allocation2 + $0x18] sm:$0xff] }
  0xf0   : > { %v983_v17 = vld [vmem:[%s1163_s2] ss:$0 sm:$0xff] }
  0xf1   : > { %v618_v20 = vadd.f32 %v983_v17, %v610_v15  ;;  %v619_v21 = vadd.f32 %v983_v17, %v611_v16  ;;  %v620_v22 = vadd.f32 %v983_v17, %v612_v18 }
  0xf3   : > { %v622_v24 = vmax.f32 %v618_v20, 0.0  ;;  %v623_v25 = vmax.f32 %v619_v21, 0.0  ;;  %v624_v26 = vmax.f32 %v620_v22, 0.0 }
  0xf5   : > { %v613_v19 = vld [vmem:[#allocation2 + $0x8] sm:$0xff]  ;;  %v924_v28 = vpack.c.bf16 %v623_v25, %v622_v24 }
  0xf6   : > { %v621_v23 = vadd.f32 %v983_v17, %v613_v19 }
  0xf7   : > { %925 = vst [vmem:[%s1164_s3] sm:$0xff] %v924_v28  }
  0xf8   : > { %v625_v27 = vmax.f32 %v621_v23, 0.0 }
  0xfa   : > { %v929_v29 = vpack.c.bf16 %v625_v27, %v624_v26 }
  0xfc   : > { %931 = vst [vmem:[%s1164_s3 + $0x8] sm:$0xff] %v929_v29  }
  0xfd PF: > { %s13_s16 = sadd.s32 1, %s1022_s16   ;;  %s1165_s12 = smov %s1010_s13 }
  0xfe   : > { %p10_p12 = scmp.ge.s32.totalorder %s13_s16, 5   ;;  %s1166_s13 = smov %s1080_s20 }
  0xff   : > { %s1167_s14 = smov %s1018_s15  ;;  %s1168_s15 = smov %s1170_s17 }
 0x100   :  { %12 = sbr.rel (!%p10_p12) target bundleno = 3 (0x3), region = 113 }

// kernel: resnet34_trunk_forward.44
= control target key start
LH: loop header
LB: loop body
LE: loop exit
PB: predicated region body
PF: predicated region fallthrough
CT: control target
= control target key end

     0   :  { %9 = vsyncpa [#allocation5], 0  ;;  %s1205_s15 = smov 0   ;;  %s1207_s16 = smov 0   ;;  %s1352_s0 = inlined_call_operand.vmem [shape: bf16[32,1152], index: 0, kind: input, shape index: {}]   ;;  %s1353_s1 = inlined_call_operand.vmem [shape: bf16[1152,128], index: 1, kind: input, shape index: {}]   ;;  %s1354_s2 = inlined_call_operand.hbm [shape: f32[1,128], index: 2, kind: input, shape index: {}]   ;;  %s1355_s3 = inlined_call_operand.vmem [shape: bf16[32,128], index: 3, kind: input, shape index: {}]   ;;  %s1356_s4 = inlined_call_operand.vmem [shape: bf16[32,128], index: 4, kind: output, shape index: {}]  }
   0x1   :  { %s1209_s17 = smov 0   ;;  %s1211_s18 = smov 0  }
   0x2   :  { %s1213_s19 = smov 0  }
   0x3 LB: > { %s847_s20 = sadd.s32 4294967295, %s1176_s19   ;;  %s27_s21 = sadd.s32 1, %s1172_s18  ;;  %s1176_s19 = sphi %s1213_s19, %s15_s19   ;;  %s1172_s18 = sphi %s1211_s18, %s1363_s18   ;;  %s1168_s17 = sphi %s1209_s17, %s1362_s17   ;;  %s1164_s16 = sphi %s1207_s16, %s1361_s16   ;;  %s1160_s15 = sphi %s1205_s15, %s1360_s15  }
   0x4   : > { %p28_p0 = scmp.ge.s32.totalorder %s27_s21, 3  ;;  %s43_s22 = sadd.s32 1, %s1164_s16 }
   0x5   : > { %p50_p1 = scmp.ne.s32.totalorder %s1164_s16, %s1160_s15  ;;  %p51_p2 = scmp.eq.s32.totalorder %s1176_s19, 0 }
   0x6   : > { %s1365_s21 = smov (%p28_p0, %s27_s21), 0  ;;  %p848_p4 = scmp.ge.s32.totalorder %s1176_s19, 1 }
   0x7   : > { %p1238_p3 = por %p51_p2, %p50_p1  ;;  %s39_s24 = ssub.s32 %s1172_s18, %s1365_s21 }
   0x8   : > { %p177_p5 = scmp.lt.s32.totalorder %s1176_s19, 4  ;;  %p41_p6 = scmp.eq.s32.totalorder %s39_s24, 0 }
   0x9   : > { %p1250_p8 = scmp.eq.s32.totalorder %s847_s20, 0  ;;  %s190_s30 = sshll.u32 %s1354_s2, 4  ;;  %s191_s30 = int_to_ptr.hbm [resolvable:$true] %s190_s30 }
   0xa   : > { %p1246_p7 = pnand %p848_p4, %p177_p5  ;;  %s1178_s5 = smov [#allocation4]  }
   0xb   : > { %s1255_s27 = scalar_select %p41_p6, %s1164_s16, %s43_s22  }
   0xc   : > { %p1055_p9 = pneg %p1246_p7  ;;  %s192_s6 = sshll.u32 %s1178_s5, 4  ;;  %s193_s6 = int_to_ptr.vmem [resolvable:$true] %s192_s6 }
   0xd   : > { %p851_p11 = scmp.ge.s32.totalorder %s1176_s19, 3 }
   0xe   : > { %p1056_p10 = pnand %p1250_p8, %p1055_p9 }
   0xf   : > { %211 = sbr.rel (%p851_p11) target bundleno = 33 (0x21), region = 24 }
  0x10   : > { %1058 = dma.hbm_to_vmem [thread:$0]  (!%p1056_p10), %s191_s30, 16, %s193_s6, [#allocation5]  }
  0x14   : > { %214 = sbr.rel (!%p1238_p3) target bundleno = 33 (0x21), region = 28  ;;  %s216_s7 = sand.u32 (%p1238_p3), 1, %s1164_s16  }
  0x15   : > { %s990_s8 = smul.u32 (%p1238_p3), 12, %s1172_s18 }
  0x16   : > { %s1049_s9 = smul.u32 (%p1238_p3), 48, %s216_s7 }
  0x17   : > { %s224_s12 = scalar_lea.vmem (%p1238_p3), %s1352_s0, %s990_s8 }
  0x18   : > { %v239_v0 = vld [vmem:[%s224_s12] sm:$0xff] (%p1238_p3)  ;;  %v243_v2 = vld [vmem:[%s224_s12 + $0x48] sm:$0xff] (%p1238_p3)  ;;  %s218_s13 = scalar_lea.vmem (%p1238_p3), [#allocation3], %s1049_s9  ;;  %v857_v6 = vld [vmem:[%s224_s12 + $0x50] sm:$0xf] (%p1238_p3) }
  0x19   : > { %v241_v1 = vld [vmem:[%s224_s12 + $0x24] sm:$0xff]  ;;  %240 = vst [vmem:[%s218_s13] sm:$0xff] %v239_v0  ;;  %v245_v3 = vld [vmem:[%s224_s12 + $0x6c] sm:$0xff]  ;;  %v859_v7 = vld [vmem:[%s224_s12 + $0x74] sm:$0xf] }
  0x1a   : > { %242 = vst [vmem:[%s218_s13 + $0xc] sm:$0xff] %v241_v1  ;;  %v853_v4 = vld [vmem:[%s224_s12 + $0x8] sm:$0xf]  ;;  %v855_v5 = vld [vmem:[%s224_s12 + $0x2c] sm:$0xf] }
  0x1b   : > { %244 = vst [vmem:[%s218_s13 + $0x18] sm:$0xff] %v243_v2 }
  0x1c   : > { %246 = vst [vmem:[%s218_s13 + $0x24] sm:$0xff] %v245_v3 }
  0x1d   : > { %854 = vst [vmem:[%s218_s13 + $0x8] sm:$0xf] %v853_v4 }
  0x1e   : > { %856 = vst [vmem:[%s218_s13 + $0x14] sm:$0xf] %v855_v5 }
  0x1f   : > { %858 = vst [vmem:[%s218_s13 + $0x20] sm:$0xf] %v857_v6 }
  0x20   : > { %860 = vst [vmem:[%s218_s13 + $0x2c] sm:$0xf] %v859_v7 }
  0x21 PF: > { %283 = sbr.rel (%p1246_p7) target bundleno = 262 (0x106), region = 58  ;;  %s286_s14 = sand.u32 (!%p1246_p7), 1, %s1160_s15  }
  0x22   : > { %s1050_s20 = smul.u32 (!%p1246_p7), 48, %s286_s14 }
  0x24   : > { %s1275_s22 = scalar_lea.vmem (!%p1246_p7), [#allocation3], %s1050_s20 }
  0x26   : > { %1155 = dma.done.wait (%p1250_p8), [#allocation5], 16  }
  0x27   : > { %1157 = vsyncadd (%p1250_p8), [#allocation5], 4294967280  ;;  %s337_s23 = smul.u32 48, %s1168_s17  ;;  %p864_p13 = scmp.ne.s32.totalorder %s1168_s17, 0 }
  0x29   : > { %p338_p12 = scmp.lt.s32.totalorder %s337_s23, 143  ;;  %367 = sbr.rel (%p864_p13) target bundleno = 51 (0x33), region = 70 }
  0x2b   : > { %s1367_s23 = smov (!%p338_p12, %s337_s23), 143 }
  0x2c   : > { %s863_s24 = sshll.u32 %s1367_s23, 2 }
  0x2d   : > { %s1285_s25 = scalar_lea.vmem %s1353_s1, %s863_s24 }
  0x2e   : > { %v1179_v8 = vmov 0.0  }
  0x2f   : > { %368 = vst [vmem:[#allocation2 + $0x10] sm:$0xff] %v1179_v8 }
  0x30   : > { %369 = vst [vmem:[#allocation2] sm:$0xff] %v1179_v8 }
  0x31   : > { %370 = vst [vmem:[#allocation2 + $0x18] sm:$0xff] %v1179_v8 }
  0x32   : > { %371 = vst [vmem:[#allocation2 + $0x8] sm:$0xff] %v1179_v8 }
  0x33 PF: > { %v1004_v9 = vld [vmem:[%s1285_s25 + $0x38] sm:$0xff]  ;;  %v1003_v12 = vld [vmem:[%s1285_s25 + $0x30] sm:$0xff]  ;;  %v1002_v15 = vld [vmem:[%s1285_s25 + $0x28] sm:$0xff]  ;;  %p985_p0 = scmp.ne.s32.totalorder %s1168_s17, 2 }
  0x34   : > { %v1012_v10 = vld [vmem:[%s1285_s25 + $0x78] sm:$0xff]  ;;  %608 = vmatpush.bf16.msra.mxu0 %v1004_v9  ;;  %v1011_v13 = vld [vmem:[%s1285_s25 + $0x70] sm:$0xff]  ;;  %1041 = vmatpush.bf16.msra.mxu3 %v1004_v9  ;;  %v1010_v16 = vld [vmem:[%s1285_s25 + $0x68] sm:$0xff] }
  0x35   : > { %v1020_v11 = vld [vmem:[%s1285_s25 + $0xb8] sm:$0xff]  ;;  %627 = vmatpush.bf16.msra.mxu1 %v1012_v10  ;;  %v1019_v14 = vld [vmem:[%s1285_s25 + $0xb0] sm:$0xff]  ;;  %v1018_v17 = vld [vmem:[%s1285_s25 + $0xa8] sm:$0xff] }
  0x36   : > { %646 = vmatpush.bf16.msra.mxu2 %v1020_v11  ;;  %v1001_v18 = vld [vmem:[%s1285_s25 + $0x20] sm:$0xff]  ;;  %v1000_v21 = vld [vmem:[%s1285_s25 + $0x18] sm:$0xff]  ;;  %v999_v24 = vld [vmem:[%s1285_s25 + $0x10] sm:$0xff] }
  0x37   : > { %v1009_v19 = vld [vmem:[%s1285_s25 + $0x60] sm:$0xff]  ;;  %v1008_v22 = vld [vmem:[%s1285_s25 + $0x58] sm:$0xff]  ;;  %v1007_v25 = vld [vmem:[%s1285_s25 + $0x50] sm:$0xff] }
  0x38   : > { %609 = vmatpush.bf16.msra.mxu0 %v1003_v12  ;;  %1042 = vmatpush.bf16.msra.mxu3 %v1003_v12  ;;  %v1017_v20 = vld [vmem:[%s1285_s25 + $0xa0] sm:$0xff]  ;;  %v1016_v23 = vld [vmem:[%s1285_s25 + $0x98] sm:$0xff]  ;;  %v1015_v26 = vld [vmem:[%s1285_s25 + $0x90] sm:$0xff] }
  0x39   : > { %628 = vmatpush.bf16.msra.mxu1 %v1011_v13  ;;  %v998_v27 = vld [vmem:[%s1285_s25 + $0x8] sm:$0xff]  ;;  %v997_v30 = vld [vmem:[%s1285_s25] sm:$0xff]  ;;  %v372_v54 = vld [vmem:[#allocation2 + $0x10] sm:$0xff] }
  0x3a   : > { %647 = vmatpush.bf16.msra.mxu2 %v1019_v14  ;;  %v1006_v28 = vld [vmem:[%s1285_s25 + $0x48] sm:$0xff]  ;;  %v1005_v31 = vld [vmem:[%s1285_s25 + $0x40] sm:$0xff]  ;;  %v374_v4 = vld [vmem:[#allocation2 + $0x18] sm:$0xff] }
  0x3b   : > { %v1014_v29 = vld [vmem:[%s1285_s25 + $0x88] sm:$0xff]  ;;  %v1013_v32 = vld [vmem:[%s1285_s25 + $0x80] sm:$0xff] }
  0x3c   : > { %610 = vmatpush.bf16.msra.mxu0 %v1002_v15  ;;  %1043 = vmatpush.bf16.msra.mxu3 %v1002_v15  ;;  %v867_v33 = vld [vmem:[%s1275_s22] sm:$0xf]  ;;  %v992_v34 = vld [vmem:[%s1275_s22 + $0x8] sm:$0xf0]  ;;  %v991_v35 = vld [vmem:[%s1275_s22 + $0x4] sm:$0xf] }
  0x3d   : > { %629 = vmatpush.bf16.msra.mxu1 %v1010_v16  ;;  %v869_v36 = vld [vmem:[%s1275_s22 + $0xc] sm:$0xf0]  ;;  %v875_v37 = vld [vmem:[%s1275_s22 + $0x8] sm:$0xf]  ;;  %v993_v38 = vld [vmem:[%s1275_s22 + $0x10] sm:$0xf0]  ;;  %v868_v41 = vor.u32 %v992_v34, %v867_v33 }
  0x3e   : > { %648 = vmatpush.bf16.msra.mxu2 %v1018_v17  ;;  %v879_v39 = vld [vmem:[%s1275_s22 + $0x18] sm:$0xf]  ;;  %v995_v40 = vld [vmem:[%s1275_s22 + $0x20] sm:$0xf0]  ;;  %v872_v42 = vor.u32 %v991_v35, %v869_v36  ;;  %v876_v43 = vor.u32 %v993_v38, %v875_v37  ;;  %v994_v45 = vld [vmem:[%s1275_s22 + $0x1c] sm:$0xf] }
  0x3f   : > { %v880_v44 = vor.u32 %v995_v40, %v879_v39  ;;  %v881_v46 = vld [vmem:[%s1275_s22 + $0x24] sm:$0xf0]  ;;  %v887_v47 = vld [vmem:[%s1275_s22 + $0x20] sm:$0xf]  ;;  %v996_v48 = vld [vmem:[%s1275_s22 + $0x28] sm:$0xf0] }
  0x40   : > { %611 = vmatpush.bf16.msra.mxu0 %v1001_v18  ;;  %1044 = vmatpush.bf16.msra.mxu3 %v1001_v18  ;;  %v884_v49 = vor.u32 %v994_v45, %v881_v46  ;;  %v888_v50 = vor.u32 %v996_v48, %v887_v47  ;;  %v373_v61 = vld [vmem:[#allocation2] sm:$0xff]  ;;  %v375_v11 = vld [vmem:[#allocation2 + $0x8] sm:$0xff] }
  0x41   : > { %630 = vmatpush.bf16.msra.mxu1 %v1009_v19 }
  0x42   : > { %649 = vmatpush.bf16.msra.mxu2 %v1017_v20 }
  0x44   : > { %612 = vmatpush.bf16.msra.mxu0 %v1000_v21  ;;  %1045 = vmatpush.bf16.msra.mxu3 %v1000_v21 }
  0x45   : > { %631 = vmatpush.bf16.msra.mxu1 %v1008_v22 }
  0x46   : > { %650 = vmatpush.bf16.msra.mxu2 %v1016_v23 }
  0x48   : > { %613 = vmatpush.bf16.msra.mxu0 %v999_v24  ;;  %1046 = vmatpush.bf16.msra.mxu3 %v999_v24 }
  0x49   : > { %632 = vmatpush.bf16.msra.mxu1 %v1007_v25 }
  0x4a   : > { %651 = vmatpush.bf16.msra.mxu2 %v1015_v26 }
  0x4c   : > { %614 = vmatpush.bf16.msra.mxu0 %v998_v27  ;;  %1047 = vmatpush.bf16.msra.mxu3 %v998_v27 }
  0x4d   : > { %633 = vmatpush.bf16.msra.mxu1 %v1006_v28 }
  0x4e   : > { %652 = vmatpush.bf16.msra.mxu2 %v1014_v29 }
  0x50   : > { %615 = vmatpush.bf16.msra.mxu0 %v997_v30  ;;  %1048 = vmatpush.bf16.msra.mxu3 %v997_v30 }
  0x51   : > { %634 = vmatpush.bf16.msra.mxu1 %v1005_v31 }
  0x52   : > { %653 = vmatpush.bf16.msra.mxu2 %v1013_v32 }
  0x53   : > { %616 = vmatmul.bf16.vlgmr.msra.gmra.mxu0 %v868_v41  ;;  %621 = vmatmul.bf16.vlgmr.msra.gmra.mxu3 %v880_v44 }
  0x54   : > { %635 = vmatmul.bf16.vlgmr.msra.gmra.mxu1 %v872_v42 }
  0x55   : > { %654 = vmatmul.bf16.vlgmr.msra.gmra.mxu2 %v876_v43 }
  0x64   : > { %640 = vmatmul.bf16.gmra.mxu1 %v884_v49 }
  0x65   : > { %659 = vmatmul.bf16.gmra.mxu2 %v888_v50 }
  0xd0   : > { %v617_v52 = vpop.f32.mrf.mxu0 }
  0xd1   : > { %v636_v51 = vpop.f32.mrf.mxu1 }
  0xd2   : > { %v637_v53 = vadd.f32 %v636_v51, %v617_v52 }
  0xd6   : > { %v622_v2 = vpop.f32.mrf.mxu3 }
  0xd8   : > { %v655_v55 = vpop.f32.mrf.mxu2  ;;  %v619_v59 = vpop.f32.mrf.mxu0 }
  0xd9   : > { %v656_v56 = vadd.f32 %v655_v55, %v637_v53  ;;  %v638_v57 = vpop.f32.mrf.mxu1 }
  0xda   : > { %v639_v60 = vadd.f32 %v638_v57, %v619_v59 }
  0xdb   : > { %v665_v58 = vadd.f32 %v656_v56, %v372_v54 }
  0xdd   : > { %669 = vst [vmem:[#allocation2 + $0x10] sm:$0xff] %v665_v58 }
  0xde   : > { %v624_v9 = vpop.f32.mrf.mxu3 }
  0xe0   : > { %v657_v62 = vpop.f32.mrf.mxu2 }
  0xe1   : > { %v658_v63 = vadd.f32 %v657_v62, %v639_v60  ;;  %v641_v0 = vpop.f32.mrf.mxu1 }
  0xe2   : > { %v642_v3 = vadd.f32 %v641_v0, %v622_v2 }
  0xe3   : > { %v666_v1 = vadd.f32 %v658_v63, %v373_v61 }
  0xe5   : > { %670 = vst [vmem:[#allocation2] sm:$0xff] %v666_v1 }
  0xe8   : > { %v660_v5 = vpop.f32.mrf.mxu2 }
  0xe9   : > { %v661_v6 = vadd.f32 %v660_v5, %v642_v3  ;;  %v643_v8 = vpop.f32.mrf.mxu1 }
  0xea   : > { %v644_v10 = vadd.f32 %v643_v8, %v624_v9 }
  0xeb   : > { %v667_v7 = vadd.f32 %v661_v6, %v374_v4 }
  0xed   : > { %671 = vst [vmem:[#allocation2 + $0x18] sm:$0xff] %v667_v7 }
  0xf0   : > { %v662_v12 = vpop.f32.mrf.mxu2 }
  0xf1   : > { %v663_v13 = vadd.f32 %v662_v12, %v644_v10  ;;  %676 = sbr.rel (%p985_p0) target bundleno = 262 (0x106), region = 74 }
  0xf3   : > { %v668_v14 = vadd.f32 %v663_v13, %v375_v11 }
  0xf5   : > { %672 = vst [vmem:[#allocation2 + $0x8] sm:$0xff] %v668_v14 }
  0xf6   : > { %v677_v15 = vld [vmem:[#allocation2 + $0x10] sm:$0xff]  ;;  %v678_v16 = vld [vmem:[#allocation2] sm:$0xff]  ;;  %v679_v19 = vld [vmem:[#allocation2 + $0x18] sm:$0xff] }
  0xf7   : > { %v1103_v17 = vld [vmem:[#allocation4] ss:$0 sm:$0xff]  ;;  %v1039_v23 = vld [vmem:[%s1355_s3 + $0x8] sm:$0xff]  }
  0xf8   : > { %v1022_v18 = vld [vmem:[%s1355_s3] sm:$0xff]   ;;  %v685_v24 = vadd.f32 %v1103_v17, %v677_v15  ;;  %v686_v25 = vadd.f32 %v1103_v17, %v678_v16  ;;  %v687_v26 = vadd.f32 %v1103_v17, %v679_v19  ;;  %v1027_v28 = vunpack.c.l.bf16 %v1039_v23 }
  0xf9   : > { %v1023_v20 = vunpack.c.l.bf16 %v1022_v18  ;;  %v1024_v21 = vunpack.c.h.bf16 %v1022_v18  ;;  %v1028_v29 = vunpack.c.h.bf16 %v1039_v23 }
  0xfa   : > { %v699_v32 = vadd.f32 %v1027_v28, %v687_v26 }
  0xfb   : > { %v697_v30 = vadd.f32 %v1023_v20, %v685_v24  ;;  %v698_v31 = vadd.f32 %v1024_v21, %v686_v25 }
  0xfc   : > { %v680_v22 = vld [vmem:[#allocation2 + $0x8] sm:$0xff]  ;;  %v703_v36 = vmax.f32 %v699_v32, 0.0 }
  0xfd   : > { %v688_v27 = vadd.f32 %v1103_v17, %v680_v22  ;;  %v701_v34 = vmax.f32 %v697_v30, 0.0  ;;  %v702_v35 = vmax.f32 %v698_v31, 0.0 }
  0xff   : > { %v700_v33 = vadd.f32 %v1028_v29, %v688_v27  ;;  %v1032_v38 = vpack.c.bf16 %v702_v35, %v701_v34 }
 0x101   : > { %v704_v37 = vmax.f32 %v700_v33, 0.0  ;;  %1033 = vst [vmem:[%s1356_s4] sm:$0xff] %v1032_v38  }
 0x103   : > { %v1037_v39 = vpack.c.bf16 %v704_v37, %v703_v36 }
 0x105   : > { %1040 = vst [vmem:[%s1356_s4 + $0x8] sm:$0xff] %v1037_v39  }
 0x106 PF: > { %s15_s19 = sadd.s32 1, %s1176_s19   ;;  %s1360_s15 = smov %s1164_s16 }
 0x107   : > { %p12_p1 = scmp.ge.s32.totalorder %s15_s19, 5   ;;  %s1361_s16 = smov %s1255_s27 }
 0x108   : > { %s1362_s17 = smov %s1172_s18  ;;  %s1363_s18 = smov %s1365_s21 }
 0x109   :  { %14 = sbr.rel (!%p12_p1) target bundleno = 3 (0x3), region = 123 }
 0x10e   :  { %741 = vsyncpa [#allocation5], 1 }
 0x10f   :  { %743 = vsyncpa [#allocation5 + $0x1], 1 }

// kernel: resnet34_trunk_forward.43
= control target key start
LH: loop header
LB: loop body
LE: loop exit
PB: predicated region body
PF: predicated region fallthrough
CT: control target
= control target key end

     0   :  { %8 = vsyncpa [#allocation5], 0  ;;  %s1100_s12 = smov 0   ;;  %s1102_s13 = smov 0   ;;  %s1241_s0 = inlined_call_operand.vmem [shape: bf16[32,1152], index: 0, kind: input, shape index: {}]   ;;  %s1242_s1 = inlined_call_operand.vmem [shape: bf16[1152,128], index: 1, kind: input, shape index: {}]   ;;  %s1243_s2 = inlined_call_operand.hbm [shape: f32[1,128], index: 2, kind: input, shape index: {}]   ;;  %s1244_s3 = inlined_call_operand.vmem [shape: bf16[32,128], index: 3, kind: output, shape index: {}]  }
   0x1   :  { %s1104_s14 = smov 0   ;;  %s1106_s15 = smov 0  }
   0x2   :  { %s1108_s16 = smov 0  }
   0x3 LB: > { %s757_s17 = sadd.s32 4294967295, %s1076_s16   ;;  %s26_s18 = sadd.s32 1, %s1072_s15  ;;  %s1076_s16 = sphi %s1108_s16, %s14_s16   ;;  %s1072_s15 = sphi %s1106_s15, %s1251_s15   ;;  %s1068_s14 = sphi %s1104_s14, %s1250_s14   ;;  %s1064_s13 = sphi %s1102_s13, %s1249_s13   ;;  %s1060_s12 = sphi %s1100_s12, %s1248_s12  }
   0x4   : > { %p27_p0 = scmp.ge.s32.totalorder %s26_s18, 3  ;;  %s42_s19 = sadd.s32 1, %s1064_s13 }
   0x5   : > { %p49_p1 = scmp.ne.s32.totalorder %s1064_s13, %s1060_s12  ;;  %p50_p2 = scmp.eq.s32.totalorder %s1076_s16, 0 }
   0x6   : > { %s1253_s18 = smov (%p27_p0, %s26_s18), 0  ;;  %p758_p4 = scmp.ge.s32.totalorder %s1076_s16, 1 }
   0x7   : > { %p1133_p3 = por %p50_p2, %p49_p1  ;;  %s38_s21 = ssub.s32 %s1072_s15, %s1253_s18 }
   0x8   : > { %p148_p5 = scmp.lt.s32.totalorder %s1076_s16, 4  ;;  %p40_p6 = scmp.eq.s32.totalorder %s38_s21, 0 }
   0x9   : > { %p1145_p8 = scmp.eq.s32.totalorder %s757_s17, 0  ;;  %s161_s27 = sshll.u32 %s1243_s2, 4  ;;  %s162_s27 = int_to_ptr.hbm [resolvable:$true] %s161_s27 }
   0xa   : > { %p1141_p7 = pnand %p758_p4, %p148_p5  ;;  %s1078_s28 = smov [#allocation4]  }
   0xb   : > { %s1150_s24 = scalar_select %p40_p6, %s1064_s13, %s42_s19  }
   0xc   : > { %p955_p9 = pneg %p1141_p7  ;;  %s163_s29 = sshll.u32 %s1078_s28, 4  ;;  %s164_s29 = int_to_ptr.vmem [resolvable:$true] %s163_s29 }
   0xd   : > { %p760_p11 = scmp.ge.s32.totalorder %s1076_s16, 3 }
   0xe   : > { %p956_p10 = pnand %p1145_p8, %p955_p9 }
   0xf   : > { %170 = sbr.rel (%p760_p11) target bundleno = 33 (0x21), region = 20 }
  0x10   : > { %958 = dma.hbm_to_vmem [thread:$0]  (!%p956_p10), %s162_s27, 16, %s164_s29, [#allocation5]  }
  0x14   : > { %173 = sbr.rel (!%p1133_p3) target bundleno = 33 (0x21), region = 24  ;;  %s175_s30 = sand.u32 (%p1133_p3), 1, %s1064_s13  }
  0x15   : > { %s899_s4 = smul.u32 (%p1133_p3), 12, %s1072_s15 }
  0x16   : > { %s949_s5 = smul.u32 (%p1133_p3), 48, %s175_s30 }
  0x17   : > { %s183_s8 = scalar_lea.vmem (%p1133_p3), %s1241_s0, %s899_s4 }
  0x18   : > { %v198_v0 = vld [vmem:[%s183_s8] sm:$0xff] (%p1133_p3)  ;;  %v202_v2 = vld [vmem:[%s183_s8 + $0x48] sm:$0xff] (%p1133_p3)  ;;  %s177_s9 = scalar_lea.vmem (%p1133_p3), [#allocation3], %s949_s5  ;;  %v766_v6 = vld [vmem:[%s183_s8 + $0x50] sm:$0xf] (%p1133_p3) }
  0x19   : > { %v200_v1 = vld [vmem:[%s183_s8 + $0x24] sm:$0xff]  ;;  %199 = vst [vmem:[%s177_s9] sm:$0xff] %v198_v0  ;;  %v204_v3 = vld [vmem:[%s183_s8 + $0x6c] sm:$0xff]  ;;  %v768_v7 = vld [vmem:[%s183_s8 + $0x74] sm:$0xf] }
  0x1a   : > { %201 = vst [vmem:[%s177_s9 + $0xc] sm:$0xff] %v200_v1  ;;  %v762_v4 = vld [vmem:[%s183_s8 + $0x8] sm:$0xf]  ;;  %v764_v5 = vld [vmem:[%s183_s8 + $0x2c] sm:$0xf] }
  0x1b   : > { %203 = vst [vmem:[%s177_s9 + $0x18] sm:$0xff] %v202_v2 }
  0x1c   : > { %205 = vst [vmem:[%s177_s9 + $0x24] sm:$0xff] %v204_v3 }
  0x1d   : > { %763 = vst [vmem:[%s177_s9 + $0x8] sm:$0xf] %v762_v4 }
  0x1e   : > { %765 = vst [vmem:[%s177_s9 + $0x14] sm:$0xf] %v764_v5 }
  0x1f   : > { %767 = vst [vmem:[%s177_s9 + $0x20] sm:$0xf] %v766_v6 }
  0x20   : > { %769 = vst [vmem:[%s177_s9 + $0x2c] sm:$0xf] %v768_v7 }
  0x21 PF: > { %242 = sbr.rel (%p1141_p7) target bundleno = 260 (0x104), region = 54  ;;  %s245_s10 = sand.u32 (!%p1141_p7), 1, %s1060_s12  }
  0x22   : > { %s950_s11 = smul.u32 (!%p1141_p7), 48, %s245_s10 }
  0x24   : > { %s1170_s17 = scalar_lea.vmem (!%p1141_p7), [#allocation3], %s950_s11 }
  0x26   : > { %1055 = dma.done.wait (%p1145_p8), [#allocation5], 16  }
  0x27   : > { %1057 = vsyncadd (%p1145_p8), [#allocation5], 4294967280  ;;  %s286_s19 = smul.u32 48, %s1068_s14  ;;  %p773_p13 = scmp.ne.s32.totalorder %s1068_s14, 0 }
  0x29   : > { %p287_p12 = scmp.lt.s32.totalorder %s286_s19, 143  ;;  %307 = sbr.rel (%p773_p13) target bundleno = 51 (0x33), region = 66 }
  0x2b   : > { %s1255_s19 = smov (!%p287_p12, %s286_s19), 143 }
  0x2c   : > { %s772_s20 = sshll.u32 %s1255_s19, 2 }
  0x2d   : > { %s1180_s22 = scalar_lea.vmem %s1242_s1, %s772_s20 }
  0x2e   : > { %v1079_v8 = vmov 0.0  }
  0x2f   : > { %308 = vst [vmem:[#allocation2 + $0x10] sm:$0xff] %v1079_v8 }
  0x30   : > { %309 = vst [vmem:[#allocation2] sm:$0xff] %v1079_v8 }
  0x31   : > { %310 = vst [vmem:[#allocation2 + $0x18] sm:$0xff] %v1079_v8 }
  0x32   : > { %311 = vst [vmem:[#allocation2 + $0x8] sm:$0xff] %v1079_v8 }
  0x33 PF: > { %v913_v9 = vld [vmem:[%s1180_s22 + $0x38] sm:$0xff]  ;;  %v912_v12 = vld [vmem:[%s1180_s22 + $0x30] sm:$0xff]  ;;  %v911_v15 = vld [vmem:[%s1180_s22 + $0x28] sm:$0xff]  ;;  %p894_p0 = scmp.ne.s32.totalorder %s1068_s14, 2 }
  0x34   : > { %v921_v10 = vld [vmem:[%s1180_s22 + $0x78] sm:$0xff]  ;;  %548 = vmatpush.bf16.msra.mxu0 %v913_v9  ;;  %v920_v13 = vld [vmem:[%s1180_s22 + $0x70] sm:$0xff]  ;;  %941 = vmatpush.bf16.msra.mxu3 %v913_v9  ;;  %v919_v16 = vld [vmem:[%s1180_s22 + $0x68] sm:$0xff] }
  0x35   : > { %v929_v11 = vld [vmem:[%s1180_s22 + $0xb8] sm:$0xff]  ;;  %567 = vmatpush.bf16.msra.mxu1 %v921_v10  ;;  %v928_v14 = vld [vmem:[%s1180_s22 + $0xb0] sm:$0xff]  ;;  %v927_v17 = vld [vmem:[%s1180_s22 + $0xa8] sm:$0xff] }
  0x36   : > { %586 = vmatpush.bf16.msra.mxu2 %v929_v11  ;;  %v910_v18 = vld [vmem:[%s1180_s22 + $0x20] sm:$0xff]  ;;  %v909_v21 = vld [vmem:[%s1180_s22 + $0x18] sm:$0xff]  ;;  %v908_v24 = vld [vmem:[%s1180_s22 + $0x10] sm:$0xff] }
  0x37   : > { %v918_v19 = vld [vmem:[%s1180_s22 + $0x60] sm:$0xff]  ;;  %v917_v22 = vld [vmem:[%s1180_s22 + $0x58] sm:$0xff]  ;;  %v916_v25 = vld [vmem:[%s1180_s22 + $0x50] sm:$0xff] }
  0x38   : > { %549 = vmatpush.bf16.msra.mxu0 %v912_v12  ;;  %942 = vmatpush.bf16.msra.mxu3 %v912_v12  ;;  %v926_v20 = vld [vmem:[%s1180_s22 + $0xa0] sm:$0xff]  ;;  %v925_v23 = vld [vmem:[%s1180_s22 + $0x98] sm:$0xff]  ;;  %v924_v26 = vld [vmem:[%s1180_s22 + $0x90] sm:$0xff] }
  0x39   : > { %568 = vmatpush.bf16.msra.mxu1 %v920_v13  ;;  %v907_v27 = vld [vmem:[%s1180_s22 + $0x8] sm:$0xff]  ;;  %v906_v30 = vld [vmem:[%s1180_s22] sm:$0xff]  ;;  %v312_v54 = vld [vmem:[#allocation2 + $0x10] sm:$0xff] }
  0x3a   : > { %587 = vmatpush.bf16.msra.mxu2 %v928_v14  ;;  %v915_v28 = vld [vmem:[%s1180_s22 + $0x48] sm:$0xff]  ;;  %v914_v31 = vld [vmem:[%s1180_s22 + $0x40] sm:$0xff]  ;;  %v314_v4 = vld [vmem:[#allocation2 + $0x18] sm:$0xff] }
  0x3b   : > { %v923_v29 = vld [vmem:[%s1180_s22 + $0x88] sm:$0xff]  ;;  %v922_v32 = vld [vmem:[%s1180_s22 + $0x80] sm:$0xff] }
  0x3c   : > { %550 = vmatpush.bf16.msra.mxu0 %v911_v15  ;;  %943 = vmatpush.bf16.msra.mxu3 %v911_v15  ;;  %v776_v33 = vld [vmem:[%s1170_s17] sm:$0xf]  ;;  %v901_v34 = vld [vmem:[%s1170_s17 + $0x8] sm:$0xf0]  ;;  %v900_v35 = vld [vmem:[%s1170_s17 + $0x4] sm:$0xf] }
  0x3d   : > { %569 = vmatpush.bf16.msra.mxu1 %v919_v16  ;;  %v778_v36 = vld [vmem:[%s1170_s17 + $0xc] sm:$0xf0]  ;;  %v784_v37 = vld [vmem:[%s1170_s17 + $0x8] sm:$0xf]  ;;  %v902_v38 = vld [vmem:[%s1170_s17 + $0x10] sm:$0xf0]  ;;  %v777_v41 = vor.u32 %v901_v34, %v776_v33 }
  0x3e   : > { %588 = vmatpush.bf16.msra.mxu2 %v927_v17  ;;  %v788_v39 = vld [vmem:[%s1170_s17 + $0x18] sm:$0xf]  ;;  %v904_v40 = vld [vmem:[%s1170_s17 + $0x20] sm:$0xf0]  ;;  %v781_v42 = vor.u32 %v900_v35, %v778_v36  ;;  %v785_v43 = vor.u32 %v902_v38, %v784_v37  ;;  %v903_v45 = vld [vmem:[%s1170_s17 + $0x1c] sm:$0xf] }
  0x3f   : > { %v789_v44 = vor.u32 %v904_v40, %v788_v39  ;;  %v790_v46 = vld [vmem:[%s1170_s17 + $0x24] sm:$0xf0]  ;;  %v796_v47 = vld [vmem:[%s1170_s17 + $0x20] sm:$0xf]  ;;  %v905_v48 = vld [vmem:[%s1170_s17 + $0x28] sm:$0xf0] }
  0x40   : > { %551 = vmatpush.bf16.msra.mxu0 %v910_v18  ;;  %944 = vmatpush.bf16.msra.mxu3 %v910_v18  ;;  %v793_v49 = vor.u32 %v903_v45, %v790_v46  ;;  %v797_v50 = vor.u32 %v905_v48, %v796_v47  ;;  %v313_v61 = vld [vmem:[#allocation2] sm:$0xff]  ;;  %v315_v11 = vld [vmem:[#allocation2 + $0x8] sm:$0xff] }
  0x41   : > { %570 = vmatpush.bf16.msra.mxu1 %v918_v19 }
  0x42   : > { %589 = vmatpush.bf16.msra.mxu2 %v926_v20 }
  0x44   : > { %552 = vmatpush.bf16.msra.mxu0 %v909_v21  ;;  %945 = vmatpush.bf16.msra.mxu3 %v909_v21 }
  0x45   : > { %571 = vmatpush.bf16.msra.mxu1 %v917_v22 }
  0x46   : > { %590 = vmatpush.bf16.msra.mxu2 %v925_v23 }
  0x48   : > { %553 = vmatpush.bf16.msra.mxu0 %v908_v24  ;;  %946 = vmatpush.bf16.msra.mxu3 %v908_v24 }
  0x49   : > { %572 = vmatpush.bf16.msra.mxu1 %v916_v25 }
  0x4a   : > { %591 = vmatpush.bf16.msra.mxu2 %v924_v26 }
  0x4c   : > { %554 = vmatpush.bf16.msra.mxu0 %v907_v27  ;;  %947 = vmatpush.bf16.msra.mxu3 %v907_v27 }
  0x4d   : > { %573 = vmatpush.bf16.msra.mxu1 %v915_v28 }
  0x4e   : > { %592 = vmatpush.bf16.msra.mxu2 %v923_v29 }
  0x50   : > { %555 = vmatpush.bf16.msra.mxu0 %v906_v30  ;;  %948 = vmatpush.bf16.msra.mxu3 %v906_v30 }
  0x51   : > { %574 = vmatpush.bf16.msra.mxu1 %v914_v31 }
  0x52   : > { %593 = vmatpush.bf16.msra.mxu2 %v922_v32 }
  0x53   : > { %556 = vmatmul.bf16.vlgmr.msra.gmra.mxu0 %v777_v41  ;;  %561 = vmatmul.bf16.vlgmr.msra.gmra.mxu3 %v789_v44 }
  0x54   : > { %575 = vmatmul.bf16.vlgmr.msra.gmra.mxu1 %v781_v42 }
  0x55   : > { %594 = vmatmul.bf16.vlgmr.msra.gmra.mxu2 %v785_v43 }
  0x64   : > { %580 = vmatmul.bf16.gmra.mxu1 %v793_v49 }
  0x65   : > { %599 = vmatmul.bf16.gmra.mxu2 %v797_v50 }
  0xd0   : > { %v557_v52 = vpop.f32.mrf.mxu0 }
  0xd1   : > { %v576_v51 = vpop.f32.mrf.mxu1 }
  0xd2   : > { %v577_v53 = vadd.f32 %v576_v51, %v557_v52 }
  0xd6   : > { %v562_v2 = vpop.f32.mrf.mxu3 }
  0xd8   : > { %v595_v55 = vpop.f32.mrf.mxu2  ;;  %v559_v59 = vpop.f32.mrf.mxu0 }
  0xd9   : > { %v596_v56 = vadd.f32 %v595_v55, %v577_v53  ;;  %v578_v57 = vpop.f32.mrf.mxu1 }
  0xda   : > { %v579_v60 = vadd.f32 %v578_v57, %v559_v59 }
  0xdb   : > { %v605_v58 = vadd.f32 %v596_v56, %v312_v54 }
  0xdd   : > { %609 = vst [vmem:[#allocation2 + $0x10] sm:$0xff] %v605_v58 }
  0xde   : > { %v564_v9 = vpop.f32.mrf.mxu3 }
  0xe0   : > { %v597_v62 = vpop.f32.mrf.mxu2 }
  0xe1   : > { %v598_v63 = vadd.f32 %v597_v62, %v579_v60  ;;  %v581_v0 = vpop.f32.mrf.mxu1 }
  0xe2   : > { %v582_v3 = vadd.f32 %v581_v0, %v562_v2 }
  0xe3   : > { %v606_v1 = vadd.f32 %v598_v63, %v313_v61 }
  0xe5   : > { %610 = vst [vmem:[#allocation2] sm:$0xff] %v606_v1 }
  0xe8   : > { %v600_v5 = vpop.f32.mrf.mxu2 }
  0xe9   : > { %v601_v6 = vadd.f32 %v600_v5, %v582_v3  ;;  %v583_v8 = vpop.f32.mrf.mxu1 }
  0xea   : > { %v584_v10 = vadd.f32 %v583_v8, %v564_v9 }
  0xeb   : > { %v607_v7 = vadd.f32 %v601_v6, %v314_v4 }
  0xed   : > { %611 = vst [vmem:[#allocation2 + $0x18] sm:$0xff] %v607_v7 }
  0xf0   : > { %v602_v12 = vpop.f32.mrf.mxu2 }
  0xf1   : > { %v603_v13 = vadd.f32 %v602_v12, %v584_v10  ;;  %616 = sbr.rel (%p894_p0) target bundleno = 260 (0x104), region = 70 }
  0xf3   : > { %v608_v14 = vadd.f32 %v603_v13, %v315_v11 }
  0xf5   : > { %612 = vst [vmem:[#allocation2 + $0x8] sm:$0xff] %v608_v14 }
  0xf6   : > { %v617_v15 = vld [vmem:[#allocation2 + $0x10] sm:$0xff]  ;;  %v618_v16 = vld [vmem:[#allocation2] sm:$0xff]  ;;  %v619_v18 = vld [vmem:[#allocation2 + $0x18] sm:$0xff] }
  0xf7   : > { %v1003_v17 = vld [vmem:[#allocation4] ss:$0 sm:$0xff] }
  0xf8   : > { %v625_v20 = vadd.f32 %v1003_v17, %v617_v15  ;;  %v626_v21 = vadd.f32 %v1003_v17, %v618_v16  ;;  %v627_v22 = vadd.f32 %v1003_v17, %v619_v18 }
  0xfa   : > { %v629_v24 = vmax.f32 %v625_v20, 0.0  ;;  %v630_v25 = vmax.f32 %v626_v21, 0.0  ;;  %v631_v26 = vmax.f32 %v627_v22, 0.0 }
  0xfc   : > { %v620_v19 = vld [vmem:[#allocation2 + $0x8] sm:$0xff]  ;;  %v933_v28 = vpack.c.bf16 %v630_v25, %v629_v24 }
  0xfd   : > { %v628_v23 = vadd.f32 %v1003_v17, %v620_v19 }
  0xfe   : > { %934 = vst [vmem:[%s1244_s3] sm:$0xff] %v933_v28  }
  0xff   : > { %v632_v27 = vmax.f32 %v628_v23, 0.0 }
 0x101   : > { %v938_v29 = vpack.c.bf16 %v632_v27, %v631_v26 }
 0x103   : > { %940 = vst [vmem:[%s1244_s3 + $0x8] sm:$0xff] %v938_v29  }
 0x104 PF: > { %s14_s16 = sadd.s32 1, %s1076_s16   ;;  %s1248_s12 = smov %s1064_s13 }
 0x105   : > { %p11_p1 = scmp.ge.s32.totalorder %s14_s16, 5   ;;  %s1249_s13 = smov %s1150_s24 }
 0x106   : > { %s1250_s14 = smov %s1072_s15  ;;  %s1251_s15 = smov %s1253_s18 }
 0x107   :  { %13 = sbr.rel (!%p11_p1) target bundleno = 3 (0x3), region = 116 }
 0x10c   :  { %669 = vsyncpa [#allocation5], 1 }
 0x10d   :  { %671 = vsyncpa [#allocation5 + $0x1], 1 }

// kernel: resnet34_trunk_forward.45
= control target key start
LH: loop header
LB: loop body
LE: loop exit
PB: predicated region body
PF: predicated region fallthrough
CT: control target
= control target key end

     0   :  { %8 = vsyncpa [#allocation4], 0  ;;  %s294_s15 = smov [#allocation3]   ;;  %s295_s17 = smov 128   ;;  %s329_s0 = inlined_call_operand.vmem [shape: bf16[8,128], index: 0, kind: input, shape index: {}]   ;;  %s330_s1 = inlined_call_operand.hbm [shape: bf16[128,256], index: 1, kind: input, shape index: {}]   ;;  %s331_s2 = inlined_call_operand.vmem [shape: f32[1,256], index: 2, kind: input, shape index: {}]   ;;  %s332_s3 = inlined_call_operand.vmem [shape: bf16[8,256], index: 3, kind: output, shape index: {}]  }
   0x1   :  { %s15_s14 = sshll.u32 %s330_s1, 4  ;;  %s17_s16 = sshll.u32 %s294_s15, 4  ;;  %s16_s14 = int_to_ptr.hbm [resolvable:$true] %s15_s14  ;;  %s18_s16 = int_to_ptr.vmem [resolvable:$true] %s17_s16 }
   0x2   :  { %s296_s18 = smov 8  }
   0x3   :  { %23 = dma.hbm_to_vmem [thread:$0]  %s16_s14, 2048, %s18_s16, [#allocation4], %s295_s17, %s295_s17, %s296_s18  }
   0x4   :  { %292 = dma.done.wait [#allocation4], 2048  }
   0x5   :  { %293 = vsyncadd [#allocation4], 4294965248  ;;  %v243_v0 = vld [vmem:[#allocation3 + $0x70] sm:$0xf]  ;;  %v264_v1 = vld [vmem:[#allocation3 + $0x74] sm:$0xf0] }
   0x6   :  { %v263_v2 = vld [vmem:[#allocation3 + $0x74] sm:$0xf]  ;;  %v244_v3 = vor.u32 %v264_v1, %v243_v0  ;;  %v245_v4 = vld [vmem:[#allocation3 + $0x78] sm:$0xf0]  ;;  %v235_v5 = vld [vmem:[#allocation3 + $0x60] sm:$0xf] }
   0x7   :  { %v262_v6 = vld [vmem:[#allocation3 + $0x64] sm:$0xf0]  ;;  %v248_v7 = vor.u32 %v263_v2, %v245_v4  ;;  %v261_v8 = vld [vmem:[#allocation3 + $0x64] sm:$0xf]  ;;  %v237_v9 = vld [vmem:[#allocation3 + $0x68] sm:$0xf0] }
   0x8   :  { %135 = vmatpush.bf16.msra.mxu0 %v244_v3  ;;  %v236_v10 = vor.u32 %v262_v6, %v235_v5  ;;  %v240_v11 = vor.u32 %v261_v8, %v237_v9  ;;  %v227_v12 = vld [vmem:[#allocation3 + $0x50] sm:$0xf]  ;;  %v260_v13 = vld [vmem:[#allocation3 + $0x54] sm:$0xf0]  ;;  %v259_v14 = vld [vmem:[#allocation3 + $0x54] sm:$0xf] }
   0x9   :  { %148 = vmatpush.bf16.msra.mxu1 %v248_v7  ;;  %v229_v15 = vld [vmem:[#allocation3 + $0x58] sm:$0xf0]  ;;  %v228_v16 = vor.u32 %v260_v13, %v227_v12  ;;  %v219_v18 = vld [vmem:[#allocation3 + $0x40] sm:$0xf]  ;;  %v258_v19 = vld [vmem:[#allocation3 + $0x44] sm:$0xf0] }
   0xa   :  { %v232_v17 = vor.u32 %v259_v14, %v229_v15  ;;  %v257_v20 = vld [vmem:[#allocation3 + $0x44] sm:$0xf]  ;;  %v221_v21 = vld [vmem:[#allocation3 + $0x48] sm:$0xf0]  ;;  %v220_v22 = vor.u32 %v258_v19, %v219_v18  ;;  %v211_v24 = vld [vmem:[#allocation3 + $0x30] sm:$0xf] }
   0xb   :  { %v224_v23 = vor.u32 %v257_v20, %v221_v21  ;;  %v256_v25 = vld [vmem:[#allocation3 + $0x34] sm:$0xf0]  ;;  %v255_v26 = vld [vmem:[#allocation3 + $0x34] sm:$0xf]  ;;  %v213_v27 = vld [vmem:[#allocation3 + $0x38] sm:$0xf0] }
   0xc   :  { %136 = vmatpush.bf16.msra.mxu0 %v236_v10  ;;  %v212_v28 = vor.u32 %v256_v25, %v211_v24  ;;  %v216_v29 = vor.u32 %v255_v26, %v213_v27  ;;  %v203_v30 = vld [vmem:[#allocation3 + $0x20] sm:$0xf]  ;;  %v254_v31 = vld [vmem:[#allocation3 + $0x24] sm:$0xf0]  ;;  %v253_v32 = vld [vmem:[#allocation3 + $0x24] sm:$0xf] }
   0xd   :  { %149 = vmatpush.bf16.msra.mxu1 %v240_v11  ;;  %v205_v33 = vld [vmem:[#allocation3 + $0x28] sm:$0xf0]  ;;  %v204_v34 = vor.u32 %v254_v31, %v203_v30  ;;  %v195_v36 = vld [vmem:[#allocation3 + $0x10] sm:$0xf]  ;;  %v252_v37 = vld [vmem:[#allocation3 + $0x14] sm:$0xf0] }
   0xe   :  { %v208_v35 = vor.u32 %v253_v32, %v205_v33  ;;  %v251_v38 = vld [vmem:[#allocation3 + $0x14] sm:$0xf]  ;;  %v197_v39 = vld [vmem:[#allocation3 + $0x18] sm:$0xf0]  ;;  %v196_v40 = vor.u32 %v252_v37, %v195_v36  ;;  %v187_v42 = vld [vmem:[#allocation3] sm:$0xf] }
   0xf   :  { %v200_v41 = vor.u32 %v251_v38, %v197_v39  ;;  %v250_v43 = vld [vmem:[#allocation3 + $0x4] sm:$0xf0]  ;;  %v249_v44 = vld [vmem:[#allocation3 + $0x4] sm:$0xf]  ;;  %v189_v45 = vld [vmem:[#allocation3 + $0x8] sm:$0xf0] }
  0x10   :  { %137 = vmatpush.bf16.msra.mxu0 %v228_v16  ;;  %v188_v46 = vor.u32 %v250_v43, %v187_v42  ;;  %v192_v47 = vor.u32 %v249_v44, %v189_v45  ;;  %v38_v48 = vld [vmem:[%s329_s0] sm:$0xf] }
  0x11   :  { %150 = vmatpush.bf16.msra.mxu1 %v232_v17  ;;  %v170_v49 = vld [vmem:[%s331_s2] sm:$0x3] }
  0x12   :  { %v172_v50 = vperm.slane %v170_v49, 0  ;;  %v173_v51 = vperm.slane %v170_v49, 1 }
  0x14   :  { %138 = vmatpush.bf16.msra.mxu0 %v220_v22 }
  0x15   :  { %151 = vmatpush.bf16.msra.mxu1 %v224_v23 }
  0x18   :  { %139 = vmatpush.bf16.msra.mxu0 %v212_v28 }
  0x19   :  { %152 = vmatpush.bf16.msra.mxu1 %v216_v29 }
  0x1c   :  { %140 = vmatpush.bf16.msra.mxu0 %v204_v34 }
  0x1d   :  { %153 = vmatpush.bf16.msra.mxu1 %v208_v35 }
  0x20   :  { %141 = vmatpush.bf16.msra.mxu0 %v196_v40 }
  0x21   :  { %154 = vmatpush.bf16.msra.mxu1 %v200_v41 }
  0x24   :  { %142 = vmatpush.bf16.msra.mxu0 %v188_v46 }
  0x25   :  { %155 = vmatpush.bf16.msra.mxu1 %v192_v47 }
  0x27   :  { %143 = vmatmul.bf16.vlgmr.msra.gmra.mxu0 %v38_v48 }
  0x28   :  { %156 = vmatmul.bf16.vlgmr.msra.gmra.mxu1 %v38_v48 }
  0xa4   :  { %v144_v52 = vpop.f32.mrf.mxu0 }
  0xa5   :  { %v176_v53 = vadd.f32 %v172_v50, %v144_v52  ;;  %v157_v54 = vpop.f32.mrf.mxu1 }
  0xa6   :  { %v177_v55 = vadd.f32 %v173_v51, %v157_v54 }
  0xa8   :  { %v178_v56 = vpack.c.bf16 %v177_v55, %v176_v53 }
  0xaa   :  { %179 = vst [vmem:[%s332_s3] sm:$0xff] %v178_v56 }
  0xac   :  { %v146_v57 = vpop.f32.mrf.mxu0 }
  0xad   :  { %v159_v58 = vpop.f32.mrf.mxu1 }
  0xae   :  { %184 = vsyncpa [#allocation4], 1 }

// kernel: resnet34_trunk_forward.46
= control target key start
LH: loop header
LB: loop body
LE: loop exit
PB: predicated region body
PF: predicated region fallthrough
CT: control target
= control target key end

     0   :  { %s1128_s12 = smov 0   ;;  %s1130_s13 = smov 0   ;;  %s1279_s0 = inlined_call_operand.vmem [shape: bf16[8,1152], index: 0, kind: input, shape index: {}]   ;;  %s1280_s1 = inlined_call_operand.vmem [shape: bf16[1152,256], index: 1, kind: input, shape index: {}]   ;;  %s1281_s2 = inlined_call_operand.vmem [shape: f32[1,256], index: 2, kind: input, shape index: {}]   ;;  %s1282_s3 = inlined_call_operand.vmem [shape: bf16[8,256], index: 3, kind: output, shape index: {}]  }
   0x1   :  { %s1132_s14 = smov 0  }
   0x2 LB: > { %s25_s15 = sadd.s32 1, %s1101_s13  ;;  %p807_p0 = scmp.ge.s32.totalorder %s1105_s14, 1  ;;  %s1105_s14 = sphi %s1132_s14, %s13_s14   ;;  %s1101_s13 = sphi %s1130_s13, %s1284_s13   ;;  %s1097_s12 = sphi %s1128_s12, %s1283_s12  }
   0x3   : > { %p26_p1 = scmp.ge.s32.totalorder %s25_s15, 3  ;;  %p194_p2 = scmp.lt.s32.totalorder %s1105_s14, 4 }
   0x5   : > { %s1286_s15 = smov (%p26_p1, %s25_s15), 0  ;;  %p195_p3 = pnand %p807_p0, %p194_p2 }
   0x6   : > { %s240_s16 = smul.u32 (!%p195_p3), 3, %s1097_s12  ;;  %p811_p6 = scmp.ne.s32.totalorder (!%p195_p3), %s1097_s12, 0 }
   0x7   : > { %198 = sbr.rel (%p195_p3) target bundleno = 236 (0xec), region = 32 }
   0x8   : > { %s250_s17 = smul.u32 (!%p195_p3), 48, %s1097_s12  ;;  %p243_p4 = scmp.lt.s32.totalorder (!%p195_p3), %s240_s16, 8 }
   0xa   : > { %p252_p5 = scmp.lt.s32.totalorder (!%p195_p3), %s250_s17, 143 }
   0xc   : > { %s1288_s16 = smov (!%p243_p4, %s240_s16), 8  ;;  %s1290_s17 = smov (!%p252_p5, %s250_s17), 143 }
   0xd   : > { %s808_s18 = sshll.u32 %s1288_s16, 2  ;;  %s1009_s22 = sshll.u32 %s1290_s17, 3 }
   0xe   : > { %s1153_s21 = scalar_lea.vmem %s1279_s0, %s808_s18  ;;  %s1158_s25 = scalar_lea.vmem %s1280_s1, %s1009_s22 }
   0xf   : > { %280 = sbr.rel (%p811_p6) target bundleno = 23 (0x17), region = 36 }
  0x14   : > { %v1107_v0 = vmov 0.0  }
  0x15   : > { %281 = vst [vmem:[#allocation2] sm:$0xff] %v1107_v0 }
  0x16   : > { %282 = vst [vmem:[#allocation2 + $0x8] sm:$0xff] %v1107_v0 }
  0x17 PF: > { %v870_v1 = vld [vmem:[%s1158_s25 + $0x70] sm:$0xf]  ;;  %v1025_v2 = vld [vmem:[%s1158_s25 + $0x74] sm:$0xf0]  ;;  %v862_v6 = vld [vmem:[%s1158_s25 + $0x60] sm:$0xf] }
  0x18   : > { %v934_v3 = vld [vmem:[%s1158_s25 + $0xf0] sm:$0xf]  ;;  %v871_v4 = vor.u32 %v1025_v2, %v870_v1  ;;  %v1041_v5 = vld [vmem:[%s1158_s25 + $0xf4] sm:$0xf0]  ;;  %v1023_v7 = vld [vmem:[%s1158_s25 + $0x64] sm:$0xf0] }
  0x19   : > { %v935_v8 = vor.u32 %v1041_v5, %v934_v3  ;;  %v926_v9 = vld [vmem:[%s1158_s25 + $0xe0] sm:$0xf]  ;;  %v1039_v10 = vld [vmem:[%s1158_s25 + $0xe4] sm:$0xf0]  ;;  %v863_v11 = vor.u32 %v1023_v7, %v862_v6  ;;  %v854_v12 = vld [vmem:[%s1158_s25 + $0x50] sm:$0xf] }
  0x1a   : > { %586 = vmatpush.bf16.msra.mxu0 %v871_v4  ;;  %v927_v13 = vor.u32 %v1039_v10, %v926_v9  ;;  %v1021_v14 = vld [vmem:[%s1158_s25 + $0x54] sm:$0xf0]  ;;  %v998_v15 = vld [vmem:[%s1158_s25 + $0x170] sm:$0xf]  ;;  %v990_v20 = vld [vmem:[%s1158_s25 + $0x160] sm:$0xf] }
  0x1b   : > { %599 = vmatpush.bf16.msra.mxu1 %v935_v8  ;;  %v1057_v16 = vld [vmem:[%s1158_s25 + $0x174] sm:$0xf0]  ;;  %v918_v17 = vld [vmem:[%s1158_s25 + $0xd0] sm:$0xf]  ;;  %v1055_v21 = vld [vmem:[%s1158_s25 + $0x164] sm:$0xf0]  ;;  %v855_v23 = vor.u32 %v1021_v14, %v854_v12 }
  0x1c   : > { %v1037_v18 = vld [vmem:[%s1158_s25 + $0xd4] sm:$0xf0]  ;;  %v999_v19 = vor.u32 %v1057_v16, %v998_v15  ;;  %v1024_v22 = vld [vmem:[%s1158_s25 + $0x74] sm:$0xf]  ;;  %v846_v24 = vld [vmem:[%s1158_s25 + $0x40] sm:$0xf]  ;;  %v991_v26 = vor.u32 %v1055_v21, %v990_v20 }
  0x1d   : > { %v1019_v25 = vld [vmem:[%s1158_s25 + $0x44] sm:$0xf0]  ;;  %v872_v27 = vld [vmem:[%s1158_s25 + $0x78] sm:$0xf0]  ;;  %v919_v28 = vor.u32 %v1037_v18, %v918_v17  ;;  %v910_v29 = vld [vmem:[%s1158_s25 + $0xc0] sm:$0xf] }
  0x1e   : > { %587 = vmatpush.bf16.msra.mxu0 %v863_v11  ;;  %612 = vmatpush.bf16.msra.mxu2 %v999_v19  ;;  %v1035_v30 = vld [vmem:[%s1158_s25 + $0xc4] sm:$0xf0]  ;;  %v875_v31 = vor.u32 %v1024_v22, %v872_v27  ;;  %v982_v32 = vld [vmem:[%s1158_s25 + $0x150] sm:$0xf]  ;;  %v1053_v33 = vld [vmem:[%s1158_s25 + $0x154] sm:$0xf0]  ;;  %v847_v37 = vor.u32 %v1019_v25, %v846_v24 }
  0x1f   : > { %600 = vmatpush.bf16.msra.mxu1 %v927_v13  ;;  %v1022_v34 = vld [vmem:[%s1158_s25 + $0x64] sm:$0xf]  ;;  %v864_v35 = vld [vmem:[%s1158_s25 + $0x68] sm:$0xf0]  ;;  %v838_v38 = vld [vmem:[%s1158_s25 + $0x30] sm:$0xf]  ;;  %v983_v40 = vor.u32 %v1053_v33, %v982_v32  ;;  %v911_v42 = vor.u32 %v1035_v30, %v910_v29 }
  0x20   : > { %625 = vmatpush.bf16.msra.mxu3 %v875_v31  ;;  %v867_v36 = vor.u32 %v1022_v34, %v864_v35  ;;  %v1017_v39 = vld [vmem:[%s1158_s25 + $0x34] sm:$0xf0]  ;;  %v974_v41 = vld [vmem:[%s1158_s25 + $0x140] sm:$0xf]  ;;  %v1051_v43 = vld [vmem:[%s1158_s25 + $0x144] sm:$0xf0] }
  0x21   : > { %v1020_v44 = vld [vmem:[%s1158_s25 + $0x54] sm:$0xf]  ;;  %v856_v45 = vld [vmem:[%s1158_s25 + $0x58] sm:$0xf0]  ;;  %v902_v46 = vld [vmem:[%s1158_s25 + $0xb0] sm:$0xf]  ;;  %v839_v49 = vor.u32 %v1017_v39, %v838_v38  ;;  %v975_v51 = vor.u32 %v1051_v43, %v974_v41 }
  0x22   : > { %588 = vmatpush.bf16.msra.mxu0 %v855_v23  ;;  %613 = vmatpush.bf16.msra.mxu2 %v991_v26  ;;  %v1033_v47 = vld [vmem:[%s1158_s25 + $0xb4] sm:$0xf0]  ;;  %v859_v48 = vor.u32 %v1020_v44, %v856_v45  ;;  %v830_v50 = vld [vmem:[%s1158_s25 + $0x20] sm:$0xf]  ;;  %v1018_v52 = vld [vmem:[%s1158_s25 + $0x44] sm:$0xf] }
  0x23   : > { %601 = vmatpush.bf16.msra.mxu1 %v919_v28  ;;  %v848_v53 = vld [vmem:[%s1158_s25 + $0x48] sm:$0xf0]  ;;  %v903_v54 = vor.u32 %v1033_v47, %v902_v46  ;;  %v1015_v55 = vld [vmem:[%s1158_s25 + $0x24] sm:$0xf0]  ;;  %v966_v56 = vld [vmem:[%s1158_s25 + $0x130] sm:$0xf] }
  0x24   : > { %626 = vmatpush.bf16.msra.mxu3 %v867_v36  ;;  %v1049_v57 = vld [vmem:[%s1158_s25 + $0x134] sm:$0xf0]  ;;  %v894_v58 = vld [vmem:[%s1158_s25 + $0xa0] sm:$0xf]  ;;  %v1031_v59 = vld [vmem:[%s1158_s25 + $0xa4] sm:$0xf0]  ;;  %v851_v60 = vor.u32 %v1018_v52, %v848_v53  ;;  %v831_v61 = vor.u32 %v1015_v55, %v830_v50 }
  0x25   : > { %v822_v62 = vld [vmem:[%s1158_s25 + $0x10] sm:$0xf]  ;;  %v967_v63 = vor.u32 %v1049_v57, %v966_v56  ;;  %v1016_v0 = vld [vmem:[%s1158_s25 + $0x34] sm:$0xf]  ;;  %v840_v1 = vld [vmem:[%s1158_s25 + $0x38] sm:$0xf0]  ;;  %v895_v2 = vor.u32 %v1031_v59, %v894_v58 }
  0x26   : > { %589 = vmatpush.bf16.msra.mxu0 %v847_v37  ;;  %614 = vmatpush.bf16.msra.mxu2 %v983_v40  ;;  %v1013_v3 = vld [vmem:[%s1158_s25 + $0x14] sm:$0xf0]  ;;  %v958_v4 = vld [vmem:[%s1158_s25 + $0x120] sm:$0xf]  ;;  %v1047_v5 = vld [vmem:[%s1158_s25 + $0x124] sm:$0xf0]  ;;  %v843_v10 = vor.u32 %v1016_v0, %v840_v1 }
  0x27   : > { %602 = vmatpush.bf16.msra.mxu1 %v911_v42  ;;  %v886_v6 = vld [vmem:[%s1158_s25 + $0x90] sm:$0xf]  ;;  %v1029_v7 = vld [vmem:[%s1158_s25 + $0x94] sm:$0xf0]  ;;  %v814_v8 = vld [vmem:[%s1158_s25] sm:$0xf]  ;;  %v823_v11 = vor.u32 %v1013_v3, %v822_v62  ;;  %v959_v12 = vor.u32 %v1047_v5, %v958_v4 }
  0x28   : > { %627 = vmatpush.bf16.msra.mxu3 %v859_v48  ;;  %v1011_v9 = vld [vmem:[%s1158_s25 + $0x4] sm:$0xf0]  ;;  %v1014_v13 = vld [vmem:[%s1158_s25 + $0x24] sm:$0xf]  ;;  %v832_v14 = vld [vmem:[%s1158_s25 + $0x28] sm:$0xf0]  ;;  %v887_v16 = vor.u32 %v1029_v7, %v886_v6 }
  0x29   : > { %v285_v15 = vld [vmem:[%s1153_s21] sm:$0xff]  ;;  %v950_v18 = vld [vmem:[%s1158_s25 + $0x110] sm:$0xf]  ;;  %v1045_v19 = vld [vmem:[%s1158_s25 + $0x114] sm:$0xf0]  ;;  %v835_v25 = vor.u32 %v1014_v13, %v832_v14  ;;  %v815_v27 = vor.u32 %v1011_v9, %v814_v8  ;;  %p1004_p7 = scmp.ne.s32.totalorder %s1097_s12, 2 }
  0x2a   : > { %590 = vmatpush.bf16.msra.mxu0 %v839_v49  ;;  %615 = vmatpush.bf16.msra.mxu2 %v975_v51  ;;  %v878_v17 = vld [vmem:[%s1158_s25 + $0x80] sm:$0xf]  ;;  %v1027_v20 = vld [vmem:[%s1158_s25 + $0x84] sm:$0xf0]  ;;  %v1040_v21 = vld [vmem:[%s1158_s25 + $0xf4] sm:$0xf]  ;;  %v337_v26 = vunpack.c.l.b16 %v285_v15  ;;  %v951_v28 = vor.u32 %v1045_v19, %v950_v18  ;;  %v338_v29 = vunpack.c.h.b16 %v285_v15 }
  0x2b   : > { %603 = vmatpush.bf16.msra.mxu1 %v903_v54  ;;  %v936_v22 = vld [vmem:[%s1158_s25 + $0xf8] sm:$0xf0]  ;;  %v1056_v23 = vld [vmem:[%s1158_s25 + $0x174] sm:$0xf]  ;;  %v286_v32 = vld [vmem:[%s1153_s21 + $0x8] sm:$0xf]  ;;  %v879_v33 = vor.u32 %v1027_v20, %v878_v17 }
  0x2c   : > { %628 = vmatpush.bf16.msra.mxu3 %v851_v60  ;;  %v1000_v24 = vld [vmem:[%s1158_s25 + $0x178] sm:$0xf0]  ;;  %v1012_v30 = vld [vmem:[%s1158_s25 + $0x14] sm:$0xf]  ;;  %v939_v34 = vor.u32 %v1040_v21, %v936_v22  ;;  %v942_v35 = vld [vmem:[%s1158_s25 + $0x100] sm:$0xf]  ;;  %v340_v42 = vpack.c.b16 %v337_v26, %v337_v26  ;;  %v339_v44 = vunpack.c.l.b16 %v286_v32  ;;  %v1233_v45 = vpack.c.b16 %v338_v29, %v338_v29 }
  0x2d   : > { %v824_v31 = vld [vmem:[%s1158_s25 + $0x18] sm:$0xf0]  ;;  %v1043_v36 = vld [vmem:[%s1158_s25 + $0x104] sm:$0xf0]  ;;  %v1003_v37 = vor.u32 %v1056_v23, %v1000_v24  ;;  %v1038_v38 = vld [vmem:[%s1158_s25 + $0xe4] sm:$0xf] }
  0x2e   : > { %591 = vmatpush.bf16.msra.mxu0 %v831_v61  ;;  %616 = vmatpush.bf16.msra.mxu2 %v967_v63  ;;  %v928_v39 = vld [vmem:[%s1158_s25 + $0xe8] sm:$0xf0]  ;;  %v1054_v40 = vld [vmem:[%s1158_s25 + $0x164] sm:$0xf]  ;;  %v827_v43 = vor.u32 %v1012_v30, %v824_v31  ;;  %v943_v46 = vor.u32 %v1043_v36, %v942_v35  ;;  %v1036_v51 = vld [vmem:[%s1158_s25 + $0xd4] sm:$0xf]  ;;  %v342_v55 = vpack.c.b16 %v339_v44, %v339_v44 }
  0x2f   : > { %604 = vmatpush.bf16.msra.mxu1 %v895_v2  ;;  %v992_v41 = vld [vmem:[%s1158_s25 + $0x168] sm:$0xf0]  ;;  %v1010_v47 = vld [vmem:[%s1158_s25 + $0x4] sm:$0xf]  ;;  %v931_v49 = vor.u32 %v1038_v38, %v928_v39  ;;  %v920_v52 = vld [vmem:[%s1158_s25 + $0xd8] sm:$0xf0] }
  0x30   : > { %629 = vmatpush.bf16.msra.mxu3 %v843_v10  ;;  %v816_v48 = vld [vmem:[%s1158_s25 + $0x8] sm:$0xf0]  ;;  %v995_v50 = vor.u32 %v1054_v40, %v992_v41  ;;  %v1052_v53 = vld [vmem:[%s1158_s25 + $0x154] sm:$0xf]  ;;  %v984_v54 = vld [vmem:[%s1158_s25 + $0x158] sm:$0xf0]  ;;  %v923_v57 = vor.u32 %v1036_v51, %v920_v52 }
  0x31   : > { %v819_v56 = vor.u32 %v1010_v47, %v816_v48  ;;  %v987_v58 = vor.u32 %v1052_v53, %v984_v54  ;;  %v1034_v59 = vld [vmem:[%s1158_s25 + $0xc4] sm:$0xf]  ;;  %v912_v60 = vld [vmem:[%s1158_s25 + $0xc8] sm:$0xf0]  ;;  %v1032_v1 = vld [vmem:[%s1158_s25 + $0xb4] sm:$0xf] }
  0x32   : > { %592 = vmatpush.bf16.msra.mxu0 %v823_v11  ;;  %617 = vmatpush.bf16.msra.mxu2 %v959_v12  ;;  %v1050_v61 = vld [vmem:[%s1158_s25 + $0x144] sm:$0xf]  ;;  %v976_v62 = vld [vmem:[%s1158_s25 + $0x148] sm:$0xf0]  ;;  %v915_v63 = vor.u32 %v1034_v59, %v912_v60  ;;  %v904_v2 = vld [vmem:[%s1158_s25 + $0xb8] sm:$0xf0] }
  0x33   : > { %605 = vmatpush.bf16.msra.mxu1 %v887_v16  ;;  %v979_v0 = vor.u32 %v1050_v61, %v976_v62  ;;  %v1048_v3 = vld [vmem:[%s1158_s25 + $0x134] sm:$0xf]  ;;  %v968_v4 = vld [vmem:[%s1158_s25 + $0x138] sm:$0xf0]  ;;  %v907_v5 = vor.u32 %v1032_v1, %v904_v2  ;;  %v1030_v7 = vld [vmem:[%s1158_s25 + $0xa4] sm:$0xf] }
  0x34   : > { %630 = vmatpush.bf16.msra.mxu3 %v835_v25  ;;  %v971_v6 = vor.u32 %v1048_v3, %v968_v4  ;;  %v896_v8 = vld [vmem:[%s1158_s25 + $0xa8] sm:$0xf0]  ;;  %v1046_v9 = vld [vmem:[%s1158_s25 + $0x124] sm:$0xf]  ;;  %v1028_v13 = vld [vmem:[%s1158_s25 + $0x94] sm:$0xf] }
  0x35   : > { %v960_v10 = vld [vmem:[%s1158_s25 + $0x128] sm:$0xf0]  ;;  %v899_v11 = vor.u32 %v1030_v7, %v896_v8  ;;  %v888_v14 = vld [vmem:[%s1158_s25 + $0x98] sm:$0xf0]  ;;  %v1044_v15 = vld [vmem:[%s1158_s25 + $0x114] sm:$0xf] }
  0x36   : > { %593 = vmatpush.bf16.msra.mxu0 %v815_v27  ;;  %618 = vmatpush.bf16.msra.mxu2 %v951_v28  ;;  %v963_v12 = vor.u32 %v1046_v9, %v960_v10  ;;  %v952_v16 = vld [vmem:[%s1158_s25 + $0x118] sm:$0xf0]  ;;  %v891_v17 = vor.u32 %v1028_v13, %v888_v14  ;;  %v1026_v19 = vld [vmem:[%s1158_s25 + $0x84] sm:$0xf]  ;;  %v880_v20 = vld [vmem:[%s1158_s25 + $0x88] sm:$0xf0] }
  0x37   : > { %606 = vmatpush.bf16.msra.mxu1 %v879_v33  ;;  %v955_v18 = vor.u32 %v1044_v15, %v952_v16  ;;  %v1042_v21 = vld [vmem:[%s1158_s25 + $0x104] sm:$0xf]  ;;  %v944_v22 = vld [vmem:[%s1158_s25 + $0x108] sm:$0xf0]  ;;  %v883_v23 = vor.u32 %v1026_v19, %v880_v20 }
  0x38   : > { %631 = vmatpush.bf16.msra.mxu3 %v827_v43  ;;  %v947_v24 = vor.u32 %v1042_v21, %v944_v22  ;;  %v283_v30 = vld [vmem:[#allocation2] sm:$0xff]  ;;  %v284_v40 = vld [vmem:[#allocation2 + $0x8] sm:$0xff] }
  0x39   : > { %594 = vmatmul.bf16.vlgmr.msra.gmra.mxu0 %v340_v42 }
  0x3a   : > { %638 = vmatpush.bf16.msrb.mxu0 %v939_v34  ;;  %607 = vmatmul.bf16.vlgmr.msra.gmra.mxu1 %v1233_v45 }
  0x3b   : > { %651 = vmatpush.bf16.msrb.mxu1 %v1003_v37  ;;  %619 = vmatpush.bf16.msra.mxu2 %v943_v46 }
  0x3c   : > { %632 = vmatpush.bf16.msra.mxu3 %v819_v56 }
  0x3e   : > { %639 = vmatpush.bf16.msrb.mxu0 %v931_v49  ;;  %620 = vmatmul.bf16.vlgmr.msra.gmra.mxu2 %v342_v55 }
  0x3f   : > { %652 = vmatpush.bf16.msrb.mxu1 %v995_v50  ;;  %633 = vmatmul.bf16.vlgmr.msra.gmra.mxu3 %v340_v42 }
  0x42   : > { %640 = vmatpush.bf16.msrb.mxu0 %v923_v57 }
  0x43   : > { %653 = vmatpush.bf16.msrb.mxu1 %v987_v58 }
  0x46   : > { %641 = vmatpush.bf16.msrb.mxu0 %v915_v63 }
  0x47   : > { %654 = vmatpush.bf16.msrb.mxu1 %v979_v0 }
  0x4a   : > { %642 = vmatpush.bf16.msrb.mxu0 %v907_v5 }
  0x4b   : > { %655 = vmatpush.bf16.msrb.mxu1 %v971_v6 }
  0x4e   : > { %643 = vmatpush.bf16.msrb.mxu0 %v899_v11 }
  0x4f   : > { %656 = vmatpush.bf16.msrb.mxu1 %v963_v12 }
  0x52   : > { %644 = vmatpush.bf16.msrb.mxu0 %v891_v17 }
  0x53   : > { %657 = vmatpush.bf16.msrb.mxu1 %v955_v18 }
  0x56   : > { %645 = vmatpush.bf16.msrb.mxu0 %v883_v23 }
  0x57   : > { %658 = vmatpush.bf16.msrb.mxu1 %v947_v24 }
  0x59   : > { %646 = vmatmul.bf16.vlgmr.msrb.gmra.mxu0 %v1233_v45 }
  0x5a   : > { %659 = vmatmul.bf16.vlgmr.msrb.gmra.mxu1 %v342_v55 }
  0xb6   : > { %v595_v25 = vpop.f32.mrf.mxu0 }
  0xb7   : > { %v608_v26 = vpop.f32.mrf.mxu1 }
  0xb8   : > { %v609_v27 = vadd.f32 %v608_v26, %v595_v25 }
  0xbe   : > { %v597_v28 = vpop.f32.mrf.mxu0 }
  0xbf   : > { %v610_v29 = vpop.f32.mrf.mxu1 }
  0xc1   : > { %v621_v31 = vpop.f32.mrf.mxu2 }
  0xc2   : > { %v622_v32 = vadd.f32 %v621_v31, %v609_v27  ;;  %v634_v34 = vpop.f32.mrf.mxu3 }
  0xc4   : > { %v664_v33 = vadd.f32 %v622_v32, %v283_v30 }
  0xc6   : > { %666 = vst [vmem:[#allocation2] sm:$0xff] %v664_v33 }
  0xc9   : > { %v623_v35 = vpop.f32.mrf.mxu2 }
  0xca   : > { %v636_v36 = vpop.f32.mrf.mxu3 }
  0xd6   : > { %v647_v37 = vpop.f32.mrf.mxu0 }
  0xd7   : > { %v648_v38 = vadd.f32 %v647_v37, %v634_v34  ;;  %v660_v39 = vpop.f32.mrf.mxu1 }
  0xd9   : > { %v661_v41 = vadd.f32 %v660_v39, %v648_v38 }
  0xdb   : > { %v665_v42 = vadd.f32 %v661_v41, %v284_v40  ;;  %671 = sbr.rel (%p1004_p7) target bundleno = 236 (0xec), region = 40 }
  0xdd   : > { %667 = vst [vmem:[#allocation2 + $0x8] sm:$0xff] %v665_v42 }
  0xde   : > { %v649_v43 = vpop.f32.mrf.mxu0 }
  0xdf   : > { %v662_v44 = vpop.f32.mrf.mxu1 }
  0xe0   : > { %v672_v45 = vld [vmem:[#allocation2] sm:$0xff] }
  0xe1   : > { %v674_v47 = vld [vmem:[%s1281_s2] sm:$0x3] }
  0xe2   : > { %v676_v48 = vperm.slane %v674_v47, 0  ;;  %v677_v49 = vperm.slane %v674_v47, 1 }
  0xe4   : > { %v673_v46 = vld [vmem:[#allocation2 + $0x8] sm:$0xff]  ;;  %v680_v50 = vadd.f32 %v676_v48, %v672_v45 }
  0xe5   : > { %v681_v51 = vadd.f32 %v677_v49, %v673_v46 }
  0xe6   : > { %v682_v52 = vmax.f32 %v680_v50, 0.0 }
  0xe7   : > { %v683_v53 = vmax.f32 %v681_v51, 0.0 }
  0xe9   : > { %v684_v54 = vpack.c.bf16 %v683_v53, %v682_v52 }
  0xeb   : > { %685 = vst [vmem:[%s1282_s3] sm:$0xff] %v684_v54 }
  0xec PF: > { %s13_s14 = sadd.s32 1, %s1105_s14   ;;  %s1283_s12 = smov %s1101_s13 }
  0xed   : > { %p10_p8 = scmp.ge.s32.totalorder %s13_s14, 5   ;;  %s1284_s13 = smov %s1286_s15 }
  0xef   :  { %12 = sbr.rel (!%p10_p8) target bundleno = 2 (0x2), region = 76 }

// kernel: resnet34_trunk_forward.47
= control target key start
LH: loop header
LB: loop body
LE: loop exit
PB: predicated region body
PF: predicated region fallthrough
CT: control target
= control target key end

     0   :  { %s1223_s15 = smov 0   ;;  %s1225_s16 = smov 0   ;;  %s1377_s0 = inlined_call_operand.vmem [shape: bf16[8,2304], index: 0, kind: input, shape index: {}]   ;;  %s1378_s1 = inlined_call_operand.vmem [shape: bf16[2304,256], index: 1, kind: input, shape index: {}]   ;;  %s1379_s2 = inlined_call_operand.vmem [shape: f32[1,256], index: 2, kind: input, shape index: {}]   ;;  %s1380_s3 = inlined_call_operand.vmem [shape: bf16[8,256], index: 3, kind: input, shape index: {}]   ;;  %s1381_s4 = inlined_call_operand.vmem [shape: bf16[8,256], index: 4, kind: output, shape index: {}]  }
   0x1   :  { %s1227_s17 = smov 0  }
   0x2 LB: > { %s26_s18 = sadd.s32 1, %s1191_s16  ;;  %p897_p0 = scmp.ge.s32.totalorder %s1195_s17, 1  ;;  %s1195_s17 = sphi %s1227_s17, %s14_s17   ;;  %s1191_s16 = sphi %s1225_s16, %s1383_s16   ;;  %s1187_s15 = sphi %s1223_s15, %s1382_s15  }
   0x3   : > { %p27_p1 = scmp.ge.s32.totalorder %s26_s18, 6  ;;  %p236_p2 = scmp.lt.s32.totalorder %s1195_s17, 7 }
   0x5   : > { %s1385_s18 = smov (%p27_p1, %s26_s18), 0  ;;  %p237_p3 = pnand %p897_p0, %p236_p2 }
   0x6   : > { %s293_s19 = smul.u32 (!%p237_p3), 3, %s1187_s15  ;;  %p901_p6 = scmp.ne.s32.totalorder (!%p237_p3), %s1187_s15, 0 }
   0x7   : > { %240 = sbr.rel (%p237_p3) target bundleno = 238 (0xee), region = 36 }
   0x8   : > { %s303_s20 = smul.u32 (!%p237_p3), 48, %s1187_s15  ;;  %p296_p4 = scmp.lt.s32.totalorder (!%p237_p3), %s293_s19, 17 }
   0xa   : > { %p305_p5 = scmp.lt.s32.totalorder (!%p237_p3), %s303_s20, 287 }
   0xc   : > { %s1387_s19 = smov (!%p296_p4, %s293_s19), 17  ;;  %s1389_s20 = smov (!%p305_p5, %s303_s20), 287 }
   0xd   : > { %s898_s21 = sshll.u32 %s1387_s19, 2  ;;  %s1099_s25 = sshll.u32 %s1389_s20, 3 }
   0xe   : > { %s1248_s24 = scalar_lea.vmem %s1377_s0, %s898_s21  ;;  %s1253_s28 = scalar_lea.vmem %s1378_s1, %s1099_s25 }
   0xf   : > { %343 = sbr.rel (%p901_p6) target bundleno = 23 (0x17), region = 40 }
  0x14   : > { %v1197_v0 = vmov 0.0  }
  0x15   : > { %344 = vst [vmem:[#allocation2] sm:$0xff] %v1197_v0 }
  0x16   : > { %345 = vst [vmem:[#allocation2 + $0x8] sm:$0xff] %v1197_v0 }
  0x17 PF: > { %v960_v1 = vld [vmem:[%s1253_s28 + $0x70] sm:$0xf]  ;;  %v1115_v2 = vld [vmem:[%s1253_s28 + $0x74] sm:$0xf0]  ;;  %v952_v6 = vld [vmem:[%s1253_s28 + $0x60] sm:$0xf] }
  0x18   : > { %v1024_v3 = vld [vmem:[%s1253_s28 + $0xf0] sm:$0xf]  ;;  %v961_v4 = vor.u32 %v1115_v2, %v960_v1  ;;  %v1131_v5 = vld [vmem:[%s1253_s28 + $0xf4] sm:$0xf0]  ;;  %v1113_v7 = vld [vmem:[%s1253_s28 + $0x64] sm:$0xf0] }
  0x19   : > { %v1025_v8 = vor.u32 %v1131_v5, %v1024_v3  ;;  %v1016_v9 = vld [vmem:[%s1253_s28 + $0xe0] sm:$0xf]  ;;  %v1129_v10 = vld [vmem:[%s1253_s28 + $0xe4] sm:$0xf0]  ;;  %v953_v11 = vor.u32 %v1113_v7, %v952_v6  ;;  %v944_v12 = vld [vmem:[%s1253_s28 + $0x50] sm:$0xf] }
  0x1a   : > { %649 = vmatpush.bf16.msra.mxu0 %v961_v4  ;;  %v1017_v13 = vor.u32 %v1129_v10, %v1016_v9  ;;  %v1111_v14 = vld [vmem:[%s1253_s28 + $0x54] sm:$0xf0]  ;;  %v1088_v15 = vld [vmem:[%s1253_s28 + $0x170] sm:$0xf]  ;;  %v1080_v20 = vld [vmem:[%s1253_s28 + $0x160] sm:$0xf] }
  0x1b   : > { %662 = vmatpush.bf16.msra.mxu1 %v1025_v8  ;;  %v1147_v16 = vld [vmem:[%s1253_s28 + $0x174] sm:$0xf0]  ;;  %v1008_v17 = vld [vmem:[%s1253_s28 + $0xd0] sm:$0xf]  ;;  %v1145_v21 = vld [vmem:[%s1253_s28 + $0x164] sm:$0xf0]  ;;  %v945_v23 = vor.u32 %v1111_v14, %v944_v12 }
  0x1c   : > { %v1127_v18 = vld [vmem:[%s1253_s28 + $0xd4] sm:$0xf0]  ;;  %v1089_v19 = vor.u32 %v1147_v16, %v1088_v15  ;;  %v1114_v22 = vld [vmem:[%s1253_s28 + $0x74] sm:$0xf]  ;;  %v936_v24 = vld [vmem:[%s1253_s28 + $0x40] sm:$0xf]  ;;  %v1081_v26 = vor.u32 %v1145_v21, %v1080_v20 }
  0x1d   : > { %v1109_v25 = vld [vmem:[%s1253_s28 + $0x44] sm:$0xf0]  ;;  %v962_v27 = vld [vmem:[%s1253_s28 + $0x78] sm:$0xf0]  ;;  %v1009_v28 = vor.u32 %v1127_v18, %v1008_v17  ;;  %v1000_v29 = vld [vmem:[%s1253_s28 + $0xc0] sm:$0xf] }
  0x1e   : > { %650 = vmatpush.bf16.msra.mxu0 %v953_v11  ;;  %675 = vmatpush.bf16.msra.mxu2 %v1089_v19  ;;  %v1125_v30 = vld [vmem:[%s1253_s28 + $0xc4] sm:$0xf0]  ;;  %v965_v31 = vor.u32 %v1114_v22, %v962_v27  ;;  %v1072_v32 = vld [vmem:[%s1253_s28 + $0x150] sm:$0xf]  ;;  %v1143_v33 = vld [vmem:[%s1253_s28 + $0x154] sm:$0xf0]  ;;  %v937_v37 = vor.u32 %v1109_v25, %v936_v24 }
  0x1f   : > { %663 = vmatpush.bf16.msra.mxu1 %v1017_v13  ;;  %v1112_v34 = vld [vmem:[%s1253_s28 + $0x64] sm:$0xf]  ;;  %v954_v35 = vld [vmem:[%s1253_s28 + $0x68] sm:$0xf0]  ;;  %v928_v38 = vld [vmem:[%s1253_s28 + $0x30] sm:$0xf]  ;;  %v1073_v40 = vor.u32 %v1143_v33, %v1072_v32  ;;  %v1001_v42 = vor.u32 %v1125_v30, %v1000_v29 }
  0x20   : > { %688 = vmatpush.bf16.msra.mxu3 %v965_v31  ;;  %v957_v36 = vor.u32 %v1112_v34, %v954_v35  ;;  %v1107_v39 = vld [vmem:[%s1253_s28 + $0x34] sm:$0xf0]  ;;  %v1064_v41 = vld [vmem:[%s1253_s28 + $0x140] sm:$0xf]  ;;  %v1141_v43 = vld [vmem:[%s1253_s28 + $0x144] sm:$0xf0] }
  0x21   : > { %v1110_v44 = vld [vmem:[%s1253_s28 + $0x54] sm:$0xf]  ;;  %v946_v45 = vld [vmem:[%s1253_s28 + $0x58] sm:$0xf0]  ;;  %v992_v46 = vld [vmem:[%s1253_s28 + $0xb0] sm:$0xf]  ;;  %v929_v49 = vor.u32 %v1107_v39, %v928_v38  ;;  %v1065_v51 = vor.u32 %v1141_v43, %v1064_v41 }
  0x22   : > { %651 = vmatpush.bf16.msra.mxu0 %v945_v23  ;;  %676 = vmatpush.bf16.msra.mxu2 %v1081_v26  ;;  %v1123_v47 = vld [vmem:[%s1253_s28 + $0xb4] sm:$0xf0]  ;;  %v949_v48 = vor.u32 %v1110_v44, %v946_v45  ;;  %v920_v50 = vld [vmem:[%s1253_s28 + $0x20] sm:$0xf]  ;;  %v1108_v52 = vld [vmem:[%s1253_s28 + $0x44] sm:$0xf] }
  0x23   : > { %664 = vmatpush.bf16.msra.mxu1 %v1009_v28  ;;  %v938_v53 = vld [vmem:[%s1253_s28 + $0x48] sm:$0xf0]  ;;  %v993_v54 = vor.u32 %v1123_v47, %v992_v46  ;;  %v1105_v55 = vld [vmem:[%s1253_s28 + $0x24] sm:$0xf0]  ;;  %v1056_v56 = vld [vmem:[%s1253_s28 + $0x130] sm:$0xf] }
  0x24   : > { %689 = vmatpush.bf16.msra.mxu3 %v957_v36  ;;  %v1139_v57 = vld [vmem:[%s1253_s28 + $0x134] sm:$0xf0]  ;;  %v984_v58 = vld [vmem:[%s1253_s28 + $0xa0] sm:$0xf]  ;;  %v1121_v59 = vld [vmem:[%s1253_s28 + $0xa4] sm:$0xf0]  ;;  %v941_v60 = vor.u32 %v1108_v52, %v938_v53  ;;  %v921_v61 = vor.u32 %v1105_v55, %v920_v50 }
  0x25   : > { %v912_v62 = vld [vmem:[%s1253_s28 + $0x10] sm:$0xf]  ;;  %v1057_v63 = vor.u32 %v1139_v57, %v1056_v56  ;;  %v1106_v0 = vld [vmem:[%s1253_s28 + $0x34] sm:$0xf]  ;;  %v930_v1 = vld [vmem:[%s1253_s28 + $0x38] sm:$0xf0]  ;;  %v985_v2 = vor.u32 %v1121_v59, %v984_v58 }
  0x26   : > { %652 = vmatpush.bf16.msra.mxu0 %v937_v37  ;;  %677 = vmatpush.bf16.msra.mxu2 %v1073_v40  ;;  %v1103_v3 = vld [vmem:[%s1253_s28 + $0x14] sm:$0xf0]  ;;  %v1048_v4 = vld [vmem:[%s1253_s28 + $0x120] sm:$0xf]  ;;  %v1137_v5 = vld [vmem:[%s1253_s28 + $0x124] sm:$0xf0]  ;;  %v933_v10 = vor.u32 %v1106_v0, %v930_v1 }
  0x27   : > { %665 = vmatpush.bf16.msra.mxu1 %v1001_v42  ;;  %v976_v6 = vld [vmem:[%s1253_s28 + $0x90] sm:$0xf]  ;;  %v1119_v7 = vld [vmem:[%s1253_s28 + $0x94] sm:$0xf0]  ;;  %v904_v8 = vld [vmem:[%s1253_s28] sm:$0xf]  ;;  %v913_v11 = vor.u32 %v1103_v3, %v912_v62  ;;  %v1049_v12 = vor.u32 %v1137_v5, %v1048_v4 }
  0x28   : > { %690 = vmatpush.bf16.msra.mxu3 %v949_v48  ;;  %v1101_v9 = vld [vmem:[%s1253_s28 + $0x4] sm:$0xf0]  ;;  %v1104_v13 = vld [vmem:[%s1253_s28 + $0x24] sm:$0xf]  ;;  %v922_v14 = vld [vmem:[%s1253_s28 + $0x28] sm:$0xf0]  ;;  %v977_v16 = vor.u32 %v1119_v7, %v976_v6 }
  0x29   : > { %v348_v15 = vld [vmem:[%s1248_s24] sm:$0xff]  ;;  %v1040_v18 = vld [vmem:[%s1253_s28 + $0x110] sm:$0xf]  ;;  %v1135_v19 = vld [vmem:[%s1253_s28 + $0x114] sm:$0xf0]  ;;  %v925_v25 = vor.u32 %v1104_v13, %v922_v14  ;;  %v905_v27 = vor.u32 %v1101_v9, %v904_v8  ;;  %p1094_p7 = scmp.ne.s32.totalorder %s1187_s15, 5 }
  0x2a   : > { %653 = vmatpush.bf16.msra.mxu0 %v929_v49  ;;  %678 = vmatpush.bf16.msra.mxu2 %v1065_v51  ;;  %v968_v17 = vld [vmem:[%s1253_s28 + $0x80] sm:$0xf]  ;;  %v1117_v20 = vld [vmem:[%s1253_s28 + $0x84] sm:$0xf0]  ;;  %v1130_v21 = vld [vmem:[%s1253_s28 + $0xf4] sm:$0xf]  ;;  %v400_v26 = vunpack.c.l.b16 %v348_v15  ;;  %v1041_v28 = vor.u32 %v1135_v19, %v1040_v18  ;;  %v401_v29 = vunpack.c.h.b16 %v348_v15 }
  0x2b   : > { %666 = vmatpush.bf16.msra.mxu1 %v993_v54  ;;  %v1026_v22 = vld [vmem:[%s1253_s28 + $0xf8] sm:$0xf0]  ;;  %v1146_v23 = vld [vmem:[%s1253_s28 + $0x174] sm:$0xf]  ;;  %v349_v32 = vld [vmem:[%s1248_s24 + $0x8] sm:$0xf]  ;;  %v969_v33 = vor.u32 %v1117_v20, %v968_v17 }
  0x2c   : > { %691 = vmatpush.bf16.msra.mxu3 %v941_v60  ;;  %v1090_v24 = vld [vmem:[%s1253_s28 + $0x178] sm:$0xf0]  ;;  %v1102_v30 = vld [vmem:[%s1253_s28 + $0x14] sm:$0xf]  ;;  %v1029_v34 = vor.u32 %v1130_v21, %v1026_v22  ;;  %v1032_v35 = vld [vmem:[%s1253_s28 + $0x100] sm:$0xf]  ;;  %v403_v42 = vpack.c.b16 %v400_v26, %v400_v26  ;;  %v402_v44 = vunpack.c.l.b16 %v349_v32  ;;  %v1328_v45 = vpack.c.b16 %v401_v29, %v401_v29 }
  0x2d   : > { %v914_v31 = vld [vmem:[%s1253_s28 + $0x18] sm:$0xf0]  ;;  %v1133_v36 = vld [vmem:[%s1253_s28 + $0x104] sm:$0xf0]  ;;  %v1093_v37 = vor.u32 %v1146_v23, %v1090_v24  ;;  %v1128_v38 = vld [vmem:[%s1253_s28 + $0xe4] sm:$0xf] }
  0x2e   : > { %654 = vmatpush.bf16.msra.mxu0 %v921_v61  ;;  %679 = vmatpush.bf16.msra.mxu2 %v1057_v63  ;;  %v1018_v39 = vld [vmem:[%s1253_s28 + $0xe8] sm:$0xf0]  ;;  %v1144_v40 = vld [vmem:[%s1253_s28 + $0x164] sm:$0xf]  ;;  %v917_v43 = vor.u32 %v1102_v30, %v914_v31  ;;  %v1033_v46 = vor.u32 %v1133_v36, %v1032_v35  ;;  %v1126_v51 = vld [vmem:[%s1253_s28 + $0xd4] sm:$0xf]  ;;  %v405_v55 = vpack.c.b16 %v402_v44, %v402_v44 }
  0x2f   : > { %667 = vmatpush.bf16.msra.mxu1 %v985_v2  ;;  %v1082_v41 = vld [vmem:[%s1253_s28 + $0x168] sm:$0xf0]  ;;  %v1100_v47 = vld [vmem:[%s1253_s28 + $0x4] sm:$0xf]  ;;  %v1021_v49 = vor.u32 %v1128_v38, %v1018_v39  ;;  %v1010_v52 = vld [vmem:[%s1253_s28 + $0xd8] sm:$0xf0] }
  0x30   : > { %692 = vmatpush.bf16.msra.mxu3 %v933_v10  ;;  %v906_v48 = vld [vmem:[%s1253_s28 + $0x8] sm:$0xf0]  ;;  %v1085_v50 = vor.u32 %v1144_v40, %v1082_v41  ;;  %v1142_v53 = vld [vmem:[%s1253_s28 + $0x154] sm:$0xf]  ;;  %v1074_v54 = vld [vmem:[%s1253_s28 + $0x158] sm:$0xf0]  ;;  %v1013_v57 = vor.u32 %v1126_v51, %v1010_v52 }
  0x31   : > { %v909_v56 = vor.u32 %v1100_v47, %v906_v48  ;;  %v1077_v58 = vor.u32 %v1142_v53, %v1074_v54  ;;  %v1124_v59 = vld [vmem:[%s1253_s28 + $0xc4] sm:$0xf]  ;;  %v1002_v60 = vld [vmem:[%s1253_s28 + $0xc8] sm:$0xf0]  ;;  %v1122_v1 = vld [vmem:[%s1253_s28 + $0xb4] sm:$0xf] }
  0x32   : > { %655 = vmatpush.bf16.msra.mxu0 %v913_v11  ;;  %680 = vmatpush.bf16.msra.mxu2 %v1049_v12  ;;  %v1140_v61 = vld [vmem:[%s1253_s28 + $0x144] sm:$0xf]  ;;  %v1066_v62 = vld [vmem:[%s1253_s28 + $0x148] sm:$0xf0]  ;;  %v1005_v63 = vor.u32 %v1124_v59, %v1002_v60  ;;  %v994_v2 = vld [vmem:[%s1253_s28 + $0xb8] sm:$0xf0] }
  0x33   : > { %668 = vmatpush.bf16.msra.mxu1 %v977_v16  ;;  %v1069_v0 = vor.u32 %v1140_v61, %v1066_v62  ;;  %v1138_v3 = vld [vmem:[%s1253_s28 + $0x134] sm:$0xf]  ;;  %v1058_v4 = vld [vmem:[%s1253_s28 + $0x138] sm:$0xf0]  ;;  %v997_v5 = vor.u32 %v1122_v1, %v994_v2  ;;  %v1120_v7 = vld [vmem:[%s1253_s28 + $0xa4] sm:$0xf] }
  0x34   : > { %693 = vmatpush.bf16.msra.mxu3 %v925_v25  ;;  %v1061_v6 = vor.u32 %v1138_v3, %v1058_v4  ;;  %v986_v8 = vld [vmem:[%s1253_s28 + $0xa8] sm:$0xf0]  ;;  %v1136_v9 = vld [vmem:[%s1253_s28 + $0x124] sm:$0xf]  ;;  %v1118_v13 = vld [vmem:[%s1253_s28 + $0x94] sm:$0xf] }
  0x35   : > { %v1050_v10 = vld [vmem:[%s1253_s28 + $0x128] sm:$0xf0]  ;;  %v989_v11 = vor.u32 %v1120_v7, %v986_v8  ;;  %v978_v14 = vld [vmem:[%s1253_s28 + $0x98] sm:$0xf0]  ;;  %v1134_v15 = vld [vmem:[%s1253_s28 + $0x114] sm:$0xf] }
  0x36   : > { %656 = vmatpush.bf16.msra.mxu0 %v905_v27  ;;  %681 = vmatpush.bf16.msra.mxu2 %v1041_v28  ;;  %v1053_v12 = vor.u32 %v1136_v9, %v1050_v10  ;;  %v1042_v16 = vld [vmem:[%s1253_s28 + $0x118] sm:$0xf0]  ;;  %v981_v17 = vor.u32 %v1118_v13, %v978_v14  ;;  %v1116_v19 = vld [vmem:[%s1253_s28 + $0x84] sm:$0xf]  ;;  %v970_v20 = vld [vmem:[%s1253_s28 + $0x88] sm:$0xf0] }
  0x37   : > { %669 = vmatpush.bf16.msra.mxu1 %v969_v33  ;;  %v1045_v18 = vor.u32 %v1134_v15, %v1042_v16  ;;  %v1132_v21 = vld [vmem:[%s1253_s28 + $0x104] sm:$0xf]  ;;  %v1034_v22 = vld [vmem:[%s1253_s28 + $0x108] sm:$0xf0]  ;;  %v973_v23 = vor.u32 %v1116_v19, %v970_v20 }
  0x38   : > { %694 = vmatpush.bf16.msra.mxu3 %v917_v43  ;;  %v1037_v24 = vor.u32 %v1132_v21, %v1034_v22  ;;  %v346_v30 = vld [vmem:[#allocation2] sm:$0xff]  ;;  %v347_v40 = vld [vmem:[#allocation2 + $0x8] sm:$0xff] }
  0x39   : > { %657 = vmatmul.bf16.vlgmr.msra.gmra.mxu0 %v403_v42 }
  0x3a   : > { %701 = vmatpush.bf16.msrb.mxu0 %v1029_v34  ;;  %670 = vmatmul.bf16.vlgmr.msra.gmra.mxu1 %v1328_v45 }
  0x3b   : > { %714 = vmatpush.bf16.msrb.mxu1 %v1093_v37  ;;  %682 = vmatpush.bf16.msra.mxu2 %v1033_v46 }
  0x3c   : > { %695 = vmatpush.bf16.msra.mxu3 %v909_v56 }
  0x3e   : > { %702 = vmatpush.bf16.msrb.mxu0 %v1021_v49  ;;  %683 = vmatmul.bf16.vlgmr.msra.gmra.mxu2 %v405_v55 }
  0x3f   : > { %715 = vmatpush.bf16.msrb.mxu1 %v1085_v50  ;;  %696 = vmatmul.bf16.vlgmr.msra.gmra.mxu3 %v403_v42 }
  0x42   : > { %703 = vmatpush.bf16.msrb.mxu0 %v1013_v57 }
  0x43   : > { %716 = vmatpush.bf16.msrb.mxu1 %v1077_v58 }
  0x46   : > { %704 = vmatpush.bf16.msrb.mxu0 %v1005_v63 }
  0x47   : > { %717 = vmatpush.bf16.msrb.mxu1 %v1069_v0 }
  0x4a   : > { %705 = vmatpush.bf16.msrb.mxu0 %v997_v5 }
  0x4b   : > { %718 = vmatpush.bf16.msrb.mxu1 %v1061_v6 }
  0x4e   : > { %706 = vmatpush.bf16.msrb.mxu0 %v989_v11 }
  0x4f   : > { %719 = vmatpush.bf16.msrb.mxu1 %v1053_v12 }
  0x52   : > { %707 = vmatpush.bf16.msrb.mxu0 %v981_v17 }
  0x53   : > { %720 = vmatpush.bf16.msrb.mxu1 %v1045_v18 }
  0x56   : > { %708 = vmatpush.bf16.msrb.mxu0 %v973_v23 }
  0x57   : > { %721 = vmatpush.bf16.msrb.mxu1 %v1037_v24 }
  0x59   : > { %709 = vmatmul.bf16.vlgmr.msrb.gmra.mxu0 %v1328_v45 }
  0x5a   : > { %722 = vmatmul.bf16.vlgmr.msrb.gmra.mxu1 %v405_v55 }
  0xb6   : > { %v658_v25 = vpop.f32.mrf.mxu0 }
  0xb7   : > { %v671_v26 = vpop.f32.mrf.mxu1 }
  0xb8   : > { %v672_v27 = vadd.f32 %v671_v26, %v658_v25 }
  0xbe   : > { %v660_v28 = vpop.f32.mrf.mxu0 }
  0xbf   : > { %v673_v29 = vpop.f32.mrf.mxu1 }
  0xc1   : > { %v684_v31 = vpop.f32.mrf.mxu2 }
  0xc2   : > { %v685_v32 = vadd.f32 %v684_v31, %v672_v27  ;;  %v697_v34 = vpop.f32.mrf.mxu3 }
  0xc4   : > { %v727_v33 = vadd.f32 %v685_v32, %v346_v30 }
  0xc6   : > { %729 = vst [vmem:[#allocation2] sm:$0xff] %v727_v33 }
  0xc9   : > { %v686_v35 = vpop.f32.mrf.mxu2 }
  0xca   : > { %v699_v36 = vpop.f32.mrf.mxu3 }
  0xd6   : > { %v710_v37 = vpop.f32.mrf.mxu0 }
  0xd7   : > { %v711_v38 = vadd.f32 %v710_v37, %v697_v34  ;;  %v723_v39 = vpop.f32.mrf.mxu1 }
  0xd9   : > { %v724_v41 = vadd.f32 %v723_v39, %v711_v38 }
  0xdb   : > { %v728_v42 = vadd.f32 %v724_v41, %v347_v40  ;;  %734 = sbr.rel (%p1094_p7) target bundleno = 238 (0xee), region = 44 }
  0xdd   : > { %730 = vst [vmem:[#allocation2 + $0x8] sm:$0xff] %v728_v42 }
  0xde   : > { %v712_v43 = vpop.f32.mrf.mxu0 }
  0xdf   : > { %v725_v44 = vpop.f32.mrf.mxu1 }
  0xe0   : > { %v735_v45 = vld [vmem:[#allocation2] sm:$0xff] }
  0xe1   : > { %v737_v47 = vld [vmem:[%s1379_s2] sm:$0x3] }
  0xe2   : > { %v739_v48 = vperm.slane %v737_v47, 0  ;;  %v740_v49 = vperm.slane %v737_v47, 1  ;;  %v745_v50 = vld [vmem:[%s1380_s3] sm:$0xff] }
  0xe3   : > { %v746_v51 = vunpack.c.l.bf16 %v745_v50  ;;  %v747_v52 = vunpack.c.h.bf16 %v745_v50 }
  0xe4   : > { %v736_v46 = vld [vmem:[#allocation2 + $0x8] sm:$0xff]  ;;  %v743_v53 = vadd.f32 %v739_v48, %v735_v45 }
  0xe5   : > { %v744_v54 = vadd.f32 %v740_v49, %v736_v46 }
  0xe6   : > { %v748_v55 = vadd.f32 %v746_v51, %v743_v53 }
  0xe7   : > { %v749_v56 = vadd.f32 %v747_v52, %v744_v54 }
  0xe8   : > { %v750_v57 = vmax.f32 %v748_v55, 0.0 }
  0xe9   : > { %v751_v58 = vmax.f32 %v749_v56, 0.0 }
  0xeb   : > { %v752_v59 = vpack.c.bf16 %v751_v58, %v750_v57 }
  0xed   : > { %753 = vst [vmem:[%s1381_s4] sm:$0xff] %v752_v59 }
  0xee PF: > { %s14_s17 = sadd.s32 1, %s1195_s17   ;;  %s1382_s15 = smov %s1191_s16 }
  0xef   : > { %p11_p8 = scmp.ge.s32.totalorder %s14_s17, 8   ;;  %s1383_s16 = smov %s1385_s18 }
  0xf1   :  { %13 = sbr.rel (!%p11_p8) target bundleno = 2 (0x2), region = 83 }

// kernel: resnet34_trunk_forward.48
= control target key start
LH: loop header
LB: loop body
LE: loop exit
PB: predicated region body
PF: predicated region fallthrough
CT: control target
= control target key end

     0   :  { %s1128_s12 = smov 0   ;;  %s1130_s13 = smov 0   ;;  %s1279_s0 = inlined_call_operand.vmem [shape: bf16[8,2304], index: 0, kind: input, shape index: {}]   ;;  %s1280_s1 = inlined_call_operand.vmem [shape: bf16[2304,256], index: 1, kind: input, shape index: {}]   ;;  %s1281_s2 = inlined_call_operand.vmem [shape: f32[1,256], index: 2, kind: input, shape index: {}]   ;;  %s1282_s3 = inlined_call_operand.vmem [shape: bf16[8,256], index: 3, kind: output, shape index: {}]  }
   0x1   :  { %s1132_s14 = smov 0  }
   0x2 LB: > { %s25_s15 = sadd.s32 1, %s1101_s13  ;;  %p807_p0 = scmp.ge.s32.totalorder %s1105_s14, 1  ;;  %s1105_s14 = sphi %s1132_s14, %s13_s14   ;;  %s1101_s13 = sphi %s1130_s13, %s1284_s13   ;;  %s1097_s12 = sphi %s1128_s12, %s1283_s12  }
   0x3   : > { %p26_p1 = scmp.ge.s32.totalorder %s25_s15, 6  ;;  %p194_p2 = scmp.lt.s32.totalorder %s1105_s14, 7 }
   0x5   : > { %s1286_s15 = smov (%p26_p1, %s25_s15), 0  ;;  %p195_p3 = pnand %p807_p0, %p194_p2 }
   0x6   : > { %s240_s16 = smul.u32 (!%p195_p3), 3, %s1097_s12  ;;  %p811_p6 = scmp.ne.s32.totalorder (!%p195_p3), %s1097_s12, 0 }
   0x7   : > { %198 = sbr.rel (%p195_p3) target bundleno = 236 (0xec), region = 32 }
   0x8   : > { %s250_s17 = smul.u32 (!%p195_p3), 48, %s1097_s12  ;;  %p243_p4 = scmp.lt.s32.totalorder (!%p195_p3), %s240_s16, 17 }
   0xa   : > { %p252_p5 = scmp.lt.s32.totalorder (!%p195_p3), %s250_s17, 287 }
   0xc   : > { %s1288_s16 = smov (!%p243_p4, %s240_s16), 17  ;;  %s1290_s17 = smov (!%p252_p5, %s250_s17), 287 }
   0xd   : > { %s808_s18 = sshll.u32 %s1288_s16, 2  ;;  %s1009_s22 = sshll.u32 %s1290_s17, 3 }
   0xe   : > { %s1153_s21 = scalar_lea.vmem %s1279_s0, %s808_s18  ;;  %s1158_s25 = scalar_lea.vmem %s1280_s1, %s1009_s22 }
   0xf   : > { %280 = sbr.rel (%p811_p6) target bundleno = 23 (0x17), region = 36 }
  0x14   : > { %v1107_v0 = vmov 0.0  }
  0x15   : > { %281 = vst [vmem:[#allocation2] sm:$0xff] %v1107_v0 }
  0x16   : > { %282 = vst [vmem:[#allocation2 + $0x8] sm:$0xff] %v1107_v0 }
  0x17 PF: > { %v870_v1 = vld [vmem:[%s1158_s25 + $0x70] sm:$0xf]  ;;  %v1025_v2 = vld [vmem:[%s1158_s25 + $0x74] sm:$0xf0]  ;;  %v862_v6 = vld [vmem:[%s1158_s25 + $0x60] sm:$0xf] }
  0x18   : > { %v934_v3 = vld [vmem:[%s1158_s25 + $0xf0] sm:$0xf]  ;;  %v871_v4 = vor.u32 %v1025_v2, %v870_v1  ;;  %v1041_v5 = vld [vmem:[%s1158_s25 + $0xf4] sm:$0xf0]  ;;  %v1023_v7 = vld [vmem:[%s1158_s25 + $0x64] sm:$0xf0] }
  0x19   : > { %v935_v8 = vor.u32 %v1041_v5, %v934_v3  ;;  %v926_v9 = vld [vmem:[%s1158_s25 + $0xe0] sm:$0xf]  ;;  %v1039_v10 = vld [vmem:[%s1158_s25 + $0xe4] sm:$0xf0]  ;;  %v863_v11 = vor.u32 %v1023_v7, %v862_v6  ;;  %v854_v12 = vld [vmem:[%s1158_s25 + $0x50] sm:$0xf] }
  0x1a   : > { %586 = vmatpush.bf16.msra.mxu0 %v871_v4  ;;  %v927_v13 = vor.u32 %v1039_v10, %v926_v9  ;;  %v1021_v14 = vld [vmem:[%s1158_s25 + $0x54] sm:$0xf0]  ;;  %v998_v15 = vld [vmem:[%s1158_s25 + $0x170] sm:$0xf]  ;;  %v990_v20 = vld [vmem:[%s1158_s25 + $0x160] sm:$0xf] }
  0x1b   : > { %599 = vmatpush.bf16.msra.mxu1 %v935_v8  ;;  %v1057_v16 = vld [vmem:[%s1158_s25 + $0x174] sm:$0xf0]  ;;  %v918_v17 = vld [vmem:[%s1158_s25 + $0xd0] sm:$0xf]  ;;  %v1055_v21 = vld [vmem:[%s1158_s25 + $0x164] sm:$0xf0]  ;;  %v855_v23 = vor.u32 %v1021_v14, %v854_v12 }
  0x1c   : > { %v1037_v18 = vld [vmem:[%s1158_s25 + $0xd4] sm:$0xf0]  ;;  %v999_v19 = vor.u32 %v1057_v16, %v998_v15  ;;  %v1024_v22 = vld [vmem:[%s1158_s25 + $0x74] sm:$0xf]  ;;  %v846_v24 = vld [vmem:[%s1158_s25 + $0x40] sm:$0xf]  ;;  %v991_v26 = vor.u32 %v1055_v21, %v990_v20 }
  0x1d   : > { %v1019_v25 = vld [vmem:[%s1158_s25 + $0x44] sm:$0xf0]  ;;  %v872_v27 = vld [vmem:[%s1158_s25 + $0x78] sm:$0xf0]  ;;  %v919_v28 = vor.u32 %v1037_v18, %v918_v17  ;;  %v910_v29 = vld [vmem:[%s1158_s25 + $0xc0] sm:$0xf] }
  0x1e   : > { %587 = vmatpush.bf16.msra.mxu0 %v863_v11  ;;  %612 = vmatpush.bf16.msra.mxu2 %v999_v19  ;;  %v1035_v30 = vld [vmem:[%s1158_s25 + $0xc4] sm:$0xf0]  ;;  %v875_v31 = vor.u32 %v1024_v22, %v872_v27  ;;  %v982_v32 = vld [vmem:[%s1158_s25 + $0x150] sm:$0xf]  ;;  %v1053_v33 = vld [vmem:[%s1158_s25 + $0x154] sm:$0xf0]  ;;  %v847_v37 = vor.u32 %v1019_v25, %v846_v24 }
  0x1f   : > { %600 = vmatpush.bf16.msra.mxu1 %v927_v13  ;;  %v1022_v34 = vld [vmem:[%s1158_s25 + $0x64] sm:$0xf]  ;;  %v864_v35 = vld [vmem:[%s1158_s25 + $0x68] sm:$0xf0]  ;;  %v838_v38 = vld [vmem:[%s1158_s25 + $0x30] sm:$0xf]  ;;  %v983_v40 = vor.u32 %v1053_v33, %v982_v32  ;;  %v911_v42 = vor.u32 %v1035_v30, %v910_v29 }
  0x20   : > { %625 = vmatpush.bf16.msra.mxu3 %v875_v31  ;;  %v867_v36 = vor.u32 %v1022_v34, %v864_v35  ;;  %v1017_v39 = vld [vmem:[%s1158_s25 + $0x34] sm:$0xf0]  ;;  %v974_v41 = vld [vmem:[%s1158_s25 + $0x140] sm:$0xf]  ;;  %v1051_v43 = vld [vmem:[%s1158_s25 + $0x144] sm:$0xf0] }
  0x21   : > { %v1020_v44 = vld [vmem:[%s1158_s25 + $0x54] sm:$0xf]  ;;  %v856_v45 = vld [vmem:[%s1158_s25 + $0x58] sm:$0xf0]  ;;  %v902_v46 = vld [vmem:[%s1158_s25 + $0xb0] sm:$0xf]  ;;  %v839_v49 = vor.u32 %v1017_v39, %v838_v38  ;;  %v975_v51 = vor.u32 %v1051_v43, %v974_v41 }
  0x22   : > { %588 = vmatpush.bf16.msra.mxu0 %v855_v23  ;;  %613 = vmatpush.bf16.msra.mxu2 %v991_v26  ;;  %v1033_v47 = vld [vmem:[%s1158_s25 + $0xb4] sm:$0xf0]  ;;  %v859_v48 = vor.u32 %v1020_v44, %v856_v45  ;;  %v830_v50 = vld [vmem:[%s1158_s25 + $0x20] sm:$0xf]  ;;  %v1018_v52 = vld [vmem:[%s1158_s25 + $0x44] sm:$0xf] }
  0x23   : > { %601 = vmatpush.bf16.msra.mxu1 %v919_v28  ;;  %v848_v53 = vld [vmem:[%s1158_s25 + $0x48] sm:$0xf0]  ;;  %v903_v54 = vor.u32 %v1033_v47, %v902_v46  ;;  %v1015_v55 = vld [vmem:[%s1158_s25 + $0x24] sm:$0xf0]  ;;  %v966_v56 = vld [vmem:[%s1158_s25 + $0x130] sm:$0xf] }
  0x24   : > { %626 = vmatpush.bf16.msra.mxu3 %v867_v36  ;;  %v1049_v57 = vld [vmem:[%s1158_s25 + $0x134] sm:$0xf0]  ;;  %v894_v58 = vld [vmem:[%s1158_s25 + $0xa0] sm:$0xf]  ;;  %v1031_v59 = vld [vmem:[%s1158_s25 + $0xa4] sm:$0xf0]  ;;  %v851_v60 = vor.u32 %v1018_v52, %v848_v53  ;;  %v831_v61 = vor.u32 %v1015_v55, %v830_v50 }
  0x25   : > { %v822_v62 = vld [vmem:[%s1158_s25 + $0x10] sm:$0xf]  ;;  %v967_v63 = vor.u32 %v1049_v57, %v966_v56  ;;  %v1016_v0 = vld [vmem:[%s1158_s25 + $0x34] sm:$0xf]  ;;  %v840_v1 = vld [vmem:[%s1158_s25 + $0x38] sm:$0xf0]  ;;  %v895_v2 = vor.u32 %v1031_v59, %v894_v58 }
  0x26   : > { %589 = vmatpush.bf16.msra.mxu0 %v847_v37  ;;  %614 = vmatpush.bf16.msra.mxu2 %v983_v40  ;;  %v1013_v3 = vld [vmem:[%s1158_s25 + $0x14] sm:$0xf0]  ;;  %v958_v4 = vld [vmem:[%s1158_s25 + $0x120] sm:$0xf]  ;;  %v1047_v5 = vld [vmem:[%s1158_s25 + $0x124] sm:$0xf0]  ;;  %v843_v10 = vor.u32 %v1016_v0, %v840_v1 }
  0x27   : > { %602 = vmatpush.bf16.msra.mxu1 %v911_v42  ;;  %v886_v6 = vld [vmem:[%s1158_s25 + $0x90] sm:$0xf]  ;;  %v1029_v7 = vld [vmem:[%s1158_s25 + $0x94] sm:$0xf0]  ;;  %v814_v8 = vld [vmem:[%s1158_s25] sm:$0xf]  ;;  %v823_v11 = vor.u32 %v1013_v3, %v822_v62  ;;  %v959_v12 = vor.u32 %v1047_v5, %v958_v4 }
  0x28   : > { %627 = vmatpush.bf16.msra.mxu3 %v859_v48  ;;  %v1011_v9 = vld [vmem:[%s1158_s25 + $0x4] sm:$0xf0]  ;;  %v1014_v13 = vld [vmem:[%s1158_s25 + $0x24] sm:$0xf]  ;;  %v832_v14 = vld [vmem:[%s1158_s25 + $0x28] sm:$0xf0]  ;;  %v887_v16 = vor.u32 %v1029_v7, %v886_v6 }
  0x29   : > { %v285_v15 = vld [vmem:[%s1153_s21] sm:$0xff]  ;;  %v950_v18 = vld [vmem:[%s1158_s25 + $0x110] sm:$0xf]  ;;  %v1045_v19 = vld [vmem:[%s1158_s25 + $0x114] sm:$0xf0]  ;;  %v835_v25 = vor.u32 %v1014_v13, %v832_v14  ;;  %v815_v27 = vor.u32 %v1011_v9, %v814_v8  ;;  %p1004_p7 = scmp.ne.s32.totalorder %s1097_s12, 5 }
  0x2a   : > { %590 = vmatpush.bf16.msra.mxu0 %v839_v49  ;;  %615 = vmatpush.bf16.msra.mxu2 %v975_v51  ;;  %v878_v17 = vld [vmem:[%s1158_s25 + $0x80] sm:$0xf]  ;;  %v1027_v20 = vld [vmem:[%s1158_s25 + $0x84] sm:$0xf0]  ;;  %v1040_v21 = vld [vmem:[%s1158_s25 + $0xf4] sm:$0xf]  ;;  %v337_v26 = vunpack.c.l.b16 %v285_v15  ;;  %v951_v28 = vor.u32 %v1045_v19, %v950_v18  ;;  %v338_v29 = vunpack.c.h.b16 %v285_v15 }
  0x2b   : > { %603 = vmatpush.bf16.msra.mxu1 %v903_v54  ;;  %v936_v22 = vld [vmem:[%s1158_s25 + $0xf8] sm:$0xf0]  ;;  %v1056_v23 = vld [vmem:[%s1158_s25 + $0x174] sm:$0xf]  ;;  %v286_v32 = vld [vmem:[%s1153_s21 + $0x8] sm:$0xf]  ;;  %v879_v33 = vor.u32 %v1027_v20, %v878_v17 }
  0x2c   : > { %628 = vmatpush.bf16.msra.mxu3 %v851_v60  ;;  %v1000_v24 = vld [vmem:[%s1158_s25 + $0x178] sm:$0xf0]  ;;  %v1012_v30 = vld [vmem:[%s1158_s25 + $0x14] sm:$0xf]  ;;  %v939_v34 = vor.u32 %v1040_v21, %v936_v22  ;;  %v942_v35 = vld [vmem:[%s1158_s25 + $0x100] sm:$0xf]  ;;  %v340_v42 = vpack.c.b16 %v337_v26, %v337_v26  ;;  %v339_v44 = vunpack.c.l.b16 %v286_v32  ;;  %v1233_v45 = vpack.c.b16 %v338_v29, %v338_v29 }
  0x2d   : > { %v824_v31 = vld [vmem:[%s1158_s25 + $0x18] sm:$0xf0]  ;;  %v1043_v36 = vld [vmem:[%s1158_s25 + $0x104] sm:$0xf0]  ;;  %v1003_v37 = vor.u32 %v1056_v23, %v1000_v24  ;;  %v1038_v38 = vld [vmem:[%s1158_s25 + $0xe4] sm:$0xf] }
  0x2e   : > { %591 = vmatpush.bf16.msra.mxu0 %v831_v61  ;;  %616 = vmatpush.bf16.msra.mxu2 %v967_v63  ;;  %v928_v39 = vld [vmem:[%s1158_s25 + $0xe8] sm:$0xf0]  ;;  %v1054_v40 = vld [vmem:[%s1158_s25 + $0x164] sm:$0xf]  ;;  %v827_v43 = vor.u32 %v1012_v30, %v824_v31  ;;  %v943_v46 = vor.u32 %v1043_v36, %v942_v35  ;;  %v1036_v51 = vld [vmem:[%s1158_s25 + $0xd4] sm:$0xf]  ;;  %v342_v55 = vpack.c.b16 %v339_v44, %v339_v44 }
  0x2f   : > { %604 = vmatpush.bf16.msra.mxu1 %v895_v2  ;;  %v992_v41 = vld [vmem:[%s1158_s25 + $0x168] sm:$0xf0]  ;;  %v1010_v47 = vld [vmem:[%s1158_s25 + $0x4] sm:$0xf]  ;;  %v931_v49 = vor.u32 %v1038_v38, %v928_v39  ;;  %v920_v52 = vld [vmem:[%s1158_s25 + $0xd8] sm:$0xf0] }
  0x30   : > { %629 = vmatpush.bf16.msra.mxu3 %v843_v10  ;;  %v816_v48 = vld [vmem:[%s1158_s25 + $0x8] sm:$0xf0]  ;;  %v995_v50 = vor.u32 %v1054_v40, %v992_v41  ;;  %v1052_v53 = vld [vmem:[%s1158_s25 + $0x154] sm:$0xf]  ;;  %v984_v54 = vld [vmem:[%s1158_s25 + $0x158] sm:$0xf0]  ;;  %v923_v57 = vor.u32 %v1036_v51, %v920_v52 }
  0x31   : > { %v819_v56 = vor.u32 %v1010_v47, %v816_v48  ;;  %v987_v58 = vor.u32 %v1052_v53, %v984_v54  ;;  %v1034_v59 = vld [vmem:[%s1158_s25 + $0xc4] sm:$0xf]  ;;  %v912_v60 = vld [vmem:[%s1158_s25 + $0xc8] sm:$0xf0]  ;;  %v1032_v1 = vld [vmem:[%s1158_s25 + $0xb4] sm:$0xf] }
  0x32   : > { %592 = vmatpush.bf16.msra.mxu0 %v823_v11  ;;  %617 = vmatpush.bf16.msra.mxu2 %v959_v12  ;;  %v1050_v61 = vld [vmem:[%s1158_s25 + $0x144] sm:$0xf]  ;;  %v976_v62 = vld [vmem:[%s1158_s25 + $0x148] sm:$0xf0]  ;;  %v915_v63 = vor.u32 %v1034_v59, %v912_v60  ;;  %v904_v2 = vld [vmem:[%s1158_s25 + $0xb8] sm:$0xf0] }
  0x33   : > { %605 = vmatpush.bf16.msra.mxu1 %v887_v16  ;;  %v979_v0 = vor.u32 %v1050_v61, %v976_v62  ;;  %v1048_v3 = vld [vmem:[%s1158_s25 + $0x134] sm:$0xf]  ;;  %v968_v4 = vld [vmem:[%s1158_s25 + $0x138] sm:$0xf0]  ;;  %v907_v5 = vor.u32 %v1032_v1, %v904_v2  ;;  %v1030_v7 = vld [vmem:[%s1158_s25 + $0xa4] sm:$0xf] }
  0x34   : > { %630 = vmatpush.bf16.msra.mxu3 %v835_v25  ;;  %v971_v6 = vor.u32 %v1048_v3, %v968_v4  ;;  %v896_v8 = vld [vmem:[%s1158_s25 + $0xa8] sm:$0xf0]  ;;  %v1046_v9 = vld [vmem:[%s1158_s25 + $0x124] sm:$0xf]  ;;  %v1028_v13 = vld [vmem:[%s1158_s25 + $0x94] sm:$0xf] }
  0x35   : > { %v960_v10 = vld [vmem:[%s1158_s25 + $0x128] sm:$0xf0]  ;;  %v899_v11 = vor.u32 %v1030_v7, %v896_v8  ;;  %v888_v14 = vld [vmem:[%s1158_s25 + $0x98] sm:$0xf0]  ;;  %v1044_v15 = vld [vmem:[%s1158_s25 + $0x114] sm:$0xf] }
  0x36   : > { %593 = vmatpush.bf16.msra.mxu0 %v815_v27  ;;  %618 = vmatpush.bf16.msra.mxu2 %v951_v28  ;;  %v963_v12 = vor.u32 %v1046_v9, %v960_v10  ;;  %v952_v16 = vld [vmem:[%s1158_s25 + $0x118] sm:$0xf0]  ;;  %v891_v17 = vor.u32 %v1028_v13, %v888_v14  ;;  %v1026_v19 = vld [vmem:[%s1158_s25 + $0x84] sm:$0xf]  ;;  %v880_v20 = vld [vmem:[%s1158_s25 + $0x88] sm:$0xf0] }
  0x37   : > { %606 = vmatpush.bf16.msra.mxu1 %v879_v33  ;;  %v955_v18 = vor.u32 %v1044_v15, %v952_v16  ;;  %v1042_v21 = vld [vmem:[%s1158_s25 + $0x104] sm:$0xf]  ;;  %v944_v22 = vld [vmem:[%s1158_s25 + $0x108] sm:$0xf0]  ;;  %v883_v23 = vor.u32 %v1026_v19, %v880_v20 }
  0x38   : > { %631 = vmatpush.bf16.msra.mxu3 %v827_v43  ;;  %v947_v24 = vor.u32 %v1042_v21, %v944_v22  ;;  %v283_v30 = vld [vmem:[#allocation2] sm:$0xff]  ;;  %v284_v40 = vld [vmem:[#allocation2 + $0x8] sm:$0xff] }
  0x39   : > { %594 = vmatmul.bf16.vlgmr.msra.gmra.mxu0 %v340_v42 }
  0x3a   : > { %638 = vmatpush.bf16.msrb.mxu0 %v939_v34  ;;  %607 = vmatmul.bf16.vlgmr.msra.gmra.mxu1 %v1233_v45 }
  0x3b   : > { %651 = vmatpush.bf16.msrb.mxu1 %v1003_v37  ;;  %619 = vmatpush.bf16.msra.mxu2 %v943_v46 }
  0x3c   : > { %632 = vmatpush.bf16.msra.mxu3 %v819_v56 }
  0x3e   : > { %639 = vmatpush.bf16.msrb.mxu0 %v931_v49  ;;  %620 = vmatmul.bf16.vlgmr.msra.gmra.mxu2 %v342_v55 }
  0x3f   : > { %652 = vmatpush.bf16.msrb.mxu1 %v995_v50  ;;  %633 = vmatmul.bf16.vlgmr.msra.gmra.mxu3 %v340_v42 }
  0x42   : > { %640 = vmatpush.bf16.msrb.mxu0 %v923_v57 }
  0x43   : > { %653 = vmatpush.bf16.msrb.mxu1 %v987_v58 }
  0x46   : > { %641 = vmatpush.bf16.msrb.mxu0 %v915_v63 }
  0x47   : > { %654 = vmatpush.bf16.msrb.mxu1 %v979_v0 }
  0x4a   : > { %642 = vmatpush.bf16.msrb.mxu0 %v907_v5 }
  0x4b   : > { %655 = vmatpush.bf16.msrb.mxu1 %v971_v6 }
  0x4e   : > { %643 = vmatpush.bf16.msrb.mxu0 %v899_v11 }
  0x4f   : > { %656 = vmatpush.bf16.msrb.mxu1 %v963_v12 }
  0x52   : > { %644 = vmatpush.bf16.msrb.mxu0 %v891_v17 }
  0x53   : > { %657 = vmatpush.bf16.msrb.mxu1 %v955_v18 }
  0x56   : > { %645 = vmatpush.bf16.msrb.mxu0 %v883_v23 }
  0x57   : > { %658 = vmatpush.bf16.msrb.mxu1 %v947_v24 }
  0x59   : > { %646 = vmatmul.bf16.vlgmr.msrb.gmra.mxu0 %v1233_v45 }
  0x5a   : > { %659 = vmatmul.bf16.vlgmr.msrb.gmra.mxu1 %v342_v55 }
  0xb6   : > { %v595_v25 = vpop.f32.mrf.mxu0 }
  0xb7   : > { %v608_v26 = vpop.f32.mrf.mxu1 }
  0xb8   : > { %v609_v27 = vadd.f32 %v608_v26, %v595_v25 }
  0xbe   : > { %v597_v28 = vpop.f32.mrf.mxu0 }
  0xbf   : > { %v610_v29 = vpop.f32.mrf.mxu1 }
  0xc1   : > { %v621_v31 = vpop.f32.mrf.mxu2 }
  0xc2   : > { %v622_v32 = vadd.f32 %v621_v31, %v609_v27  ;;  %v634_v34 = vpop.f32.mrf.mxu3 }
  0xc4   : > { %v664_v33 = vadd.f32 %v622_v32, %v283_v30 }
  0xc6   : > { %666 = vst [vmem:[#allocation2] sm:$0xff] %v664_v33 }
  0xc9   : > { %v623_v35 = vpop.f32.mrf.mxu2 }
  0xca   : > { %v636_v36 = vpop.f32.mrf.mxu3 }
  0xd6   : > { %v647_v37 = vpop.f32.mrf.mxu0 }
  0xd7   : > { %v648_v38 = vadd.f32 %v647_v37, %v634_v34  ;;  %v660_v39 = vpop.f32.mrf.mxu1 }
  0xd9   : > { %v661_v41 = vadd.f32 %v660_v39, %v648_v38 }
  0xdb   : > { %v665_v42 = vadd.f32 %v661_v41, %v284_v40  ;;  %671 = sbr.rel (%p1004_p7) target bundleno = 236 (0xec), region = 40 }
  0xdd   : > { %667 = vst [vmem:[#allocation2 + $0x8] sm:$0xff] %v665_v42 }
  0xde   : > { %v649_v43 = vpop.f32.mrf.mxu0 }
  0xdf   : > { %v662_v44 = vpop.f32.mrf.mxu1 }
  0xe0   : > { %v672_v45 = vld [vmem:[#allocation2] sm:$0xff] }
  0xe1   : > { %v674_v47 = vld [vmem:[%s1281_s2] sm:$0x3] }
  0xe2   : > { %v676_v48 = vperm.slane %v674_v47, 0  ;;  %v677_v49 = vperm.slane %v674_v47, 1 }
  0xe4   : > { %v673_v46 = vld [vmem:[#allocation2 + $0x8] sm:$0xff]  ;;  %v680_v50 = vadd.f32 %v676_v48, %v672_v45 }
  0xe5   : > { %v681_v51 = vadd.f32 %v677_v49, %v673_v46 }
  0xe6   : > { %v682_v52 = vmax.f32 %v680_v50, 0.0 }
  0xe7   : > { %v683_v53 = vmax.f32 %v681_v51, 0.0 }
  0xe9   : > { %v684_v54 = vpack.c.bf16 %v683_v53, %v682_v52 }
  0xeb   : > { %685 = vst [vmem:[%s1282_s3] sm:$0xff] %v684_v54 }
  0xec PF: > { %s13_s14 = sadd.s32 1, %s1105_s14   ;;  %s1283_s12 = smov %s1101_s13 }
  0xed   : > { %p10_p8 = scmp.ge.s32.totalorder %s13_s14, 8   ;;  %s1284_s13 = smov %s1286_s15 }
  0xef   :  { %12 = sbr.rel (!%p10_p8) target bundleno = 2 (0x2), region = 76 }

</bundles_post_ra>
